<compile_context>
chip_gen: v7x
topology: tpu7x:2x2x1
jax: 0.10.0
libtpu: 0.0.40
codegen_flags: <defaults>
</compile_context>

<pallas_src>
import math
from functools import partial

import jax
import jax.numpy as jnp
from jax.experimental import pallas as pl
from jax.experimental.pallas import tpu as pltpu

F32 = jnp.float32
BF16 = jnp.bfloat16
LN_EPS = 1e-5


# ------------------------------- kernel --------------------------------------


def _layer_norm(x, g, b):
    mu = jnp.mean(x, axis=-1, keepdims=True)
    var = jnp.mean((x - mu) ** 2, axis=-1, keepdims=True)
    return (x - mu) * jax.lax.rsqrt(var + LN_EPS) * g + b


def fused_epsilon_kernel(t3_ref,                    # SMEM (N, 3): [beta, sin(beta), cos(beta)]
                         x_ref, mask_ref,           # (N,L,D) f32, (N,L) f32 (1 = valid token)
                         wn_ref, wt_ref, posb_ref,  # (D,D) bf16, (3,D) f32, (L,D) f32
                         wqkv_ref, bqkv_ref,        # (LAYERS,D,3D) bf16, (LAYERS,1,3D) f32
                         wo_ref,                    # (LAYERS,D,D) bf16
                         w1_ref, b1_ref, w2_ref,    # (LAYERS,D,F) bf16, (LAYERS,1,F) f32, (LAYERS,F,D) bf16
                         vec_ref,                   # (LAYERS,6,D) f32: [bo, b2, g1, be1, g2, be2]
                         wout_ref, bout_ref,        # (D,D) bf16, (1,D) f32
                         o_ref,                     # (N,L,D) f32
                         *, num_layers, num_heads):
    N, L, D = x_ref.shape
    dh = D // num_heads
    NL = N * L
    NH = N * num_heads

    # ---- t_embed contribution + node_dim_map + positional embedding ----------
    # cat([node_feat, t_embed]) @ W.T == node_feat @ Wn + (b*wt0 + sin*wt1 + cos*wt2)
    t_rows = [t3_ref[n, 0] * wt_ref[0:1, :]
              + t3_ref[n, 1] * wt_ref[1:2, :]
              + t3_ref[n, 2] * wt_ref[2:3, :] for n in range(N)]        # N x (1, D)
    addb = (jnp.stack(t_rows) + posb_ref[...][None]).reshape(NL, D)     # (NL, D)

    x = jnp.dot(x_ref[...].reshape(NL, D).astype(BF16), wn_ref[...],
                preferred_element_type=F32) + addb                      # (NL, D) f32

    # additive key-padding mask, hoisted & pre-broadcast to the score shape
    neg = (1.0 - mask_ref[...]) * (-1e9)                                # (N, L)
    neg = jnp.broadcast_to(neg[:, None, None, :],
                           (N, num_heads, L, L)).reshape(NH, L, L)      # (NH, L, L)

    # ---- post-LN transformer encoder layers ----------------------------------
    for l in range(num_layers):
        vec = vec_ref[l]                                                # (6, D)

        # fused QKV projection: one matmul + one bias add per layer
        qkv = jnp.dot(x.astype(BF16), wqkv_ref[l],
                      preferred_element_type=F32) + bqkv_ref[l]         # (NL, 3D) f32

        def split_heads(base):                                          # -> (NH, L, dh)
            parts = [qkv[:, base + h * dh: base + (h + 1) * dh].reshape(N, L, dh)
                     for h in range(num_heads)]
            return jnp.stack(parts, axis=1).reshape(NH, L, dh)

        qh = split_heads(0)
        kh = split_heads(D)
        vh = split_heads(2 * D).astype(BF16)

        # attention core (1/sqrt(dh) already folded into Wq/bq), batched over N*H
        s = jnp.einsum('bld,bmd->blm', qh.astype(BF16), kh.astype(BF16),
                       preferred_element_type=F32) + neg                # (NH, L, L)
        s = s - jnp.max(s, axis=-1, keepdims=True)
        p = jnp.exp(s)
        p = p * pl.reciprocal(jnp.sum(p, axis=-1, keepdims=True), approx=True)
        ctx = jnp.einsum('blm,bmd->bld', p.astype(BF16), vh,
                         preferred_element_type=F32)                    # (NH, L, dh)

        # lane-concat heads back to (NL, D), then ONE output-projection matmul
        ctx = ctx.reshape(N, num_heads, L, dh)
        ctx = jnp.concatenate([ctx[:, h] for h in range(num_heads)],
                              axis=-1).reshape(NL, D).astype(BF16)      # (NL, D) bf16
        attn = jnp.dot(ctx, wo_ref[l], preferred_element_type=F32) + vec[0:1, :]

        x = _layer_norm(x + attn, vec[2:3, :], vec[3:4, :])             # LN1

        hdn = jnp.maximum(
            jnp.dot(x.astype(BF16), w1_ref[l], preferred_element_type=F32) + b1_ref[l],
            0.0)                                                        # (NL, F)
        ff = jnp.dot(hdn.astype(BF16), w2_ref[l],
                     preferred_element_type=F32) + vec[1:2, :]
        x = _layer_norm(x + ff, vec[4:5, :], vec[5:6, :])               # LN2

    # ---- encoder output projection -------------------------------------------
    y = jnp.dot(x.astype(BF16), wout_ref[...], preferred_element_type=F32) + bout_ref[...]
    o_ref[...] = y.reshape(N, L, D).astype(o_ref.dtype)


# --------------------------- wrapper / glue ----------------------------------


def epsilon_net_forward(kp, node_feat, beta, mask, *, num_heads):
    """EpsilonNet.forward for architecture='transformer'. Returns (node_feat, None)."""
    N, L, D = node_feat.shape
    LAYERS = kp["w1"].shape[0]

    t3 = jnp.stack([beta, jnp.sin(beta), jnp.cos(beta)], axis=-1).astype(F32)  # (N, 3)
    maskf = mask.astype(F32)                                                   # (N, L)

    def full_spec(shape):
        nd = len(shape)
        return pl.BlockSpec(tuple(shape), lambda i, sref, _nd=nd: (0,) * _nd)

    out = pl.pallas_call(
        partial(fused_epsilon_kernel, num_layers=LAYERS, num_heads=num_heads),
        out_shape=jax.ShapeDtypeStruct((N, L, D), F32),
        grid_spec=pltpu.PrefetchScalarGridSpec(
            num_scalar_prefetch=1,                 # t3 -> SMEM
            grid=(1,),                             # batch folded into one grid step
            in_specs=[
                full_spec((N, L, D)),              # node_feat
                full_spec((N, L)),                 # mask (1 = valid token)
                full_spec(kp["wn"].shape),
                full_spec(kp["wt"].shape),
                full_spec(kp["posb"].shape),
                full_spec(kp["wqkv"].shape),
                full_spec(kp["bqkv"].shape),
                full_spec(kp["wo"].shape),
                full_spec(kp["w1"].shape),
                full_spec(kp["b1"].shape),
                full_spec(kp["w2"].shape),
                full_spec(kp["vec"].shape),
                full_spec(kp["wout"].shape),
                full_spec(kp["bout"].shape),
            ],
            out_specs=full_spec((N, L, D))),
        compiler_params=pltpu.CompilerParams(
            dimension_semantics=("arbitrary",)),
    )(t3, node_feat.astype(F32), maskf,
      kp["wn"], kp["wt"], kp["posb"],
      kp["wqkv"], kp["bqkv"], kp["wo"],
      kp["w1"], kp["b1"], kp["w2"], kp["vec"],
      kp["wout"], kp["bout"])

    return out, None   # pair_feat is None for the 'transformer' architecture


# --------------------- parameters (PyTorch layout -> kernel layout) ----------


def init_params(key, D, F_, num_layers, num_heads, L):
    """Raw parameters in PyTorch nn.Linear layout: W (out, in), b (out,)."""
    def lin(kk, out_d, in_d):
        kw, kb = jax.random.split(kk)
        w = jax.random.normal(kw, (out_d, in_d), F32) / jnp.sqrt(in_d)
        b = 0.01 * jax.random.normal(kb, (out_d,), F32)
        return w, b

    keys = jax.random.split(key, 2 + num_layers)
    node_w, node_b = lin(keys[0], D, D + 3)          # nn.Linear(D+3, D)
    out_w, out_b = lin(keys[1], D, D)                # encoder output projection

    # sinusoidal positional embedding (with_posi_embedding=True)
    posn = jnp.arange(L, dtype=F32)[:, None]
    dim = jnp.arange(D // 2, dtype=F32)[None, :]
    angle = posn / jnp.power(10000.0, 2.0 * dim / D)
    pos_emb = jnp.concatenate([jnp.sin(angle), jnp.cos(angle)], axis=-1)  # (L, D)

    layers = []
    for i in range(num_layers):
        kk = jax.random.split(keys[2 + i], 6)
        wq, bq = lin(kk[0], D, D)
        wk, bk = lin(kk[1], D, D)
        wv, bv = lin(kk[2], D, D)
        wo, bo = lin(kk[3], D, D)
        w1, b1 = lin(kk[4], F_, D)
        w2, b2 = lin(kk[5], D, F_)
        layers.append(dict(wq=wq, bq=bq, wk=wk, bk=bk, wv=wv, bv=bv, wo=wo, bo=bo,
                           w1=w1, b1=b1, w2=w2, b2=b2,
                           g1=jnp.ones((D,), F32), be1=jnp.zeros((D,), F32),
                           g2=jnp.ones((D,), F32), be2=jnp.zeros((D,), F32)))

    return dict(node_map_w=node_w, node_map_b=node_b,
                out_w=out_w, out_b=out_b, pos_emb=pos_emb,
                layers=layers, num_heads=num_heads, ffn_dim=F_)


def prepare_params(raw):
    """One-time packing: transpose, QKV fuse, layer stacking, bf16 cast."""
    D = raw["node_map_w"].shape[0]
    H = raw["num_heads"]
    layers = raw["layers"]
    dh = D // H
    scale = 1.0 / math.sqrt(dh)

    wn = raw["node_map_w"][:, :D].T.astype(BF16)                      # (D, D)
    wt = raw["node_map_w"][:, D:].T.astype(F32)                       # (3, D)
    posb = (raw["pos_emb"] + raw["node_map_b"][None, :]).astype(F32)  # (L, D)

    wqkvs, bqkvs, wos, w1s, b1s, w2s, vecs = [], [], [], [], [], [], []
    for lyr in layers:
        wq = lyr["wq"] * scale          # fold 1/sqrt(dh) into the Q projection
        bq = lyr["bq"] * scale
        wqkvs.append(jnp.concatenate([wq.T, lyr["wk"].T, lyr["wv"].T], axis=1))  # (D, 3D)
        bqkvs.append(jnp.concatenate([bq, lyr["bk"], lyr["bv"]])[None, :])       # (1, 3D)
        wos.append(lyr["wo"].T)                                       # (D, D)
        w1s.append(lyr["w1"].T)                                       # (D, F)
        b1s.append(lyr["b1"][None, :])                                # (1, F)
        w2s.append(lyr["w2"].T)                                       # (F, D)
        vecs.append(jnp.stack([lyr["bo"], lyr["b2"],
                               lyr["g1"], lyr["be1"],
                               lyr["g2"], lyr["be2"]]))               # (6, D)

    return dict(
        wn=wn, wt=wt, posb=posb,
        wqkv=jnp.stack(wqkvs).astype(BF16),          # (LAYERS, D, 3D)
        bqkv=jnp.stack(bqkvs).astype(F32),           # (LAYERS, 1, 3D)
        wo=jnp.stack(wos).astype(BF16),              # (LAYERS, D, D)
        w1=jnp.stack(w1s).astype(BF16),              # (LAYERS, D, F)
        b1=jnp.stack(b1s).astype(F32),               # (LAYERS, 1, F)
        w2=jnp.stack(w2s).astype(BF16),              # (LAYERS, F, D)
        vec=jnp.stack(vecs).astype(F32),             # (LAYERS, 6, D)
        wout=raw["out_w"].T.astype(BF16),            # (D, D)
        bout=raw["out_b"][None, :].astype(F32),      # (1, D)
    )


# ---------------------------------- main --------------------------------------


if __name__ == "__main__":
    N, L, D, H, LAYERS = 2, 8, 32, 4, 3          # res_feat_dim=32, num_heads=4, num_layers=3
    F_ = 4 * D                                   # assumed dim_feedforward

    key = jax.random.PRNGKey(0)
    kparam, kx, kb = jax.random.split(key, 3)
    raw = init_params(kparam, D, F_, LAYERS, H, L)
    params = prepare_params(raw)                 # one-time weight packing

    node_feat = jax.random.normal(kx, (N, L, D), jnp.float32)
    beta = jax.random.uniform(kb, (N,), jnp.float32)
    mask = jnp.ones((N, L), jnp.bool_).at[1, -2:].set(False)   # last 2 tokens of batch 1 padded

    fwd = jax.jit(partial(epsilon_net_forward, num_heads=H))
    node_out, pair_out = fwd(params, node_feat, beta, mask)
    jax.block_until_ready(node_out)

    assert node_out.shape == (N, L, D) and node_out.dtype == jnp.float32
    assert pair_out is None
    assert bool(jnp.all(jnp.isfinite(node_out)))
    print("KERNEL_OK")
</pallas_src>

<mosaic_0001>
module attributes {stable_mosaic.version = 11 : i64} {
  func.func @fused_epsilon_kernel(%arg0: i32, %arg1: memref<2x3xf32, #tpu.memory_space<smem>>, %arg2: memref<2x8x32xf32, #tpu.memory_space<vmem>>, %arg3: memref<2x8xf32, #tpu.memory_space<vmem>>, %arg4: memref<32x32xbf16, #tpu.memory_space<vmem>>, %arg5: memref<3x32xf32, #tpu.memory_space<vmem>>, %arg6: memref<8x32xf32, #tpu.memory_space<vmem>>, %arg7: memref<3x32x96xbf16, #tpu.memory_space<vmem>>, %arg8: memref<3x1x96xf32, #tpu.memory_space<vmem>>, %arg9: memref<3x32x32xbf16, #tpu.memory_space<vmem>>, %arg10: memref<3x32x128xbf16, #tpu.memory_space<vmem>>, %arg11: memref<3x1x128xf32, #tpu.memory_space<vmem>>, %arg12: memref<3x128x32xbf16, #tpu.memory_space<vmem>>, %arg13: memref<3x6x32xf32, #tpu.memory_space<vmem>>, %arg14: memref<32x32xbf16, #tpu.memory_space<vmem>>, %arg15: memref<1x32xf32, #tpu.memory_space<vmem>>, %arg16: memref<2x8x32xf32, #tpu.memory_space<vmem>>) attributes {dimension_semantics = [#tpu.dimension_semantics<arbitrary>], iteration_bounds = array<i64: 1>, scalar_prefetch = 1 : i64, scratch_operands = 0 : i64, tpu.core_type = #tpu.core_type<tc>, window_params = [{pipeline_mode = #tpu.pipeline_mode<synchronous>, transform_indices = @transform_0, window_bounds = array<i64: 2, 8, 32>}, {pipeline_mode = #tpu.pipeline_mode<synchronous>, transform_indices = @transform_1, window_bounds = array<i64: 2, 8>}, {pipeline_mode = #tpu.pipeline_mode<synchronous>, transform_indices = @transform_2, window_bounds = array<i64: 32, 32>}, {pipeline_mode = #tpu.pipeline_mode<synchronous>, transform_indices = @transform_3, window_bounds = array<i64: 3, 32>}, {pipeline_mode = #tpu.pipeline_mode<synchronous>, transform_indices = @transform_4, window_bounds = array<i64: 8, 32>}, {pipeline_mode = #tpu.pipeline_mode<synchronous>, transform_indices = @transform_5, window_bounds = array<i64: 3, 32, 96>}, {pipeline_mode = #tpu.pipeline_mode<synchronous>, transform_indices = @transform_6, window_bounds = array<i64: 3, 1, 96>}, {pipeline_mode = #tpu.pipeline_mode<synchronous>, transform_indices = @transform_7, window_bounds = array<i64: 3, 32, 32>}, {pipeline_mode = #tpu.pipeline_mode<synchronous>, transform_indices = @transform_8, window_bounds = array<i64: 3, 32, 128>}, {pipeline_mode = #tpu.pipeline_mode<synchronous>, transform_indices = @transform_9, window_bounds = array<i64: 3, 1, 128>}, {pipeline_mode = #tpu.pipeline_mode<synchronous>, transform_indices = @transform_10, window_bounds = array<i64: 3, 128, 32>}, {pipeline_mode = #tpu.pipeline_mode<synchronous>, transform_indices = @transform_11, window_bounds = array<i64: 3, 6, 32>}, {pipeline_mode = #tpu.pipeline_mode<synchronous>, transform_indices = @transform_12, window_bounds = array<i64: 32, 32>}, {pipeline_mode = #tpu.pipeline_mode<synchronous>, transform_indices = @transform_13, window_bounds = array<i64: 1, 32>}, {pipeline_mode = #tpu.pipeline_mode<synchronous>, transform_indices = @transform_14, window_bounds = array<i64: 2, 8, 32>}]} {
    %c0 = arith.constant 0 : index
    %c0_0 = arith.constant 0 : index
    %0 = memref.load %arg1[%c0, %c0_0] : memref<2x3xf32, #tpu.memory_space<smem>>
    %c0_1 = arith.constant 0 : index
    %c0_2 = arith.constant 0 : index
    %1 = vector.load %arg5[%c0_1, %c0_2] : memref<3x32xf32, #tpu.memory_space<vmem>>, vector<1x32xf32>
    %2 = vector.broadcast %0 : f32 to vector<1x32xf32>
    %3 = arith.mulf %2, %1 : vector<1x32xf32>
    %c0_3 = arith.constant 0 : index
    %c1 = arith.constant 1 : index
    %4 = memref.load %arg1[%c0_3, %c1] : memref<2x3xf32, #tpu.memory_space<smem>>
    %c1_4 = arith.constant 1 : index
    %c0_5 = arith.constant 0 : index
    %5 = vector.load %arg5[%c1_4, %c0_5] : memref<3x32xf32, #tpu.memory_space<vmem>>, vector<1x32xf32>
    %6 = vector.broadcast %4 : f32 to vector<1x32xf32>
    %7 = arith.mulf %6, %5 : vector<1x32xf32>
    %8 = arith.addf %3, %7 : vector<1x32xf32>
    %c0_6 = arith.constant 0 : index
    %c2 = arith.constant 2 : index
    %9 = memref.load %arg1[%c0_6, %c2] : memref<2x3xf32, #tpu.memory_space<smem>>
    %c2_7 = arith.constant 2 : index
    %c0_8 = arith.constant 0 : index
    %10 = vector.load %arg5[%c2_7, %c0_8] : memref<3x32xf32, #tpu.memory_space<vmem>>, vector<1x32xf32>
    %11 = vector.broadcast %9 : f32 to vector<1x32xf32>
    %12 = arith.mulf %11, %10 : vector<1x32xf32>
    %13 = arith.addf %8, %12 : vector<1x32xf32>
    %c1_9 = arith.constant 1 : index
    %c0_10 = arith.constant 0 : index
    %14 = memref.load %arg1[%c1_9, %c0_10] : memref<2x3xf32, #tpu.memory_space<smem>>
    %c0_11 = arith.constant 0 : index
    %c0_12 = arith.constant 0 : index
    %15 = vector.load %arg5[%c0_11, %c0_12] : memref<3x32xf32, #tpu.memory_space<vmem>>, vector<1x32xf32>
    %16 = vector.broadcast %14 : f32 to vector<1x32xf32>
    %17 = arith.mulf %16, %15 : vector<1x32xf32>
    %c1_13 = arith.constant 1 : index
    %c1_14 = arith.constant 1 : index
    %18 = memref.load %arg1[%c1_13, %c1_14] : memref<2x3xf32, #tpu.memory_space<smem>>
    %c1_15 = arith.constant 1 : index
    %c0_16 = arith.constant 0 : index
    %19 = vector.load %arg5[%c1_15, %c0_16] : memref<3x32xf32, #tpu.memory_space<vmem>>, vector<1x32xf32>
    %20 = vector.broadcast %18 : f32 to vector<1x32xf32>
    %21 = arith.mulf %20, %19 : vector<1x32xf32>
    %22 = arith.addf %17, %21 : vector<1x32xf32>
    %c1_17 = arith.constant 1 : index
    %c2_18 = arith.constant 2 : index
    %23 = memref.load %arg1[%c1_17, %c2_18] : memref<2x3xf32, #tpu.memory_space<smem>>
    %c2_19 = arith.constant 2 : index
    %c0_20 = arith.constant 0 : index
    %24 = vector.load %arg5[%c2_19, %c0_20] : memref<3x32xf32, #tpu.memory_space<vmem>>, vector<1x32xf32>
    %25 = vector.broadcast %23 : f32 to vector<1x32xf32>
    %26 = arith.mulf %25, %24 : vector<1x32xf32>
    %27 = arith.addf %22, %26 : vector<1x32xf32>
    %28 = vector.shape_cast %13 : vector<1x32xf32> to vector<1x1x32xf32>
    %29 = vector.shape_cast %27 : vector<1x32xf32> to vector<1x1x32xf32>
    %30 = tpu.concatenate %28, %29 in 0 : vector<1x1x32xf32>, vector<1x1x32xf32> -> vector<2x1x32xf32>
    %c0_21 = arith.constant 0 : index
    %c0_22 = arith.constant 0 : index
    %31 = vector.load %arg6[%c0_21, %c0_22] : memref<8x32xf32, #tpu.memory_space<vmem>>, vector<8x32xf32>
    %32 = vector.shape_cast %31 : vector<8x32xf32> to vector<1x8x32xf32>
    %33 = vector.broadcast %30 : vector<2x1x32xf32> to vector<2x8x32xf32>
    %34 = vector.broadcast %32 : vector<1x8x32xf32> to vector<2x8x32xf32>
    %35 = arith.addf %33, %34 : vector<2x8x32xf32>
    %36 = vector.shape_cast %35 : vector<2x8x32xf32> to vector<16x32xf32>
    %c0_23 = arith.constant 0 : index
    %c0_24 = arith.constant 0 : index
    %c0_25 = arith.constant 0 : index
    %37 = vector.load %arg2[%c0_23, %c0_24, %c0_25] : memref<2x8x32xf32, #tpu.memory_space<vmem>>, vector<2x8x32xf32>
    %38 = vector.shape_cast %37 : vector<2x8x32xf32> to vector<16x32xf32>
    %39 = arith.truncf %38 : vector<16x32xf32> to vector<16x32xbf16>
    %c0_26 = arith.constant 0 : index
    %c0_27 = arith.constant 0 : index
    %40 = vector.load %arg4[%c0_26, %c0_27] : memref<32x32xbf16, #tpu.memory_space<vmem>>, vector<32x32xbf16>
    %cst = arith.constant dense<0.000000e+00> : vector<16x32xf32>
    %41 = tpu.matmul %39, %40, %cst {dimension_numbers = #tpu.dot_dimension_numbers<[1], [0], [0], [1], [0, 0, 1, 1], [], []>} : vector<16x32xbf16>, vector<32x32xbf16>, vector<16x32xf32> -> vector<16x32xf32>
    %42 = arith.addf %41, %36 : vector<16x32xf32>
    %c0_28 = arith.constant 0 : index
    %c0_29 = arith.constant 0 : index
    %43 = vector.load %arg3[%c0_28, %c0_29] : memref<2x8xf32, #tpu.memory_space<vmem>>, vector<2x8xf32>
    %cst_30 = arith.constant 1.000000e+00 : f32
    %44 = vector.broadcast %cst_30 : f32 to vector<2x8xf32>
    %45 = arith.subf %44, %43 : vector<2x8xf32>
    %cst_31 = arith.constant -1.000000e+09 : f32
    %46 = vector.broadcast %cst_31 : f32 to vector<2x8xf32>
    %47 = arith.mulf %45, %46 : vector<2x8xf32>
    %48 = vector.shape_cast %47 : vector<2x8xf32> to vector<2x1x1x8xf32>
    %49 = vector.shape_cast %48 : vector<2x1x1x8xf32> to vector<2x1x1x8xf32>
    %50 = vector.broadcast %49 : vector<2x1x1x8xf32> to vector<2x4x8x8xf32>
    %51 = vector.shape_cast %50 : vector<2x4x8x8xf32> to vector<8x8x8xf32>
    %c0_32 = arith.constant 0 : index
    %c0_33 = arith.constant 0 : index
    %c0_34 = arith.constant 0 : index
    %52 = vector.load %arg13[%c0_32, %c0_33, %c0_34] : memref<3x6x32xf32, #tpu.memory_space<vmem>>, vector<1x6x32xf32>
    %53 = vector.shape_cast %52 : vector<1x6x32xf32> to vector<6x32xf32>
    %54 = arith.truncf %42 : vector<16x32xf32> to vector<16x32xbf16>
    %c0_35 = arith.constant 0 : index
    %c0_36 = arith.constant 0 : index
    %c0_37 = arith.constant 0 : index
    %55 = vector.load %arg7[%c0_35, %c0_36, %c0_37] : memref<3x32x96xbf16, #tpu.memory_space<vmem>>, vector<1x32x96xbf16>
    %56 = vector.shape_cast %55 : vector<1x32x96xbf16> to vector<32x96xbf16>
    %cst_38 = arith.constant dense<0.000000e+00> : vector<16x96xf32>
    %57 = tpu.matmul %54, %56, %cst_38 {dimension_numbers = #tpu.dot_dimension_numbers<[1], [0], [0], [1], [0, 0, 1, 1], [], []>} : vector<16x32xbf16>, vector<32x96xbf16>, vector<16x96xf32> -> vector<16x96xf32>
    %c0_39 = arith.constant 0 : index
    %c0_40 = arith.constant 0 : index
    %c0_41 = arith.constant 0 : index
    %58 = vector.load %arg8[%c0_39, %c0_40, %c0_41] : memref<3x1x96xf32, #tpu.memory_space<vmem>>, vector<1x1x96xf32>
    %59 = vector.shape_cast %58 : vector<1x1x96xf32> to vector<1x96xf32>
    %60 = vector.broadcast %59 : vector<1x96xf32> to vector<16x96xf32>
    %61 = arith.addf %57, %60 : vector<16x96xf32>
    %62 = vector.extract_strided_slice %61 {offsets = [0, 0], sizes = [16, 8], strides = [1, 1]} : vector<16x96xf32> to vector<16x8xf32>
    %63 = vector.shape_cast %62 : vector<16x8xf32> to vector<2x8x8xf32>
    %64 = vector.extract_strided_slice %61 {offsets = [0, 8], sizes = [16, 8], strides = [1, 1]} : vector<16x96xf32> to vector<16x8xf32>
    %65 = vector.shape_cast %64 : vector<16x8xf32> to vector<2x8x8xf32>
    %66 = vector.extract_strided_slice %61 {offsets = [0, 16], sizes = [16, 8], strides = [1, 1]} : vector<16x96xf32> to vector<16x8xf32>
    %67 = vector.shape_cast %66 : vector<16x8xf32> to vector<2x8x8xf32>
    %68 = vector.extract_strided_slice %61 {offsets = [0, 24], sizes = [16, 8], strides = [1, 1]} : vector<16x96xf32> to vector<16x8xf32>
    %69 = vector.shape_cast %68 : vector<16x8xf32> to vector<2x8x8xf32>
    %70 = vector.shape_cast %63 : vector<2x8x8xf32> to vector<2x1x8x8xf32>
    %71 = vector.shape_cast %65 : vector<2x8x8xf32> to vector<2x1x8x8xf32>
    %72 = vector.shape_cast %67 : vector<2x8x8xf32> to vector<2x1x8x8xf32>
    %73 = vector.shape_cast %69 : vector<2x8x8xf32> to vector<2x1x8x8xf32>
    %74 = tpu.concatenate %70, %71, %72, %73 in 1 : vector<2x1x8x8xf32>, vector<2x1x8x8xf32>, vector<2x1x8x8xf32>, vector<2x1x8x8xf32> -> vector<2x4x8x8xf32>
    %75 = vector.shape_cast %74 : vector<2x4x8x8xf32> to vector<8x8x8xf32>
    %76 = vector.extract_strided_slice %61 {offsets = [0, 32], sizes = [16, 8], strides = [1, 1]} : vector<16x96xf32> to vector<16x8xf32>
    %77 = vector.shape_cast %76 : vector<16x8xf32> to vector<2x8x8xf32>
    %78 = vector.extract_strided_slice %61 {offsets = [0, 40], sizes = [16, 8], strides = [1, 1]} : vector<16x96xf32> to vector<16x8xf32>
    %79 = vector.shape_cast %78 : vector<16x8xf32> to vector<2x8x8xf32>
    %80 = vector.extract_strided_slice %61 {offsets = [0, 48], sizes = [16, 8], strides = [1, 1]} : vector<16x96xf32> to vector<16x8xf32>
    %81 = vector.shape_cast %80 : vector<16x8xf32> to vector<2x8x8xf32>
    %82 = vector.extract_strided_slice %61 {offsets = [0, 56], sizes = [16, 8], strides = [1, 1]} : vector<16x96xf32> to vector<16x8xf32>
    %83 = vector.shape_cast %82 : vector<16x8xf32> to vector<2x8x8xf32>
    %84 = vector.shape_cast %77 : vector<2x8x8xf32> to vector<2x1x8x8xf32>
    %85 = vector.shape_cast %79 : vector<2x8x8xf32> to vector<2x1x8x8xf32>
    %86 = vector.shape_cast %81 : vector<2x8x8xf32> to vector<2x1x8x8xf32>
    %87 = vector.shape_cast %83 : vector<2x8x8xf32> to vector<2x1x8x8xf32>
    %88 = tpu.concatenate %84, %85, %86, %87 in 1 : vector<2x1x8x8xf32>, vector<2x1x8x8xf32>, vector<2x1x8x8xf32>, vector<2x1x8x8xf32> -> vector<2x4x8x8xf32>
    %89 = vector.shape_cast %88 : vector<2x4x8x8xf32> to vector<8x8x8xf32>
    %90 = vector.extract_strided_slice %61 {offsets = [0, 64], sizes = [16, 8], strides = [1, 1]} : vector<16x96xf32> to vector<16x8xf32>
    %91 = vector.shape_cast %90 : vector<16x8xf32> to vector<2x8x8xf32>
    %92 = vector.extract_strided_slice %61 {offsets = [0, 72], sizes = [16, 8], strides = [1, 1]} : vector<16x96xf32> to vector<16x8xf32>
    %93 = vector.shape_cast %92 : vector<16x8xf32> to vector<2x8x8xf32>
    %94 = vector.extract_strided_slice %61 {offsets = [0, 80], sizes = [16, 8], strides = [1, 1]} : vector<16x96xf32> to vector<16x8xf32>
    %95 = vector.shape_cast %94 : vector<16x8xf32> to vector<2x8x8xf32>
    %96 = vector.extract_strided_slice %61 {offsets = [0, 88], sizes = [16, 8], strides = [1, 1]} : vector<16x96xf32> to vector<16x8xf32>
    %97 = vector.shape_cast %96 : vector<16x8xf32> to vector<2x8x8xf32>
    %98 = vector.shape_cast %91 : vector<2x8x8xf32> to vector<2x1x8x8xf32>
    %99 = vector.shape_cast %93 : vector<2x8x8xf32> to vector<2x1x8x8xf32>
    %100 = vector.shape_cast %95 : vector<2x8x8xf32> to vector<2x1x8x8xf32>
    %101 = vector.shape_cast %97 : vector<2x8x8xf32> to vector<2x1x8x8xf32>
    %102 = tpu.concatenate %98, %99, %100, %101 in 1 : vector<2x1x8x8xf32>, vector<2x1x8x8xf32>, vector<2x1x8x8xf32>, vector<2x1x8x8xf32> -> vector<2x4x8x8xf32>
    %103 = vector.shape_cast %102 : vector<2x4x8x8xf32> to vector<8x8x8xf32>
    %104 = arith.truncf %103 : vector<8x8x8xf32> to vector<8x8x8xbf16>
    %105 = arith.truncf %75 : vector<8x8x8xf32> to vector<8x8x8xbf16>
    %106 = arith.truncf %89 : vector<8x8x8xf32> to vector<8x8x8xbf16>
    "tpu.trace_start"() <{level = 10 : i32, message = "bld,bmd->blm"}> : () -> ()
    %cst_42 = arith.constant dense<0.000000e+00> : vector<8x8x8xf32>
    %107 = tpu.matmul %105, %106, %cst_42 {dimension_numbers = #tpu.dot_dimension_numbers<[2], [2], [1], [1], [0, 0, 0, 1, 1, 1], [0], [0]>} : vector<8x8x8xbf16>, vector<8x8x8xbf16>, vector<8x8x8xf32> -> vector<8x8x8xf32>
    "tpu.trace_stop"() : () -> ()
    %108 = arith.addf %107, %51 : vector<8x8x8xf32>
    %cst_43 = arith.constant dense<0xFF800000> : vector<8x8xf32>
    %109 = vector.multi_reduction <maximumf>, %108, %cst_43 [2] : vector<8x8x8xf32> to vector<8x8xf32>
    %110 = vector.shape_cast %109 : vector<8x8xf32> to vector<8x8x1xf32>
    %111 = vector.broadcast %110 : vector<8x8x1xf32> to vector<8x8x8xf32>
    %112 = arith.subf %108, %111 : vector<8x8x8xf32>
    %113 = math.exp %112 : vector<8x8x8xf32>
    %cst_44 = arith.constant dense<0.000000e+00> : vector<8x8xf32>
    %114 = vector.multi_reduction <add>, %113, %cst_44 [2] : vector<8x8x8xf32> to vector<8x8xf32>
    %115 = vector.shape_cast %114 : vector<8x8xf32> to vector<8x8x1xf32>
    %116 = tpu.reciprocal %115 {approx = true} : vector<8x8x1xf32> -> vector<8x8x1xf32>
    %117 = vector.broadcast %116 : vector<8x8x1xf32> to vector<8x8x8xf32>
    %118 = arith.mulf %113, %117 : vector<8x8x8xf32>
    %119 = arith.truncf %118 : vector<8x8x8xf32> to vector<8x8x8xbf16>
    "tpu.trace_start"() <{level = 10 : i32, message = "blm,bmd->bld"}> : () -> ()
    %cst_45 = arith.constant dense<0.000000e+00> : vector<8x8x8xf32>
    %120 = tpu.matmul %119, %104, %cst_45 {dimension_numbers = #tpu.dot_dimension_numbers<[2], [1], [1], [2], [0, 0, 0, 1, 1, 2], [0], [0]>} : vector<8x8x8xbf16>, vector<8x8x8xbf16>, vector<8x8x8xf32> -> vector<8x8x8xf32>
    "tpu.trace_stop"() : () -> ()
    %121 = vector.shape_cast %120 : vector<8x8x8xf32> to vector<2x4x8x8xf32>
    %122 = vector.extract_strided_slice %121 {offsets = [0, 0, 0, 0], sizes = [2, 1, 8, 8], strides = [1, 1, 1, 1]} : vector<2x4x8x8xf32> to vector<2x1x8x8xf32>
    %123 = vector.shape_cast %122 : vector<2x1x8x8xf32> to vector<2x8x8xf32>
    %124 = vector.extract_strided_slice %121 {offsets = [0, 1, 0, 0], sizes = [2, 1, 8, 8], strides = [1, 1, 1, 1]} : vector<2x4x8x8xf32> to vector<2x1x8x8xf32>
    %125 = vector.shape_cast %124 : vector<2x1x8x8xf32> to vector<2x8x8xf32>
    %126 = vector.extract_strided_slice %121 {offsets = [0, 2, 0, 0], sizes = [2, 1, 8, 8], strides = [1, 1, 1, 1]} : vector<2x4x8x8xf32> to vector<2x1x8x8xf32>
    %127 = vector.shape_cast %126 : vector<2x1x8x8xf32> to vector<2x8x8xf32>
    %128 = vector.extract_strided_slice %121 {offsets = [0, 3, 0, 0], sizes = [2, 1, 8, 8], strides = [1, 1, 1, 1]} : vector<2x4x8x8xf32> to vector<2x1x8x8xf32>
    %129 = vector.shape_cast %128 : vector<2x1x8x8xf32> to vector<2x8x8xf32>
    %130 = tpu.concatenate %123, %125, %127, %129 in 2 : vector<2x8x8xf32>, vector<2x8x8xf32>, vector<2x8x8xf32>, vector<2x8x8xf32> -> vector<2x8x32xf32>
    %131 = vector.shape_cast %130 : vector<2x8x32xf32> to vector<16x32xf32>
    %132 = arith.truncf %131 : vector<16x32xf32> to vector<16x32xbf16>
    %c0_46 = arith.constant 0 : index
    %c0_47 = arith.constant 0 : index
    %c0_48 = arith.constant 0 : index
    %133 = vector.load %arg9[%c0_46, %c0_47, %c0_48] : memref<3x32x32xbf16, #tpu.memory_space<vmem>>, vector<1x32x32xbf16>
    %134 = vector.shape_cast %133 : vector<1x32x32xbf16> to vector<32x32xbf16>
    %cst_49 = arith.constant dense<0.000000e+00> : vector<16x32xf32>
    %135 = tpu.matmul %132, %134, %cst_49 {dimension_numbers = #tpu.dot_dimension_numbers<[1], [0], [0], [1], [0, 0, 1, 1], [], []>} : vector<16x32xbf16>, vector<32x32xbf16>, vector<16x32xf32> -> vector<16x32xf32>
    %136 = vector.extract_strided_slice %53 {offsets = [0, 0], sizes = [1, 32], strides = [1, 1]} : vector<6x32xf32> to vector<1x32xf32>
    %137 = vector.broadcast %136 : vector<1x32xf32> to vector<16x32xf32>
    %138 = arith.addf %135, %137 : vector<16x32xf32>
    %139 = arith.addf %42, %138 : vector<16x32xf32>
    %140 = vector.extract_strided_slice %53 {offsets = [2, 0], sizes = [1, 32], strides = [1, 1]} : vector<6x32xf32> to vector<1x32xf32>
    %141 = vector.extract_strided_slice %53 {offsets = [3, 0], sizes = [1, 32], strides = [1, 1]} : vector<6x32xf32> to vector<1x32xf32>
    %cst_50 = arith.constant dense<0.000000e+00> : vector<16xf32>
    %142 = vector.multi_reduction <add>, %139, %cst_50 [1] : vector<16x32xf32> to vector<16xf32>
    %143 = vector.shape_cast %142 : vector<16xf32> to vector<16x1xf32>
    %cst_51 = arith.constant 3.200000e+01 : f32
    %144 = vector.broadcast %cst_51 : f32 to vector<16x1xf32>
    %145 = arith.divf %143, %144 : vector<16x1xf32>
    %146 = vector.broadcast %145 : vector<16x1xf32> to vector<16x32xf32>
    %147 = arith.subf %139, %146 : vector<16x32xf32>
    %148 = arith.mulf %147, %147 : vector<16x32xf32>
    %cst_52 = arith.constant dense<0.000000e+00> : vector<16xf32>
    %149 = vector.multi_reduction <add>, %148, %cst_52 [1] : vector<16x32xf32> to vector<16xf32>
    %150 = vector.shape_cast %149 : vector<16xf32> to vector<16x1xf32>
    %cst_53 = arith.constant 3.200000e+01 : f32
    %151 = vector.broadcast %cst_53 : f32 to vector<16x1xf32>
    %152 = arith.divf %150, %151 : vector<16x1xf32>
    %153 = vector.broadcast %145 : vector<16x1xf32> to vector<16x32xf32>
    %154 = arith.subf %139, %153 : vector<16x32xf32>
    %cst_54 = arith.constant 9.99999974E-6 : f32
    %155 = vector.broadcast %cst_54 : f32 to vector<16x1xf32>
    %156 = arith.addf %152, %155 : vector<16x1xf32>
    %157 = math.rsqrt %156 : vector<16x1xf32>
    %158 = vector.broadcast %157 : vector<16x1xf32> to vector<16x32xf32>
    %159 = arith.mulf %154, %158 : vector<16x32xf32>
    %160 = vector.broadcast %140 : vector<1x32xf32> to vector<16x32xf32>
    %161 = arith.mulf %159, %160 : vector<16x32xf32>
    %162 = vector.broadcast %141 : vector<1x32xf32> to vector<16x32xf32>
    %163 = arith.addf %161, %162 : vector<16x32xf32>
    %164 = arith.truncf %163 : vector<16x32xf32> to vector<16x32xbf16>
    %c0_55 = arith.constant 0 : index
    %c0_56 = arith.constant 0 : index
    %c0_57 = arith.constant 0 : index
    %165 = vector.load %arg10[%c0_55, %c0_56, %c0_57] : memref<3x32x128xbf16, #tpu.memory_space<vmem>>, vector<1x32x128xbf16>
    %166 = vector.shape_cast %165 : vector<1x32x128xbf16> to vector<32x128xbf16>
    %cst_58 = arith.constant dense<0.000000e+00> : vector<16x128xf32>
    %167 = tpu.matmul %164, %166, %cst_58 {dimension_numbers = #tpu.dot_dimension_numbers<[1], [0], [0], [1], [0, 0, 1, 1], [], []>} : vector<16x32xbf16>, vector<32x128xbf16>, vector<16x128xf32> -> vector<16x128xf32>
    %c0_59 = arith.constant 0 : index
    %c0_60 = arith.constant 0 : index
    %c0_61 = arith.constant 0 : index
    %168 = vector.load %arg11[%c0_59, %c0_60, %c0_61] : memref<3x1x128xf32, #tpu.memory_space<vmem>>, vector<1x1x128xf32>
    %169 = vector.shape_cast %168 : vector<1x1x128xf32> to vector<1x128xf32>
    %170 = vector.broadcast %169 : vector<1x128xf32> to vector<16x128xf32>
    %171 = arith.addf %167, %170 : vector<16x128xf32>
    %cst_62 = arith.constant 0.000000e+00 : f32
    %172 = vector.broadcast %cst_62 : f32 to vector<16x128xf32>
    %173 = arith.maximumf %171, %172 : vector<16x128xf32>
    %174 = arith.truncf %173 : vector<16x128xf32> to vector<16x128xbf16>
    %c0_63 = arith.constant 0 : index
    %c0_64 = arith.constant 0 : index
    %c0_65 = arith.constant 0 : index
    %175 = vector.load %arg12[%c0_63, %c0_64, %c0_65] : memref<3x128x32xbf16, #tpu.memory_space<vmem>>, vector<1x128x32xbf16>
    %176 = vector.shape_cast %175 : vector<1x128x32xbf16> to vector<128x32xbf16>
    %cst_66 = arith.constant dense<0.000000e+00> : vector<16x32xf32>
    %177 = tpu.matmul %174, %176, %cst_66 {dimension_numbers = #tpu.dot_dimension_numbers<[1], [0], [0], [1], [0, 0, 1, 1], [], []>} : vector<16x128xbf16>, vector<128x32xbf16>, vector<16x32xf32> -> vector<16x32xf32>
    %178 = vector.extract_strided_slice %53 {offsets = [1, 0], sizes = [1, 32], strides = [1, 1]} : vector<6x32xf32> to vector<1x32xf32>
    %179 = vector.broadcast %178 : vector<1x32xf32> to vector<16x32xf32>
    %180 = arith.addf %177, %179 : vector<16x32xf32>
    %181 = arith.addf %163, %180 : vector<16x32xf32>
    %182 = vector.extract_strided_slice %53 {offsets = [4, 0], sizes = [1, 32], strides = [1, 1]} : vector<6x32xf32> to vector<1x32xf32>
    %183 = vector.extract_strided_slice %53 {offsets = [5, 0], sizes = [1, 32], strides = [1, 1]} : vector<6x32xf32> to vector<1x32xf32>
    %cst_67 = arith.constant dense<0.000000e+00> : vector<16xf32>
    %184 = vector.multi_reduction <add>, %181, %cst_67 [1] : vector<16x32xf32> to vector<16xf32>
    %185 = vector.shape_cast %184 : vector<16xf32> to vector<16x1xf32>
    %cst_68 = arith.constant 3.200000e+01 : f32
    %186 = vector.broadcast %cst_68 : f32 to vector<16x1xf32>
    %187 = arith.divf %185, %186 : vector<16x1xf32>
    %188 = vector.broadcast %187 : vector<16x1xf32> to vector<16x32xf32>
    %189 = arith.subf %181, %188 : vector<16x32xf32>
    %190 = arith.mulf %189, %189 : vector<16x32xf32>
    %cst_69 = arith.constant dense<0.000000e+00> : vector<16xf32>
    %191 = vector.multi_reduction <add>, %190, %cst_69 [1] : vector<16x32xf32> to vector<16xf32>
    %192 = vector.shape_cast %191 : vector<16xf32> to vector<16x1xf32>
    %cst_70 = arith.constant 3.200000e+01 : f32
    %193 = vector.broadcast %cst_70 : f32 to vector<16x1xf32>
    %194 = arith.divf %192, %193 : vector<16x1xf32>
    %195 = vector.broadcast %187 : vector<16x1xf32> to vector<16x32xf32>
    %196 = arith.subf %181, %195 : vector<16x32xf32>
    %cst_71 = arith.constant 9.99999974E-6 : f32
    %197 = vector.broadcast %cst_71 : f32 to vector<16x1xf32>
    %198 = arith.addf %194, %197 : vector<16x1xf32>
    %199 = math.rsqrt %198 : vector<16x1xf32>
    %200 = vector.broadcast %199 : vector<16x1xf32> to vector<16x32xf32>
    %201 = arith.mulf %196, %200 : vector<16x32xf32>
    %202 = vector.broadcast %182 : vector<1x32xf32> to vector<16x32xf32>
    %203 = arith.mulf %201, %202 : vector<16x32xf32>
    %204 = vector.broadcast %183 : vector<1x32xf32> to vector<16x32xf32>
    %205 = arith.addf %203, %204 : vector<16x32xf32>
    %c1_72 = arith.constant 1 : index
    %c0_73 = arith.constant 0 : index
    %c0_74 = arith.constant 0 : index
    %206 = vector.load %arg13[%c1_72, %c0_73, %c0_74] : memref<3x6x32xf32, #tpu.memory_space<vmem>>, vector<1x6x32xf32>
    %207 = vector.shape_cast %206 : vector<1x6x32xf32> to vector<6x32xf32>
    %208 = arith.truncf %205 : vector<16x32xf32> to vector<16x32xbf16>
    %c1_75 = arith.constant 1 : index
    %c0_76 = arith.constant 0 : index
    %c0_77 = arith.constant 0 : index
    %209 = vector.load %arg7[%c1_75, %c0_76, %c0_77] : memref<3x32x96xbf16, #tpu.memory_space<vmem>>, vector<1x32x96xbf16>
    %210 = vector.shape_cast %209 : vector<1x32x96xbf16> to vector<32x96xbf16>
    %cst_78 = arith.constant dense<0.000000e+00> : vector<16x96xf32>
    %211 = tpu.matmul %208, %210, %cst_78 {dimension_numbers = #tpu.dot_dimension_numbers<[1], [0], [0], [1], [0, 0, 1, 1], [], []>} : vector<16x32xbf16>, vector<32x96xbf16>, vector<16x96xf32> -> vector<16x96xf32>
    %c1_79 = arith.constant 1 : index
    %c0_80 = arith.constant 0 : index
    %c0_81 = arith.constant 0 : index
    %212 = vector.load %arg8[%c1_79, %c0_80, %c0_81] : memref<3x1x96xf32, #tpu.memory_space<vmem>>, vector<1x1x96xf32>
    %213 = vector.shape_cast %212 : vector<1x1x96xf32> to vector<1x96xf32>
    %214 = vector.broadcast %213 : vector<1x96xf32> to vector<16x96xf32>
    %215 = arith.addf %211, %214 : vector<16x96xf32>
    %216 = vector.extract_strided_slice %215 {offsets = [0, 0], sizes = [16, 8], strides = [1, 1]} : vector<16x96xf32> to vector<16x8xf32>
    %217 = vector.shape_cast %216 : vector<16x8xf32> to vector<2x8x8xf32>
    %218 = vector.extract_strided_slice %215 {offsets = [0, 8], sizes = [16, 8], strides = [1, 1]} : vector<16x96xf32> to vector<16x8xf32>
    %219 = vector.shape_cast %218 : vector<16x8xf32> to vector<2x8x8xf32>
    %220 = vector.extract_strided_slice %215 {offsets = [0, 16], sizes = [16, 8], strides = [1, 1]} : vector<16x96xf32> to vector<16x8xf32>
    %221 = vector.shape_cast %220 : vector<16x8xf32> to vector<2x8x8xf32>
    %222 = vector.extract_strided_slice %215 {offsets = [0, 24], sizes = [16, 8], strides = [1, 1]} : vector<16x96xf32> to vector<16x8xf32>
    %223 = vector.shape_cast %222 : vector<16x8xf32> to vector<2x8x8xf32>
    %224 = vector.shape_cast %217 : vector<2x8x8xf32> to vector<2x1x8x8xf32>
    %225 = vector.shape_cast %219 : vector<2x8x8xf32> to vector<2x1x8x8xf32>
    %226 = vector.shape_cast %221 : vector<2x8x8xf32> to vector<2x1x8x8xf32>
    %227 = vector.shape_cast %223 : vector<2x8x8xf32> to vector<2x1x8x8xf32>
    %228 = tpu.concatenate %224, %225, %226, %227 in 1 : vector<2x1x8x8xf32>, vector<2x1x8x8xf32>, vector<2x1x8x8xf32>, vector<2x1x8x8xf32> -> vector<2x4x8x8xf32>
    %229 = vector.shape_cast %228 : vector<2x4x8x8xf32> to vector<8x8x8xf32>
    %230 = vector.extract_strided_slice %215 {offsets = [0, 32], sizes = [16, 8], strides = [1, 1]} : vector<16x96xf32> to vector<16x8xf32>
    %231 = vector.shape_cast %230 : vector<16x8xf32> to vector<2x8x8xf32>
    %232 = vector.extract_strided_slice %215 {offsets = [0, 40], sizes = [16, 8], strides = [1, 1]} : vector<16x96xf32> to vector<16x8xf32>
    %233 = vector.shape_cast %232 : vector<16x8xf32> to vector<2x8x8xf32>
    %234 = vector.extract_strided_slice %215 {offsets = [0, 48], sizes = [16, 8], strides = [1, 1]} : vector<16x96xf32> to vector<16x8xf32>
    %235 = vector.shape_cast %234 : vector<16x8xf32> to vector<2x8x8xf32>
    %236 = vector.extract_strided_slice %215 {offsets = [0, 56], sizes = [16, 8], strides = [1, 1]} : vector<16x96xf32> to vector<16x8xf32>
    %237 = vector.shape_cast %236 : vector<16x8xf32> to vector<2x8x8xf32>
    %238 = vector.shape_cast %231 : vector<2x8x8xf32> to vector<2x1x8x8xf32>
    %239 = vector.shape_cast %233 : vector<2x8x8xf32> to vector<2x1x8x8xf32>
    %240 = vector.shape_cast %235 : vector<2x8x8xf32> to vector<2x1x8x8xf32>
    %241 = vector.shape_cast %237 : vector<2x8x8xf32> to vector<2x1x8x8xf32>
    %242 = tpu.concatenate %238, %239, %240, %241 in 1 : vector<2x1x8x8xf32>, vector<2x1x8x8xf32>, vector<2x1x8x8xf32>, vector<2x1x8x8xf32> -> vector<2x4x8x8xf32>
    %243 = vector.shape_cast %242 : vector<2x4x8x8xf32> to vector<8x8x8xf32>
    %244 = vector.extract_strided_slice %215 {offsets = [0, 64], sizes = [16, 8], strides = [1, 1]} : vector<16x96xf32> to vector<16x8xf32>
    %245 = vector.shape_cast %244 : vector<16x8xf32> to vector<2x8x8xf32>
    %246 = vector.extract_strided_slice %215 {offsets = [0, 72], sizes = [16, 8], strides = [1, 1]} : vector<16x96xf32> to vector<16x8xf32>
    %247 = vector.shape_cast %246 : vector<16x8xf32> to vector<2x8x8xf32>
    %248 = vector.extract_strided_slice %215 {offsets = [0, 80], sizes = [16, 8], strides = [1, 1]} : vector<16x96xf32> to vector<16x8xf32>
    %249 = vector.shape_cast %248 : vector<16x8xf32> to vector<2x8x8xf32>
    %250 = vector.extract_strided_slice %215 {offsets = [0, 88], sizes = [16, 8], strides = [1, 1]} : vector<16x96xf32> to vector<16x8xf32>
    %251 = vector.shape_cast %250 : vector<16x8xf32> to vector<2x8x8xf32>
    %252 = vector.shape_cast %245 : vector<2x8x8xf32> to vector<2x1x8x8xf32>
    %253 = vector.shape_cast %247 : vector<2x8x8xf32> to vector<2x1x8x8xf32>
    %254 = vector.shape_cast %249 : vector<2x8x8xf32> to vector<2x1x8x8xf32>
    %255 = vector.shape_cast %251 : vector<2x8x8xf32> to vector<2x1x8x8xf32>
    %256 = tpu.concatenate %252, %253, %254, %255 in 1 : vector<2x1x8x8xf32>, vector<2x1x8x8xf32>, vector<2x1x8x8xf32>, vector<2x1x8x8xf32> -> vector<2x4x8x8xf32>
    %257 = vector.shape_cast %256 : vector<2x4x8x8xf32> to vector<8x8x8xf32>
    %258 = arith.truncf %257 : vector<8x8x8xf32> to vector<8x8x8xbf16>
    %259 = arith.truncf %229 : vector<8x8x8xf32> to vector<8x8x8xbf16>
    %260 = arith.truncf %243 : vector<8x8x8xf32> to vector<8x8x8xbf16>
    "tpu.trace_start"() <{level = 10 : i32, message = "bld,bmd->blm"}> : () -> ()
    %cst_82 = arith.constant dense<0.000000e+00> : vector<8x8x8xf32>
    %261 = tpu.matmul %259, %260, %cst_82 {dimension_numbers = #tpu.dot_dimension_numbers<[2], [2], [1], [1], [0, 0, 0, 1, 1, 1], [0], [0]>} : vector<8x8x8xbf16>, vector<8x8x8xbf16>, vector<8x8x8xf32> -> vector<8x8x8xf32>
    "tpu.trace_stop"() : () -> ()
    %262 = arith.addf %261, %51 : vector<8x8x8xf32>
    %cst_83 = arith.constant dense<0xFF800000> : vector<8x8xf32>
    %263 = vector.multi_reduction <maximumf>, %262, %cst_83 [2] : vector<8x8x8xf32> to vector<8x8xf32>
    %264 = vector.shape_cast %263 : vector<8x8xf32> to vector<8x8x1xf32>
    %265 = vector.broadcast %264 : vector<8x8x1xf32> to vector<8x8x8xf32>
    %266 = arith.subf %262, %265 : vector<8x8x8xf32>
    %267 = math.exp %266 : vector<8x8x8xf32>
    %cst_84 = arith.constant dense<0.000000e+00> : vector<8x8xf32>
    %268 = vector.multi_reduction <add>, %267, %cst_84 [2] : vector<8x8x8xf32> to vector<8x8xf32>
    %269 = vector.shape_cast %268 : vector<8x8xf32> to vector<8x8x1xf32>
    %270 = tpu.reciprocal %269 {approx = true} : vector<8x8x1xf32> -> vector<8x8x1xf32>
    %271 = vector.broadcast %270 : vector<8x8x1xf32> to vector<8x8x8xf32>
    %272 = arith.mulf %267, %271 : vector<8x8x8xf32>
    %273 = arith.truncf %272 : vector<8x8x8xf32> to vector<8x8x8xbf16>
    "tpu.trace_start"() <{level = 10 : i32, message = "blm,bmd->bld"}> : () -> ()
    %cst_85 = arith.constant dense<0.000000e+00> : vector<8x8x8xf32>
    %274 = tpu.matmul %273, %258, %cst_85 {dimension_numbers = #tpu.dot_dimension_numbers<[2], [1], [1], [2], [0, 0, 0, 1, 1, 2], [0], [0]>} : vector<8x8x8xbf16>, vector<8x8x8xbf16>, vector<8x8x8xf32> -> vector<8x8x8xf32>
    "tpu.trace_stop"() : () -> ()
    %275 = vector.shape_cast %274 : vector<8x8x8xf32> to vector<2x4x8x8xf32>
    %276 = vector.extract_strided_slice %275 {offsets = [0, 0, 0, 0], sizes = [2, 1, 8, 8], strides = [1, 1, 1, 1]} : vector<2x4x8x8xf32> to vector<2x1x8x8xf32>
    %277 = vector.shape_cast %276 : vector<2x1x8x8xf32> to vector<2x8x8xf32>
    %278 = vector.extract_strided_slice %275 {offsets = [0, 1, 0, 0], sizes = [2, 1, 8, 8], strides = [1, 1, 1, 1]} : vector<2x4x8x8xf32> to vector<2x1x8x8xf32>
    %279 = vector.shape_cast %278 : vector<2x1x8x8xf32> to vector<2x8x8xf32>
    %280 = vector.extract_strided_slice %275 {offsets = [0, 2, 0, 0], sizes = [2, 1, 8, 8], strides = [1, 1, 1, 1]} : vector<2x4x8x8xf32> to vector<2x1x8x8xf32>
    %281 = vector.shape_cast %280 : vector<2x1x8x8xf32> to vector<2x8x8xf32>
    %282 = vector.extract_strided_slice %275 {offsets = [0, 3, 0, 0], sizes = [2, 1, 8, 8], strides = [1, 1, 1, 1]} : vector<2x4x8x8xf32> to vector<2x1x8x8xf32>
    %283 = vector.shape_cast %282 : vector<2x1x8x8xf32> to vector<2x8x8xf32>
    %284 = tpu.concatenate %277, %279, %281, %283 in 2 : vector<2x8x8xf32>, vector<2x8x8xf32>, vector<2x8x8xf32>, vector<2x8x8xf32> -> vector<2x8x32xf32>
    %285 = vector.shape_cast %284 : vector<2x8x32xf32> to vector<16x32xf32>
    %286 = arith.truncf %285 : vector<16x32xf32> to vector<16x32xbf16>
    %c1_86 = arith.constant 1 : index
    %c0_87 = arith.constant 0 : index
    %c0_88 = arith.constant 0 : index
    %287 = vector.load %arg9[%c1_86, %c0_87, %c0_88] : memref<3x32x32xbf16, #tpu.memory_space<vmem>>, vector<1x32x32xbf16>
    %288 = vector.shape_cast %287 : vector<1x32x32xbf16> to vector<32x32xbf16>
    %cst_89 = arith.constant dense<0.000000e+00> : vector<16x32xf32>
    %289 = tpu.matmul %286, %288, %cst_89 {dimension_numbers = #tpu.dot_dimension_numbers<[1], [0], [0], [1], [0, 0, 1, 1], [], []>} : vector<16x32xbf16>, vector<32x32xbf16>, vector<16x32xf32> -> vector<16x32xf32>
    %290 = vector.extract_strided_slice %207 {offsets = [0, 0], sizes = [1, 32], strides = [1, 1]} : vector<6x32xf32> to vector<1x32xf32>
    %291 = vector.broadcast %290 : vector<1x32xf32> to vector<16x32xf32>
    %292 = arith.addf %289, %291 : vector<16x32xf32>
    %293 = arith.addf %205, %292 : vector<16x32xf32>
    %294 = vector.extract_strided_slice %207 {offsets = [2, 0], sizes = [1, 32], strides = [1, 1]} : vector<6x32xf32> to vector<1x32xf32>
    %295 = vector.extract_strided_slice %207 {offsets = [3, 0], sizes = [1, 32], strides = [1, 1]} : vector<6x32xf32> to vector<1x32xf32>
    %cst_90 = arith.constant dense<0.000000e+00> : vector<16xf32>
    %296 = vector.multi_reduction <add>, %293, %cst_90 [1] : vector<16x32xf32> to vector<16xf32>
    %297 = vector.shape_cast %296 : vector<16xf32> to vector<16x1xf32>
    %cst_91 = arith.constant 3.200000e+01 : f32
    %298 = vector.broadcast %cst_91 : f32 to vector<16x1xf32>
    %299 = arith.divf %297, %298 : vector<16x1xf32>
    %300 = vector.broadcast %299 : vector<16x1xf32> to vector<16x32xf32>
    %301 = arith.subf %293, %300 : vector<16x32xf32>
    %302 = arith.mulf %301, %301 : vector<16x32xf32>
    %cst_92 = arith.constant dense<0.000000e+00> : vector<16xf32>
    %303 = vector.multi_reduction <add>, %302, %cst_92 [1] : vector<16x32xf32> to vector<16xf32>
    %304 = vector.shape_cast %303 : vector<16xf32> to vector<16x1xf32>
    %cst_93 = arith.constant 3.200000e+01 : f32
    %305 = vector.broadcast %cst_93 : f32 to vector<16x1xf32>
    %306 = arith.divf %304, %305 : vector<16x1xf32>
    %307 = vector.broadcast %299 : vector<16x1xf32> to vector<16x32xf32>
    %308 = arith.subf %293, %307 : vector<16x32xf32>
    %cst_94 = arith.constant 9.99999974E-6 : f32
    %309 = vector.broadcast %cst_94 : f32 to vector<16x1xf32>
    %310 = arith.addf %306, %309 : vector<16x1xf32>
    %311 = math.rsqrt %310 : vector<16x1xf32>
    %312 = vector.broadcast %311 : vector<16x1xf32> to vector<16x32xf32>
    %313 = arith.mulf %308, %312 : vector<16x32xf32>
    %314 = vector.broadcast %294 : vector<1x32xf32> to vector<16x32xf32>
    %315 = arith.mulf %313, %314 : vector<16x32xf32>
    %316 = vector.broadcast %295 : vector<1x32xf32> to vector<16x32xf32>
    %317 = arith.addf %315, %316 : vector<16x32xf32>
    %318 = arith.truncf %317 : vector<16x32xf32> to vector<16x32xbf16>
    %c1_95 = arith.constant 1 : index
    %c0_96 = arith.constant 0 : index
    %c0_97 = arith.constant 0 : index
    %319 = vector.load %arg10[%c1_95, %c0_96, %c0_97] : memref<3x32x128xbf16, #tpu.memory_space<vmem>>, vector<1x32x128xbf16>
    %320 = vector.shape_cast %319 : vector<1x32x128xbf16> to vector<32x128xbf16>
    %cst_98 = arith.constant dense<0.000000e+00> : vector<16x128xf32>
    %321 = tpu.matmul %318, %320, %cst_98 {dimension_numbers = #tpu.dot_dimension_numbers<[1], [0], [0], [1], [0, 0, 1, 1], [], []>} : vector<16x32xbf16>, vector<32x128xbf16>, vector<16x128xf32> -> vector<16x128xf32>
    %c1_99 = arith.constant 1 : index
    %c0_100 = arith.constant 0 : index
    %c0_101 = arith.constant 0 : index
    %322 = vector.load %arg11[%c1_99, %c0_100, %c0_101] : memref<3x1x128xf32, #tpu.memory_space<vmem>>, vector<1x1x128xf32>
    %323 = vector.shape_cast %322 : vector<1x1x128xf32> to vector<1x128xf32>
    %324 = vector.broadcast %323 : vector<1x128xf32> to vector<16x128xf32>
    %325 = arith.addf %321, %324 : vector<16x128xf32>
    %cst_102 = arith.constant 0.000000e+00 : f32
    %326 = vector.broadcast %cst_102 : f32 to vector<16x128xf32>
    %327 = arith.maximumf %325, %326 : vector<16x128xf32>
    %328 = arith.truncf %327 : vector<16x128xf32> to vector<16x128xbf16>
    %c1_103 = arith.constant 1 : index
    %c0_104 = arith.constant 0 : index
    %c0_105 = arith.constant 0 : index
    %329 = vector.load %arg12[%c1_103, %c0_104, %c0_105] : memref<3x128x32xbf16, #tpu.memory_space<vmem>>, vector<1x128x32xbf16>
    %330 = vector.shape_cast %329 : vector<1x128x32xbf16> to vector<128x32xbf16>
    %cst_106 = arith.constant dense<0.000000e+00> : vector<16x32xf32>
    %331 = tpu.matmul %328, %330, %cst_106 {dimension_numbers = #tpu.dot_dimension_numbers<[1], [0], [0], [1], [0, 0, 1, 1], [], []>} : vector<16x128xbf16>, vector<128x32xbf16>, vector<16x32xf32> -> vector<16x32xf32>
    %332 = vector.extract_strided_slice %207 {offsets = [1, 0], sizes = [1, 32], strides = [1, 1]} : vector<6x32xf32> to vector<1x32xf32>
    %333 = vector.broadcast %332 : vector<1x32xf32> to vector<16x32xf32>
    %334 = arith.addf %331, %333 : vector<16x32xf32>
    %335 = arith.addf %317, %334 : vector<16x32xf32>
    %336 = vector.extract_strided_slice %207 {offsets = [4, 0], sizes = [1, 32], strides = [1, 1]} : vector<6x32xf32> to vector<1x32xf32>
    %337 = vector.extract_strided_slice %207 {offsets = [5, 0], sizes = [1, 32], strides = [1, 1]} : vector<6x32xf32> to vector<1x32xf32>
    %cst_107 = arith.constant dense<0.000000e+00> : vector<16xf32>
    %338 = vector.multi_reduction <add>, %335, %cst_107 [1] : vector<16x32xf32> to vector<16xf32>
    %339 = vector.shape_cast %338 : vector<16xf32> to vector<16x1xf32>
    %cst_108 = arith.constant 3.200000e+01 : f32
    %340 = vector.broadcast %cst_108 : f32 to vector<16x1xf32>
    %341 = arith.divf %339, %340 : vector<16x1xf32>
    %342 = vector.broadcast %341 : vector<16x1xf32> to vector<16x32xf32>
    %343 = arith.subf %335, %342 : vector<16x32xf32>
    %344 = arith.mulf %343, %343 : vector<16x32xf32>
    %cst_109 = arith.constant dense<0.000000e+00> : vector<16xf32>
    %345 = vector.multi_reduction <add>, %344, %cst_109 [1] : vector<16x32xf32> to vector<16xf32>
    %346 = vector.shape_cast %345 : vector<16xf32> to vector<16x1xf32>
    %cst_110 = arith.constant 3.200000e+01 : f32
    %347 = vector.broadcast %cst_110 : f32 to vector<16x1xf32>
    %348 = arith.divf %346, %347 : vector<16x1xf32>
    %349 = vector.broadcast %341 : vector<16x1xf32> to vector<16x32xf32>
    %350 = arith.subf %335, %349 : vector<16x32xf32>
    %cst_111 = arith.constant 9.99999974E-6 : f32
    %351 = vector.broadcast %cst_111 : f32 to vector<16x1xf32>
    %352 = arith.addf %348, %351 : vector<16x1xf32>
    %353 = math.rsqrt %352 : vector<16x1xf32>
    %354 = vector.broadcast %353 : vector<16x1xf32> to vector<16x32xf32>
    %355 = arith.mulf %350, %354 : vector<16x32xf32>
    %356 = vector.broadcast %336 : vector<1x32xf32> to vector<16x32xf32>
    %357 = arith.mulf %355, %356 : vector<16x32xf32>
    %358 = vector.broadcast %337 : vector<1x32xf32> to vector<16x32xf32>
    %359 = arith.addf %357, %358 : vector<16x32xf32>
    %c2_112 = arith.constant 2 : index
    %c0_113 = arith.constant 0 : index
    %c0_114 = arith.constant 0 : index
    %360 = vector.load %arg13[%c2_112, %c0_113, %c0_114] : memref<3x6x32xf32, #tpu.memory_space<vmem>>, vector<1x6x32xf32>
    %361 = vector.shape_cast %360 : vector<1x6x32xf32> to vector<6x32xf32>
    %362 = arith.truncf %359 : vector<16x32xf32> to vector<16x32xbf16>
    %c2_115 = arith.constant 2 : index
    %c0_116 = arith.constant 0 : index
    %c0_117 = arith.constant 0 : index
    %363 = vector.load %arg7[%c2_115, %c0_116, %c0_117] : memref<3x32x96xbf16, #tpu.memory_space<vmem>>, vector<1x32x96xbf16>
    %364 = vector.shape_cast %363 : vector<1x32x96xbf16> to vector<32x96xbf16>
    %cst_118 = arith.constant dense<0.000000e+00> : vector<16x96xf32>
    %365 = tpu.matmul %362, %364, %cst_118 {dimension_numbers = #tpu.dot_dimension_numbers<[1], [0], [0], [1], [0, 0, 1, 1], [], []>} : vector<16x32xbf16>, vector<32x96xbf16>, vector<16x96xf32> -> vector<16x96xf32>
    %c2_119 = arith.constant 2 : index
    %c0_120 = arith.constant 0 : index
    %c0_121 = arith.constant 0 : index
    %366 = vector.load %arg8[%c2_119, %c0_120, %c0_121] : memref<3x1x96xf32, #tpu.memory_space<vmem>>, vector<1x1x96xf32>
    %367 = vector.shape_cast %366 : vector<1x1x96xf32> to vector<1x96xf32>
    %368 = vector.broadcast %367 : vector<1x96xf32> to vector<16x96xf32>
    %369 = arith.addf %365, %368 : vector<16x96xf32>
    %370 = vector.extract_strided_slice %369 {offsets = [0, 0], sizes = [16, 8], strides = [1, 1]} : vector<16x96xf32> to vector<16x8xf32>
    %371 = vector.shape_cast %370 : vector<16x8xf32> to vector<2x8x8xf32>
    %372 = vector.extract_strided_slice %369 {offsets = [0, 8], sizes = [16, 8], strides = [1, 1]} : vector<16x96xf32> to vector<16x8xf32>
    %373 = vector.shape_cast %372 : vector<16x8xf32> to vector<2x8x8xf32>
    %374 = vector.extract_strided_slice %369 {offsets = [0, 16], sizes = [16, 8], strides = [1, 1]} : vector<16x96xf32> to vector<16x8xf32>
    %375 = vector.shape_cast %374 : vector<16x8xf32> to vector<2x8x8xf32>
    %376 = vector.extract_strided_slice %369 {offsets = [0, 24], sizes = [16, 8], strides = [1, 1]} : vector<16x96xf32> to vector<16x8xf32>
    %377 = vector.shape_cast %376 : vector<16x8xf32> to vector<2x8x8xf32>
    %378 = vector.shape_cast %371 : vector<2x8x8xf32> to vector<2x1x8x8xf32>
    %379 = vector.shape_cast %373 : vector<2x8x8xf32> to vector<2x1x8x8xf32>
    %380 = vector.shape_cast %375 : vector<2x8x8xf32> to vector<2x1x8x8xf32>
    %381 = vector.shape_cast %377 : vector<2x8x8xf32> to vector<2x1x8x8xf32>
    %382 = tpu.concatenate %378, %379, %380, %381 in 1 : vector<2x1x8x8xf32>, vector<2x1x8x8xf32>, vector<2x1x8x8xf32>, vector<2x1x8x8xf32> -> vector<2x4x8x8xf32>
    %383 = vector.shape_cast %382 : vector<2x4x8x8xf32> to vector<8x8x8xf32>
    %384 = vector.extract_strided_slice %369 {offsets = [0, 32], sizes = [16, 8], strides = [1, 1]} : vector<16x96xf32> to vector<16x8xf32>
    %385 = vector.shape_cast %384 : vector<16x8xf32> to vector<2x8x8xf32>
    %386 = vector.extract_strided_slice %369 {offsets = [0, 40], sizes = [16, 8], strides = [1, 1]} : vector<16x96xf32> to vector<16x8xf32>
    %387 = vector.shape_cast %386 : vector<16x8xf32> to vector<2x8x8xf32>
    %388 = vector.extract_strided_slice %369 {offsets = [0, 48], sizes = [16, 8], strides = [1, 1]} : vector<16x96xf32> to vector<16x8xf32>
    %389 = vector.shape_cast %388 : vector<16x8xf32> to vector<2x8x8xf32>
    %390 = vector.extract_strided_slice %369 {offsets = [0, 56], sizes = [16, 8], strides = [1, 1]} : vector<16x96xf32> to vector<16x8xf32>
    %391 = vector.shape_cast %390 : vector<16x8xf32> to vector<2x8x8xf32>
    %392 = vector.shape_cast %385 : vector<2x8x8xf32> to vector<2x1x8x8xf32>
    %393 = vector.shape_cast %387 : vector<2x8x8xf32> to vector<2x1x8x8xf32>
    %394 = vector.shape_cast %389 : vector<2x8x8xf32> to vector<2x1x8x8xf32>
    %395 = vector.shape_cast %391 : vector<2x8x8xf32> to vector<2x1x8x8xf32>
    %396 = tpu.concatenate %392, %393, %394, %395 in 1 : vector<2x1x8x8xf32>, vector<2x1x8x8xf32>, vector<2x1x8x8xf32>, vector<2x1x8x8xf32> -> vector<2x4x8x8xf32>
    %397 = vector.shape_cast %396 : vector<2x4x8x8xf32> to vector<8x8x8xf32>
    %398 = vector.extract_strided_slice %369 {offsets = [0, 64], sizes = [16, 8], strides = [1, 1]} : vector<16x96xf32> to vector<16x8xf32>
    %399 = vector.shape_cast %398 : vector<16x8xf32> to vector<2x8x8xf32>
    %400 = vector.extract_strided_slice %369 {offsets = [0, 72], sizes = [16, 8], strides = [1, 1]} : vector<16x96xf32> to vector<16x8xf32>
    %401 = vector.shape_cast %400 : vector<16x8xf32> to vector<2x8x8xf32>
    %402 = vector.extract_strided_slice %369 {offsets = [0, 80], sizes = [16, 8], strides = [1, 1]} : vector<16x96xf32> to vector<16x8xf32>
    %403 = vector.shape_cast %402 : vector<16x8xf32> to vector<2x8x8xf32>
    %404 = vector.extract_strided_slice %369 {offsets = [0, 88], sizes = [16, 8], strides = [1, 1]} : vector<16x96xf32> to vector<16x8xf32>
    %405 = vector.shape_cast %404 : vector<16x8xf32> to vector<2x8x8xf32>
    %406 = vector.shape_cast %399 : vector<2x8x8xf32> to vector<2x1x8x8xf32>
    %407 = vector.shape_cast %401 : vector<2x8x8xf32> to vector<2x1x8x8xf32>
    %408 = vector.shape_cast %403 : vector<2x8x8xf32> to vector<2x1x8x8xf32>
    %409 = vector.shape_cast %405 : vector<2x8x8xf32> to vector<2x1x8x8xf32>
    %410 = tpu.concatenate %406, %407, %408, %409 in 1 : vector<2x1x8x8xf32>, vector<2x1x8x8xf32>, vector<2x1x8x8xf32>, vector<2x1x8x8xf32> -> vector<2x4x8x8xf32>
    %411 = vector.shape_cast %410 : vector<2x4x8x8xf32> to vector<8x8x8xf32>
    %412 = arith.truncf %411 : vector<8x8x8xf32> to vector<8x8x8xbf16>
    %413 = arith.truncf %383 : vector<8x8x8xf32> to vector<8x8x8xbf16>
    %414 = arith.truncf %397 : vector<8x8x8xf32> to vector<8x8x8xbf16>
    "tpu.trace_start"() <{level = 10 : i32, message = "bld,bmd->blm"}> : () -> ()
    %cst_122 = arith.constant dense<0.000000e+00> : vector<8x8x8xf32>
    %415 = tpu.matmul %413, %414, %cst_122 {dimension_numbers = #tpu.dot_dimension_numbers<[2], [2], [1], [1], [0, 0, 0, 1, 1, 1], [0], [0]>} : vector<8x8x8xbf16>, vector<8x8x8xbf16>, vector<8x8x8xf32> -> vector<8x8x8xf32>
    "tpu.trace_stop"() : () -> ()
    %416 = arith.addf %415, %51 : vector<8x8x8xf32>
    %cst_123 = arith.constant dense<0xFF800000> : vector<8x8xf32>
    %417 = vector.multi_reduction <maximumf>, %416, %cst_123 [2] : vector<8x8x8xf32> to vector<8x8xf32>
    %418 = vector.shape_cast %417 : vector<8x8xf32> to vector<8x8x1xf32>
    %419 = vector.broadcast %418 : vector<8x8x1xf32> to vector<8x8x8xf32>
    %420 = arith.subf %416, %419 : vector<8x8x8xf32>
    %421 = math.exp %420 : vector<8x8x8xf32>
    %cst_124 = arith.constant dense<0.000000e+00> : vector<8x8xf32>
    %422 = vector.multi_reduction <add>, %421, %cst_124 [2] : vector<8x8x8xf32> to vector<8x8xf32>
    %423 = vector.shape_cast %422 : vector<8x8xf32> to vector<8x8x1xf32>
    %424 = tpu.reciprocal %423 {approx = true} : vector<8x8x1xf32> -> vector<8x8x1xf32>
    %425 = vector.broadcast %424 : vector<8x8x1xf32> to vector<8x8x8xf32>
    %426 = arith.mulf %421, %425 : vector<8x8x8xf32>
    %427 = arith.truncf %426 : vector<8x8x8xf32> to vector<8x8x8xbf16>
    "tpu.trace_start"() <{level = 10 : i32, message = "blm,bmd->bld"}> : () -> ()
    %cst_125 = arith.constant dense<0.000000e+00> : vector<8x8x8xf32>
    %428 = tpu.matmul %427, %412, %cst_125 {dimension_numbers = #tpu.dot_dimension_numbers<[2], [1], [1], [2], [0, 0, 0, 1, 1, 2], [0], [0]>} : vector<8x8x8xbf16>, vector<8x8x8xbf16>, vector<8x8x8xf32> -> vector<8x8x8xf32>
    "tpu.trace_stop"() : () -> ()
    %429 = vector.shape_cast %428 : vector<8x8x8xf32> to vector<2x4x8x8xf32>
    %430 = vector.extract_strided_slice %429 {offsets = [0, 0, 0, 0], sizes = [2, 1, 8, 8], strides = [1, 1, 1, 1]} : vector<2x4x8x8xf32> to vector<2x1x8x8xf32>
    %431 = vector.shape_cast %430 : vector<2x1x8x8xf32> to vector<2x8x8xf32>
    %432 = vector.extract_strided_slice %429 {offsets = [0, 1, 0, 0], sizes = [2, 1, 8, 8], strides = [1, 1, 1, 1]} : vector<2x4x8x8xf32> to vector<2x1x8x8xf32>
    %433 = vector.shape_cast %432 : vector<2x1x8x8xf32> to vector<2x8x8xf32>
    %434 = vector.extract_strided_slice %429 {offsets = [0, 2, 0, 0], sizes = [2, 1, 8, 8], strides = [1, 1, 1, 1]} : vector<2x4x8x8xf32> to vector<2x1x8x8xf32>
    %435 = vector.shape_cast %434 : vector<2x1x8x8xf32> to vector<2x8x8xf32>
    %436 = vector.extract_strided_slice %429 {offsets = [0, 3, 0, 0], sizes = [2, 1, 8, 8], strides = [1, 1, 1, 1]} : vector<2x4x8x8xf32> to vector<2x1x8x8xf32>
    %437 = vector.shape_cast %436 : vector<2x1x8x8xf32> to vector<2x8x8xf32>
    %438 = tpu.concatenate %431, %433, %435, %437 in 2 : vector<2x8x8xf32>, vector<2x8x8xf32>, vector<2x8x8xf32>, vector<2x8x8xf32> -> vector<2x8x32xf32>
    %439 = vector.shape_cast %438 : vector<2x8x32xf32> to vector<16x32xf32>
    %440 = arith.truncf %439 : vector<16x32xf32> to vector<16x32xbf16>
    %c2_126 = arith.constant 2 : index
    %c0_127 = arith.constant 0 : index
    %c0_128 = arith.constant 0 : index
    %441 = vector.load %arg9[%c2_126, %c0_127, %c0_128] : memref<3x32x32xbf16, #tpu.memory_space<vmem>>, vector<1x32x32xbf16>
    %442 = vector.shape_cast %441 : vector<1x32x32xbf16> to vector<32x32xbf16>
    %cst_129 = arith.constant dense<0.000000e+00> : vector<16x32xf32>
    %443 = tpu.matmul %440, %442, %cst_129 {dimension_numbers = #tpu.dot_dimension_numbers<[1], [0], [0], [1], [0, 0, 1, 1], [], []>} : vector<16x32xbf16>, vector<32x32xbf16>, vector<16x32xf32> -> vector<16x32xf32>
    %444 = vector.extract_strided_slice %361 {offsets = [0, 0], sizes = [1, 32], strides = [1, 1]} : vector<6x32xf32> to vector<1x32xf32>
    %445 = vector.broadcast %444 : vector<1x32xf32> to vector<16x32xf32>
    %446 = arith.addf %443, %445 : vector<16x32xf32>
    %447 = arith.addf %359, %446 : vector<16x32xf32>
    %448 = vector.extract_strided_slice %361 {offsets = [2, 0], sizes = [1, 32], strides = [1, 1]} : vector<6x32xf32> to vector<1x32xf32>
    %449 = vector.extract_strided_slice %361 {offsets = [3, 0], sizes = [1, 32], strides = [1, 1]} : vector<6x32xf32> to vector<1x32xf32>
    %cst_130 = arith.constant dense<0.000000e+00> : vector<16xf32>
    %450 = vector.multi_reduction <add>, %447, %cst_130 [1] : vector<16x32xf32> to vector<16xf32>
    %451 = vector.shape_cast %450 : vector<16xf32> to vector<16x1xf32>
    %cst_131 = arith.constant 3.200000e+01 : f32
    %452 = vector.broadcast %cst_131 : f32 to vector<16x1xf32>
    %453 = arith.divf %451, %452 : vector<16x1xf32>
    %454 = vector.broadcast %453 : vector<16x1xf32> to vector<16x32xf32>
    %455 = arith.subf %447, %454 : vector<16x32xf32>
    %456 = arith.mulf %455, %455 : vector<16x32xf32>
    %cst_132 = arith.constant dense<0.000000e+00> : vector<16xf32>
    %457 = vector.multi_reduction <add>, %456, %cst_132 [1] : vector<16x32xf32> to vector<16xf32>
    %458 = vector.shape_cast %457 : vector<16xf32> to vector<16x1xf32>
    %cst_133 = arith.constant 3.200000e+01 : f32
    %459 = vector.broadcast %cst_133 : f32 to vector<16x1xf32>
    %460 = arith.divf %458, %459 : vector<16x1xf32>
    %461 = vector.broadcast %453 : vector<16x1xf32> to vector<16x32xf32>
    %462 = arith.subf %447, %461 : vector<16x32xf32>
    %cst_134 = arith.constant 9.99999974E-6 : f32
    %463 = vector.broadcast %cst_134 : f32 to vector<16x1xf32>
    %464 = arith.addf %460, %463 : vector<16x1xf32>
    %465 = math.rsqrt %464 : vector<16x1xf32>
    %466 = vector.broadcast %465 : vector<16x1xf32> to vector<16x32xf32>
    %467 = arith.mulf %462, %466 : vector<16x32xf32>
    %468 = vector.broadcast %448 : vector<1x32xf32> to vector<16x32xf32>
    %469 = arith.mulf %467, %468 : vector<16x32xf32>
    %470 = vector.broadcast %449 : vector<1x32xf32> to vector<16x32xf32>
    %471 = arith.addf %469, %470 : vector<16x32xf32>
    %472 = arith.truncf %471 : vector<16x32xf32> to vector<16x32xbf16>
    %c2_135 = arith.constant 2 : index
    %c0_136 = arith.constant 0 : index
    %c0_137 = arith.constant 0 : index
    %473 = vector.load %arg10[%c2_135, %c0_136, %c0_137] : memref<3x32x128xbf16, #tpu.memory_space<vmem>>, vector<1x32x128xbf16>
    %474 = vector.shape_cast %473 : vector<1x32x128xbf16> to vector<32x128xbf16>
    %cst_138 = arith.constant dense<0.000000e+00> : vector<16x128xf32>
    %475 = tpu.matmul %472, %474, %cst_138 {dimension_numbers = #tpu.dot_dimension_numbers<[1], [0], [0], [1], [0, 0, 1, 1], [], []>} : vector<16x32xbf16>, vector<32x128xbf16>, vector<16x128xf32> -> vector<16x128xf32>
    %c2_139 = arith.constant 2 : index
    %c0_140 = arith.constant 0 : index
    %c0_141 = arith.constant 0 : index
    %476 = vector.load %arg11[%c2_139, %c0_140, %c0_141] : memref<3x1x128xf32, #tpu.memory_space<vmem>>, vector<1x1x128xf32>
    %477 = vector.shape_cast %476 : vector<1x1x128xf32> to vector<1x128xf32>
    %478 = vector.broadcast %477 : vector<1x128xf32> to vector<16x128xf32>
    %479 = arith.addf %475, %478 : vector<16x128xf32>
    %cst_142 = arith.constant 0.000000e+00 : f32
    %480 = vector.broadcast %cst_142 : f32 to vector<16x128xf32>
    %481 = arith.maximumf %479, %480 : vector<16x128xf32>
    %482 = arith.truncf %481 : vector<16x128xf32> to vector<16x128xbf16>
    %c2_143 = arith.constant 2 : index
    %c0_144 = arith.constant 0 : index
    %c0_145 = arith.constant 0 : index
    %483 = vector.load %arg12[%c2_143, %c0_144, %c0_145] : memref<3x128x32xbf16, #tpu.memory_space<vmem>>, vector<1x128x32xbf16>
    %484 = vector.shape_cast %483 : vector<1x128x32xbf16> to vector<128x32xbf16>
    %cst_146 = arith.constant dense<0.000000e+00> : vector<16x32xf32>
    %485 = tpu.matmul %482, %484, %cst_146 {dimension_numbers = #tpu.dot_dimension_numbers<[1], [0], [0], [1], [0, 0, 1, 1], [], []>} : vector<16x128xbf16>, vector<128x32xbf16>, vector<16x32xf32> -> vector<16x32xf32>
    %486 = vector.extract_strided_slice %361 {offsets = [1, 0], sizes = [1, 32], strides = [1, 1]} : vector<6x32xf32> to vector<1x32xf32>
    %487 = vector.broadcast %486 : vector<1x32xf32> to vector<16x32xf32>
    %488 = arith.addf %485, %487 : vector<16x32xf32>
    %489 = arith.addf %471, %488 : vector<16x32xf32>
    %490 = vector.extract_strided_slice %361 {offsets = [4, 0], sizes = [1, 32], strides = [1, 1]} : vector<6x32xf32> to vector<1x32xf32>
    %491 = vector.extract_strided_slice %361 {offsets = [5, 0], sizes = [1, 32], strides = [1, 1]} : vector<6x32xf32> to vector<1x32xf32>
    %cst_147 = arith.constant dense<0.000000e+00> : vector<16xf32>
    %492 = vector.multi_reduction <add>, %489, %cst_147 [1] : vector<16x32xf32> to vector<16xf32>
    %493 = vector.shape_cast %492 : vector<16xf32> to vector<16x1xf32>
    %cst_148 = arith.constant 3.200000e+01 : f32
    %494 = vector.broadcast %cst_148 : f32 to vector<16x1xf32>
    %495 = arith.divf %493, %494 : vector<16x1xf32>
    %496 = vector.broadcast %495 : vector<16x1xf32> to vector<16x32xf32>
    %497 = arith.subf %489, %496 : vector<16x32xf32>
    %498 = arith.mulf %497, %497 : vector<16x32xf32>
    %cst_149 = arith.constant dense<0.000000e+00> : vector<16xf32>
    %499 = vector.multi_reduction <add>, %498, %cst_149 [1] : vector<16x32xf32> to vector<16xf32>
    %500 = vector.shape_cast %499 : vector<16xf32> to vector<16x1xf32>
    %cst_150 = arith.constant 3.200000e+01 : f32
    %501 = vector.broadcast %cst_150 : f32 to vector<16x1xf32>
    %502 = arith.divf %500, %501 : vector<16x1xf32>
    %503 = vector.broadcast %495 : vector<16x1xf32> to vector<16x32xf32>
    %504 = arith.subf %489, %503 : vector<16x32xf32>
    %cst_151 = arith.constant 9.99999974E-6 : f32
    %505 = vector.broadcast %cst_151 : f32 to vector<16x1xf32>
    %506 = arith.addf %502, %505 : vector<16x1xf32>
    %507 = math.rsqrt %506 : vector<16x1xf32>
    %508 = vector.broadcast %507 : vector<16x1xf32> to vector<16x32xf32>
    %509 = arith.mulf %504, %508 : vector<16x32xf32>
    %510 = vector.broadcast %490 : vector<1x32xf32> to vector<16x32xf32>
    %511 = arith.mulf %509, %510 : vector<16x32xf32>
    %512 = vector.broadcast %491 : vector<1x32xf32> to vector<16x32xf32>
    %513 = arith.addf %511, %512 : vector<16x32xf32>
    %514 = arith.truncf %513 : vector<16x32xf32> to vector<16x32xbf16>
    %c0_152 = arith.constant 0 : index
    %c0_153 = arith.constant 0 : index
    %515 = vector.load %arg14[%c0_152, %c0_153] : memref<32x32xbf16, #tpu.memory_space<vmem>>, vector<32x32xbf16>
    %cst_154 = arith.constant dense<0.000000e+00> : vector<16x32xf32>
    %516 = tpu.matmul %514, %515, %cst_154 {dimension_numbers = #tpu.dot_dimension_numbers<[1], [0], [0], [1], [0, 0, 1, 1], [], []>} : vector<16x32xbf16>, vector<32x32xbf16>, vector<16x32xf32> -> vector<16x32xf32>
    %c0_155 = arith.constant 0 : index
    %c0_156 = arith.constant 0 : index
    %517 = vector.load %arg15[%c0_155, %c0_156] : memref<1x32xf32, #tpu.memory_space<vmem>>, vector<1x32xf32>
    %518 = vector.broadcast %517 : vector<1x32xf32> to vector<16x32xf32>
    %519 = arith.addf %516, %518 : vector<16x32xf32>
    %520 = vector.shape_cast %519 : vector<16x32xf32> to vector<2x8x32xf32>
    %c0_157 = arith.constant 0 : index
    %c0_158 = arith.constant 0 : index
    %c0_159 = arith.constant 0 : index
    %521 = vector.load %arg16[%c0_157, %c0_158, %c0_159] : memref<2x8x32xf32, #tpu.memory_space<vmem>>, vector<2x8x32xf32>
    tpu.vector_store %arg16[%c0_157, %c0_158, %c0_159], %520 {strides = array<i32>} : memref<2x8x32xf32, #tpu.memory_space<vmem>>, vector<2x8x32xf32>,
    return
  }
  func.func @transform_0(%arg0: i32, %arg1: memref<2x3xf32, #tpu.memory_space<smem>>) -> (i32, i32, i32) {
    %c0_i32 = arith.constant 0 : i32
    %c0_i32_0 = arith.constant 0 : i32
    %c0_i32_1 = arith.constant 0 : i32
    %c0_i32_2 = arith.constant 0 : i32
    return %c0_i32, %c0_i32_0, %c0_i32_1 : i32, i32, i32
  }
  func.func @transform_1(%arg0: i32, %arg1: memref<2x3xf32, #tpu.memory_space<smem>>) -> (i32, i32) {
    %c0_i32 = arith.constant 0 : i32
    %c0_i32_0 = arith.constant 0 : i32
    %c0_i32_1 = arith.constant 0 : i32
    return %c0_i32, %c0_i32_0 : i32, i32
  }
  func.func @transform_2(%arg0: i32, %arg1: memref<2x3xf32, #tpu.memory_space<smem>>) -> (i32, i32) {
    %c0_i32 = arith.constant 0 : i32
    %c0_i32_0 = arith.constant 0 : i32
    %c0_i32_1 = arith.constant 0 : i32
    return %c0_i32, %c0_i32_0 : i32, i32
  }
  func.func @transform_3(%arg0: i32, %arg1: memref<2x3xf32, #tpu.memory_space<smem>>) -> (i32, i32) {
    %c0_i32 = arith.constant 0 : i32
    %c0_i32_0 = arith.constant 0 : i32
    %c0_i32_1 = arith.constant 0 : i32
    return %c0_i32, %c0_i32_0 : i32, i32
  }
  func.func @transform_4(%arg0: i32, %arg1: memref<2x3xf32, #tpu.memory_space<smem>>) -> (i32, i32) {
    %c0_i32 = arith.constant 0 : i32
    %c0_i32_0 = arith.constant 0 : i32
    %c0_i32_1 = arith.constant 0 : i32
    return %c0_i32, %c0_i32_0 : i32, i32
  }
  func.func @transform_5(%arg0: i32, %arg1: memref<2x3xf32, #tpu.memory_space<smem>>) -> (i32, i32, i32) {
    %c0_i32 = arith.constant 0 : i32
    %c0_i32_0 = arith.constant 0 : i32
    %c0_i32_1 = arith.constant 0 : i32
    %c0_i32_2 = arith.constant 0 : i32
    return %c0_i32, %c0_i32_0, %c0_i32_1 : i32, i32, i32
  }
  func.func @transform_6(%arg0: i32, %arg1: memref<2x3xf32, #tpu.memory_space<smem>>) -> (i32, i32, i32) {
    %c0_i32 = arith.constant 0 : i32
    %c0_i32_0 = arith.constant 0 : i32
    %c0_i32_1 = arith.constant 0 : i32
    %c0_i32_2 = arith.constant 0 : i32
    return %c0_i32, %c0_i32_0, %c0_i32_1 : i32, i32, i32
  }
  func.func @transform_7(%arg0: i32, %arg1: memref<2x3xf32, #tpu.memory_space<smem>>) -> (i32, i32, i32) {
    %c0_i32 = arith.constant 0 : i32
    %c0_i32_0 = arith.constant 0 : i32
    %c0_i32_1 = arith.constant 0 : i32
    %c0_i32_2 = arith.constant 0 : i32
    return %c0_i32, %c0_i32_0, %c0_i32_1 : i32, i32, i32
  }
  func.func @transform_8(%arg0: i32, %arg1: memref<2x3xf32, #tpu.memory_space<smem>>) -> (i32, i32, i32) {
    %c0_i32 = arith.constant 0 : i32
    %c0_i32_0 = arith.constant 0 : i32
    %c0_i32_1 = arith.constant 0 : i32
    %c0_i32_2 = arith.constant 0 : i32
    return %c0_i32, %c0_i32_0, %c0_i32_1 : i32, i32, i32
  }
  func.func @transform_9(%arg0: i32, %arg1: memref<2x3xf32, #tpu.memory_space<smem>>) -> (i32, i32, i32) {
    %c0_i32 = arith.constant 0 : i32
    %c0_i32_0 = arith.constant 0 : i32
    %c0_i32_1 = arith.constant 0 : i32
    %c0_i32_2 = arith.constant 0 : i32
    return %c0_i32, %c0_i32_0, %c0_i32_1 : i32, i32, i32
  }
  func.func @transform_10(%arg0: i32, %arg1: memref<2x3xf32, #tpu.memory_space<smem>>) -> (i32, i32, i32) {
    %c0_i32 = arith.constant 0 : i32
    %c0_i32_0 = arith.constant 0 : i32
    %c0_i32_1 = arith.constant 0 : i32
    %c0_i32_2 = arith.constant 0 : i32
    return %c0_i32, %c0_i32_0, %c0_i32_1 : i32, i32, i32
  }
  func.func @transform_11(%arg0: i32, %arg1: memref<2x3xf32, #tpu.memory_space<smem>>) -> (i32, i32, i32) {
    %c0_i32 = arith.constant 0 : i32
    %c0_i32_0 = arith.constant 0 : i32
    %c0_i32_1 = arith.constant 0 : i32
    %c0_i32_2 = arith.constant 0 : i32
    return %c0_i32, %c0_i32_0, %c0_i32_1 : i32, i32, i32
  }
  func.func @transform_12(%arg0: i32, %arg1: memref<2x3xf32, #tpu.memory_space<smem>>) -> (i32, i32) {
    %c0_i32 = arith.constant 0 : i32
    %c0_i32_0 = arith.constant 0 : i32
    %c0_i32_1 = arith.constant 0 : i32
    return %c0_i32, %c0_i32_0 : i32, i32
  }
  func.func @transform_13(%arg0: i32, %arg1: memref<2x3xf32, #tpu.memory_space<smem>>) -> (i32, i32) {
    %c0_i32 = arith.constant 0 : i32
    %c0_i32_0 = arith.constant 0 : i32
    %c0_i32_1 = arith.constant 0 : i32
    return %c0_i32, %c0_i32_0 : i32, i32
  }
  func.func @transform_14(%arg0: i32, %arg1: memref<2x3xf32, #tpu.memory_space<smem>>) -> (i32, i32, i32) {
    %c0_i32 = arith.constant 0 : i32
    %c0_i32_0 = arith.constant 0 : i32
    %c0_i32_1 = arith.constant 0 : i32
    %c0_i32_2 = arith.constant 0 : i32
    return %c0_i32, %c0_i32_0, %c0_i32_1 : i32, i32, i32
  }
}

</mosaic_0001>

<bundles_post_ra>
// kernel: epsilon_net_forward.1
= control target key start
LH: loop header
LB: loop body
LE: loop exit
PB: predicated region body
PF: predicated region fallthrough
CT: control target
= control target key end

     0   :  { %s6452_s0 = inlined_call_operand.vmem [shape: f32[2,3], index: 0, kind: input, shape index: {}]   ;;  %s6453_s1 = inlined_call_operand.vmem [shape: f32[2,8,32], index: 1, kind: input, shape index: {}]   ;;  %s6454_s2 = inlined_call_operand.vmem [shape: f32[2,8], index: 2, kind: input, shape index: {}]   ;;  %s6455_s3 = inlined_call_operand.vmem [shape: bf16[32,32], index: 3, kind: input, shape index: {}]   ;;  %s6456_s4 = inlined_call_operand.vmem [shape: f32[3,32], index: 4, kind: input, shape index: {}]   ;;  %s6457_s5 = inlined_call_operand.vmem [shape: f32[8,32], index: 5, kind: input, shape index: {}]   ;;  %s6458_s6 = inlined_call_operand.vmem [shape: bf16[3,32,96], index: 6, kind: input, shape index: {}]   ;;  %s6459_s7 = inlined_call_operand.vmem [shape: f32[3,1,96], index: 7, kind: input, shape index: {}]   ;;  %s6460_s8 = inlined_call_operand.vmem [shape: bf16[3,32,32], index: 8, kind: input, shape index: {}]   ;;  %s6461_s9 = inlined_call_operand.vmem [shape: bf16[3,32,128], index: 9, kind: input, shape index: {}]   ;;  %s6462_s10 = inlined_call_operand.vmem [shape: f32[3,1,128], index: 10, kind: input, shape index: {}]   ;;  %s6463_s11 = inlined_call_operand.vmem [shape: bf16[3,128,32], index: 11, kind: input, shape index: {}]   ;;  %s6464_s12 = inlined_call_operand.vmem [shape: f32[3,6,32], index: 12, kind: input, shape index: {}]   ;;  %s6465_s13 = inlined_call_operand.vmem [shape: bf16[32,32], index: 13, kind: input, shape index: {}]   ;;  %s6466_s14 = inlined_call_operand.vmem [shape: f32[1,32], index: 14, kind: input, shape index: {}]   ;;  %s6467_s15 = inlined_call_operand.hbm [shape: f32[2,8,32], index: 15, kind: output, shape index: {}]  }
   0x1   :  { %s20_s20 = sshll.u32 %s6452_s0, 4  ;;  %s21_s20 = int_to_ptr.vmem [resolvable:$true] %s20_s20 }
   0x2   :  { %s5265_s21 = scalar_lea.vmem %s21_s20, 32  ;;  %p5270_p1 = scmp.lt.s32.totalorder %s21_s20, %s21_s20 }
   0x3   :  { %p5266_p0 = scmp.ne.s32.totalorder %s21_s20, %s5265_s21  ;;  %p5271_p2 = scmp.lt.s32.totalorder %s5265_s21, %s5265_s21 }
   0x5   :  { %p5272_p3 = por %p5271_p2, %p5270_p1 }
   0x7   :  { %p5273_p4 = pnand %p5272_p3, %p5266_p0 }
   0x9   :  { %5276 = shalt.err (!%p5273_p4)  }
   0xa   :  { %s5303_s22 = smov [#allocation3]  }
   0xb   :  { %23 = dma.vmem_to_smem %s21_s20, 32, %s5303_s22, [#allocation2] }
   0xc   :  { %5299 = dma.done.wait [#allocation2], 32 }
   0xd   :  { %5300 = vsyncadd [#allocation2], 4294967264 }
   0xe   :  { %25 = sfence }
   0xf   :  { %v5099_v0 = vld [vmem:[%s6455_s3] sm:$0xff]   ;;  %v5304_v1 = vmov 0.0   ;;  %v5100_v2 = vld [vmem:[%s6455_s3 + $0x8] sm:$0xff]   ;;  %vm5305_vm0 = vmmov 0   ;;  %vm111_vm1 = vcmask 261120  }
  0x10   :  { %4604 = vmatprep.subr.bf16.mxu1 %v5304_v1  ;;  %4620 = vmatprep.subr.bf16.mxu0 %v5304_v1  ;;  %v92_v3 = vld [vmem:[%s6453_s1] sm:$0xff]  ;;  %v93_v4 = vld [vmem:[%s6453_s1 + $0x8] sm:$0xff] }
  0x11   :  { %4605 = vmatpush3.bf16.msra.mxu1 %v5099_v0  ;;  %4608 = vmatprep.mubr.msk.bf16.mxu1 %vm5305_vm0, %v5304_v1  ;;  %v94_v5 = vpack.c.bf16 %v93_v4, %v92_v3 }
  0x12   :  { %4606 = vmatprep.subr.bf16.mxu1 %v5304_v1  ;;  %4622 = vmatprep.mubr.msk.bf16.mxu0 %vm5305_vm0, %v5304_v1 }
  0x15   :  { %4607 = vmatpush3.bf16.msra.mxu1 %v5100_v2 }
  0x16   :  { %4612 = vmatprep.subr.bf16.mxu1 %v5304_v1 }
  0x18   :  { %4609 = vmatmul.mubr.msk.bf16.vlgmr.msra.gmra.mrb[0].mxu1 %vm111_vm1, %v94_v5 }
  0x19   :  { %4616 = vmatprep.mubr.msk.bf16.mxu1 %vm5305_vm0, %v5304_v1 }
  0x1a   :  { %26 = vsyncpa [#allocation5], 0  ;;  %v5101_v6 = vld [vmem:[%s6458_s6] sm:$0xff]   ;;  %v82_v7 = vlaneseq  ;;  %v5306_v10 = vmov 1966171168   ;;  %v5102_v12 = vld [vmem:[%s6458_s6 + $0x8] sm:$0xff]  }
  0x1b   :  { %4613 = vmatpush3.bf16.msra.mxu1 %v5101_v6  ;;  %v156_v8 = vld [vmem:[%s6454_s2] sm:$0x3]  ;;  %v161_v11 = vunpack.c.l.s4 %v5306_v10  ;;  %s56_s2 = sld [smem:[#allocation3]]  ;;  %s4269_s19 = sld [smem:[#allocation3 + $0x1]]  ;;  %v66_v30 = vld [vmem:[%s6456_s4 + $0x2] sm:$0x1] }
  0x1c   :  { %4614 = vmatprep.subr.bf16.mxu1 %v5304_v1  ;;  %v157_v9 = vsub.f32 1.0, %v156_v8  ;;  %v5433_v13 = vshrl.u32 %v82_v7, 7  ;;  %s4271_s20 = sld [smem:[#allocation3 + $0x80]]  ;;  %s4272_s21 = sld [smem:[#allocation3 + $0x81]]  ;;  %v57_v20 = vld [vmem:[%s6456_s4] sm:$0x1] }
  0x1d   :  { %v162_v15 = vunpack.c.0.s8 %v161_v11  ;;  %s4270_s22 = sld [smem:[#allocation3 + $0x2]]  ;;  %v61_v21 = vld [vmem:[%s6456_s4 + $0x1] sm:$0x1]  ;;  %v4277_v52 = vld [vmem:[%s6459_s7] ss:$0 sm:$0xff]  ;;  %s5307_s30 = smov 104  }
  0x1e   :  { %v158_v14 = vmul.f32 -1e+09, %v157_v9  ;;  %s4273_s23 = sld [smem:[#allocation3 + $0x82]]  ;;  %v5457_v38 = vsub.s32 0, %v5433_v13  ;;  %v81_v42 = vld [vmem:[%s6457_s5] sm:$0xff]  ;;  %s5308_s1 = smov 120  }
  0x1f   :  { %4615 = vmatpush3.bf16.msra.mxu1 %v5102_v12  ;;  %v5437_v16 = vsub.s32 %v162_v15, %v5433_v13  ;;  %s5309_s16 = smov 112   ;;  %s5310_s17 = smov 96   ;;  %vm292_vm2 = vcmask 64512   ;;  %vm783_vm3 = vcmask 1043456   ;;  %vm1189_vm4 = vcmask 130048  }
  0x20   :  { %4626 = vmatprep.subr.bf16.mxu1 %v5304_v1  ;;  %s5311_s18 = smov 64   ;;  %s5314_s24 = smov 24   ;;  %vm1192_vm5 = vcmask 195584  }
  0x21   :  { %v5440_v17 = vrot.slane %v158_v14, %v5437_v16  ;;  %v58_v22 = vstv %s56_s2  ;;  %v62_v23 = vstv %s4269_s19 }
  0x22   :  { %v71_v24 = vstv %s4271_s20  ;;  %v74_v25 = vstv %s4272_s21  ;;  %v59_v26 = vmul.f32 %v58_v22, %v57_v20  ;;  %v63_v27 = vmul.f32 %v62_v23, %v61_v21 }
  0x23   :  { %v167_v18 = vcombine.high %v5440_v17, %v5440_v17  ;;  %v72_v28 = vmul.f32 %v71_v24, %v57_v20  ;;  %v75_v29 = vmul.f32 %v74_v25, %v61_v21  ;;  %v67_v31 = vstv %s4270_s22  ;;  %s5312_s22 = smov 8  }
  0x24   :  { %v78_v32 = vstv %s4273_s23  ;;  %v64_v33 = vadd.f32 %v63_v27, %v59_v26  ;;  %v68_v34 = vmul.f32 %v67_v31, %v66_v30  ;;  %s5313_s23 = smov 16  }
  0x25   :  { %v5445_v19 = vrot.slane %v167_v18, %v5437_v16  ;;  %v76_v35 = vadd.f32 %v75_v29, %v72_v28  ;;  %v79_v36 = vmul.f32 %v78_v32, %v66_v30  ;;  %v174_v32 = vrot.slane %v5440_v17, %v5437_v16 }
  0x26   :  { %v69_v37 = vadd.f32 %v68_v34, %v64_v33 }
  0x27   :  { %v80_v39 = vadd.f32 %v79_v36, %v76_v35  ;;  %v5564_v33 = vrot.slane %v174_v32, %v5457_v38 }
  0x28   :  { %v85_v40 = vrot.slane %v69_v37, %v5457_v38 }
  0x29   :  { %v89_v41 = vrot.slane %v80_v39, %v5457_v38 }
  0x2a   :  { %v90_v43 = vadd.f32 %v85_v40, %v81_v42 }
  0x2b   :  { %v91_v44 = vadd.f32 %v89_v41, %v81_v42 }
  0xeb   :  { %v149_v45 = vpop.f32.mrb[0].mxu1 }
  0xec   :  { %v4610_v46 = vpop.f32.mrb[1].mxu1  ;;  %v5464_v48 = vadd.f32 %v149_v45, %v90_v43 }
  0xed   :  { %v152_v47 = vpop.f32.mrb[2].mxu1 }
  0xee   :  { %v5466_v49 = vadd.f32 %v152_v47, %v91_v44  ;;  %v4611_v50 = vpop.f32.mrb[3].mxu1 }
  0xf0   :  { %v193_v51 = vpack.c.bf16 %v5466_v49, %v5464_v48 }
  0xf2   :  { %4617 = vmatmul.mubr.msk.bf16.vlgmr.msra.gmra.mrb[4].mxu1 %vm111_vm1, %v193_v51 }
  0xf3   :  { %4628 = vmatprep.mubr.msk.bf16.mxu1 %vm5305_vm0, %v5304_v1 }
 0x1c5   :  { %v254_v53 = vpop.f32.mrb[4].mxu1 }
 0x1c6   :  { %v255_v54 = vadd.f32 %v4277_v52, %v254_v53  ;;  %v4618_v55 = vpop.f32.mrb[5].mxu1 }
 0x1c7   :  { %v257_v56 = vpop.f32.mrb[6].mxu1 }
 0x1c8   :  { %275 = vrot.lane.b32.xlu1 %v255_v54, %s5307_s30  ;;  %263 = vrot.lane.b32.xlu0 %v255_v54, %s5308_s1  ;;  %v4619_v57 = vpop.f32.mrb[7].mxu1  ;;  %v258_v58 = vadd.f32 %v4277_v52, %v257_v56  ;;  %v281_v59 = vpack.c.bf16 %v255_v54, %v255_v54 }
 0x1ca   :  { %v5497_v6 = vpack.c.bf16 %v258_v58, %v258_v58 }
 0x1cc   :  { %269 = vrot.lane.b32.xlu0 %v255_v54, %s5309_s16  ;;  %265 = vrot.lane.b32.xlu1 %v258_v58, %s5308_s1  ;;  %v5574_v54 = vrot.slane %v5445_v19, %v5457_v38 }
 0x1d0   :  { %271 = vrot.lane.b32.xlu0 %v258_v58, %s5309_s16  ;;  %277 = vrot.lane.b32.xlu1 %v258_v58, %s5307_s30 }
 0x1d4   :  { %290 = vrot.lane.b32.xlu0 %v281_v59, %s5310_s17 }
 0x23a   :  { %v276_v60 = vpop.permute.xlu1 %275  ;;  %v264_v61 = vpop.permute.xlu0 %263 }
 0x23b   :  { %v5483_v62 = vpack.c.bf16 %v264_v61, %v264_v61  ;;  %v5487_v2 = vpack.c.bf16 %v276_v60, %v276_v60 }
 0x23d   :  { %340 = vrot.lane.b32.xlu1 %v5483_v62, %s5310_s17 }
 0x23e   :  { %v270_v63 = vpop.permute.xlu0 %269  ;;  %v266_v0 = vpop.permute.xlu1 %265 }
 0x23f   :  { %v5489_v3 = vpack.c.bf16 %v270_v63, %v270_v63  ;;  %v5495_v5 = vpack.c.bf16 %v266_v0, %v266_v0 }
 0x241   :  { %389 = vrot.lane.b32.xlu0 %v5489_v3, %s5310_s17  ;;  %438 = vrot.lane.b32.xlu1 %v5487_v2, %s5310_s17 }
 0x242   :  { %v272_v4 = vpop.permute.xlu0 %271  ;;  %v278_v7 = vpop.permute.xlu1 %277 }
 0x243   :  { %v5503_v9 = vpack.c.bf16 %v272_v4, %v272_v4  ;;  %v5505_v10 = vpack.c.bf16 %v278_v7, %v278_v7 }
 0x245   :  { %536 = vrot.lane.b32.xlu1 %v5495_v5, %s5310_s17  ;;  %487 = vrot.lane.b32.xlu0 %v5497_v6, %s5310_s17 }
 0x246   :  { %v291_v8 = vpop.permute.xlu0 %290 }
 0x247   :  { %v297_v11 = vsel %vm292_vm2, %v291_v8, 0 }
 0x248   :  { %4621 = vmatpush3.bf16.xpose.msra.mxu0 %v297_v11 }
 0x249   :  { %634 = vrot.lane.b32.xlu1 %v5505_v10, %s5310_s17  ;;  %585 = vrot.lane.b32.xlu0 %v5503_v9, %s5310_s17 }
 0x24a   :  { %4632 = vmatprep.subr.bf16.mxu0 %v5304_v1 }
 0x24d   :  { %778 = vrot.lane.b32.xlu1 %v281_v59, %s5311_s18 }
 0x24f   :  { %4623 = vmatmul.mubr.msk.bf16.vlgmr.msra.gmra.mrb[0].mxu0 %vm292_vm2, %v281_v59 }
 0x250   :  { %4634 = vmatprep.mubr.msk.bf16.mxu0 %vm5305_vm0, %v5304_v1 }
 0x2af   :  { %v341_v12 = vpop.permute.xlu1 %340 }
 0x2b0   :  { %v346_v14 = vsel %vm292_vm2, %v341_v12, 0 }
 0x2b1   :  { %4627 = vmatpush3.bf16.xpose.msra.mxu1 %v346_v14 }
 0x2b2   :  { %4638 = vmatprep.subr.bf16.mxu1 %v5304_v1 }
 0x2b3   :  { %v390_v15 = vpop.permute.xlu0 %389  ;;  %v439_v20 = vpop.permute.xlu1 %438 }
 0x2b4   :  { %v395_v18 = vsel %vm292_vm2, %v390_v15, 0  ;;  %v444_v21 = vsel %vm292_vm2, %v439_v20, 0 }
 0x2b5   :  { %4633 = vmatpush3.bf16.xpose.msra.mxu0 %v395_v18 }
 0x2b6   :  { %4644 = vmatprep.subr.bf16.mxu0 %v5304_v1 }
 0x2b7   :  { %v488_v22 = vpop.permute.xlu0 %487  ;;  %v537_v24 = vpop.permute.xlu1 %536 }
 0x2b8   :  { %4629 = vmatmul.mubr.msk.bf16.vlgmr.msra.gmra.mrb[8].mxu1 %vm292_vm2, %v5483_v62  ;;  %v493_v23 = vsel %vm292_vm2, %v488_v22, 0  ;;  %v542_v25 = vsel %vm292_vm2, %v537_v24, 0 }
 0x2b9   :  { %4639 = vmatpush3.bf16.xpose.msra.mxu1 %v444_v21  ;;  %4640 = vmatprep.mubr.msk.bf16.mxu1 %vm5305_vm0, %v5304_v1 }
 0x2ba   :  { %4650 = vmatprep.subr.bf16.mxu1 %v5304_v1 }
 0x2bb   :  { %v586_v26 = vpop.permute.xlu0 %585  ;;  %v635_v27 = vpop.permute.xlu1 %634 }
 0x2bc   :  { %4635 = vmatmul.mubr.msk.bf16.vlgmr.msra.gmra.mrb[4].mxu0 %vm292_vm2, %v5489_v3  ;;  %v591_v28 = vsel %vm292_vm2, %v586_v26, 0  ;;  %v640_v29 = vsel %vm292_vm2, %v635_v27, 0 }
 0x2bd   :  { %4645 = vmatpush3.bf16.xpose.msra.mxu0 %v493_v23  ;;  %4646 = vmatprep.mubr.msk.bf16.mxu0 %vm5305_vm0, %v5304_v1 }
 0x2be   :  { %4656 = vmatprep.subr.bf16.mxu0 %v5304_v1 }
 0x2bf   :  { %v779_v30 = vpop.permute.xlu1 %778 }
 0x2c0   :  { %4641 = vmatmul.mubr.msk.bf16.vlgmr.msra.gmra.mrb[12].mxu1 %vm292_vm2, %v5487_v2  ;;  %v785_v31 = vsel %vm783_vm3, %v779_v30, 0 }
 0x2c1   :  { %4651 = vmatpush3.bf16.xpose.msra.mxu1 %v542_v25  ;;  %4652 = vmatprep.mubr.msk.bf16.mxu1 %vm5305_vm0, %v5304_v1 }
 0x2c2   :  { %4662 = vmatprep.subr.bf16.mxu1 %v5304_v1 }
 0x2c4   :  { %4647 = vmatmul.mubr.msk.bf16.vlgmr.msra.gmra.mrb[8].mxu0 %vm292_vm2, %v5497_v6 }
 0x2c5   :  { %4657 = vmatpush3.bf16.xpose.msra.mxu0 %v591_v28  ;;  %4658 = vmatprep.mubr.msk.bf16.mxu0 %vm5305_vm0, %v5304_v1 }
 0x2c6   :  { %4668 = vmatprep.subr.bf16.mxu0 %v5304_v1 }
 0x2c8   :  { %4653 = vmatmul.mubr.msk.bf16.vlgmr.msra.gmra.mrb[16].mxu1 %vm292_vm2, %v5495_v5 }
 0x2c9   :  { %4663 = vmatpush3.bf16.xpose.msra.mxu1 %v640_v29  ;;  %4664 = vmatprep.mubr.msk.bf16.mxu1 %vm5305_vm0, %v5304_v1 }
 0x2ca   :  { %4674 = vmatprep.subr.bf16.mxu1 %v5304_v1 }
 0x2cc   :  { %4659 = vmatmul.mubr.msk.bf16.vlgmr.msra.gmra.mrb[12].mxu0 %vm292_vm2, %v5503_v9 }
 0x2cd   :  { %4669 = vmatpush3.bf16.msra.mxu0 %v785_v31  ;;  %4670 = vmatprep.mubr.msk.bf16.mxu0 %vm5305_vm0, %v5304_v1 }
 0x2ce   :  { %4680 = vmatprep.subr.bf16.mxu0 %v5304_v1 }
 0x2d0   :  { %4665 = vmatmul.mubr.msk.bf16.vlgmr.msra.gmra.mrb[20].mxu1 %vm292_vm2, %v5505_v10 }
 0x2d1   :  { %4676 = vmatprep.mubr.msk.bf16.mxu1 %vm5305_vm0, %v5304_v1 }
 0x322   :  { %v333_v34 = vpop.f32.mrb[0].mxu0 }
 0x323   :  { %v334_v35 = vadd.f32 %v333_v34, %v5564_v33  ;;  %v4624_v36 = vpop.f32.mrb[1].mxu0 }
 0x324   :  { %v336_v37 = vpop.f32.mrb[2].mxu0 }
 0x325   :  { %v4625_v39 = vpop.f32.mrb[3].mxu0  ;;  %v682_v40 = vsel %vm292_vm2, %v334_v35, -inf }
 0x326   :  { %683 = vmax.xlane.f32.xlu0 %v682_v40 }
 0x38b   :  { %v382_v41 = vpop.f32.mrb[8].mxu1 }
 0x38c   :  { %v383_v42 = vadd.f32 %v382_v41, %v5564_v33  ;;  %v4630_v43 = vpop.f32.mrb[9].mxu1 }
 0x38d   :  { %v385_v44 = vpop.f32.mrb[10].mxu1 }
 0x38e   :  { %v4631_v45 = vpop.f32.mrb[11].mxu1  ;;  %v685_v16 = vsel %vm292_vm2, %v383_v42, -inf }
 0x38f   :  { %v431_v17 = vpop.f32.mrb[4].mxu0  ;;  %686 = vmax.xlane.f32.xlu1 %v685_v16 }
 0x390   :  { %v432_v46 = vadd.f32 %v431_v17, %v5564_v33  ;;  %v4636_v47 = vpop.f32.mrb[5].mxu0 }
 0x391   :  { %v434_v50 = vpop.f32.mrb[6].mxu0 }
 0x392   :  { %v4637_v51 = vpop.f32.mrb[7].mxu0  ;;  %v688_v52 = vsel %vm292_vm2, %v432_v46, -inf }
 0x393   :  { %689 = vmax.xlane.f32.xlu0 %v688_v52  ;;  %v480_v53 = vpop.f32.mrb[12].mxu1 }
 0x394   :  { %v481_v55 = vadd.f32 %v480_v53, %v5564_v33  ;;  %v4642_v56 = vpop.f32.mrb[13].mxu1 }
 0x395   :  { %v483_v57 = vpop.f32.mrb[14].mxu1 }
 0x396   :  { %v4643_v58 = vpop.f32.mrb[15].mxu1  ;;  %v691_v59 = vsel %vm292_vm2, %v481_v55, -inf }
 0x397   :  { %v529_v60 = vpop.f32.mrb[8].mxu0  ;;  %692 = vmax.xlane.f32.xlu0 %v691_v59 }
 0x398   :  { %v5579_v61 = vadd.f32 %v529_v60, %v5574_v54  ;;  %v4648_v63 = vpop.f32.mrb[9].mxu0 }
 0x399   :  { %v532_v0 = vpop.f32.mrb[10].mxu0 }
 0x39a   :  { %v4649_v4 = vpop.f32.mrb[11].mxu0  ;;  %v694_v7 = vsel %vm292_vm2, %v5579_v61, -inf }
 0x39b   :  { %695 = vmax.xlane.f32.xlu1 %v694_v7  ;;  %v578_v19 = vpop.f32.mrb[16].mxu1 }
 0x39c   :  { %v5584_v8 = vadd.f32 %v578_v19, %v5574_v54  ;;  %v4654_v11 = vpop.f32.mrb[17].mxu1 }
 0x39d   :  { %v581_v12 = vpop.f32.mrb[18].mxu1 }
 0x39e   :  { %v4655_v14 = vpop.f32.mrb[19].mxu1  ;;  %v697_v15 = vsel %vm292_vm2, %v5584_v8, -inf }
 0x39f   :  { %v627_v18 = vpop.f32.mrb[12].mxu0  ;;  %698 = vmax.xlane.f32.xlu0 %v697_v15 }
 0x3a0   :  { %v628_v20 = vadd.f32 %v627_v18, %v5574_v54  ;;  %v4660_v21 = vpop.f32.mrb[13].mxu0 }
 0x3a1   :  { %v630_v22 = vpop.f32.mrb[14].mxu0 }
 0x3a2   :  { %v4661_v23 = vpop.f32.mrb[15].mxu0  ;;  %v700_v24 = vsel %vm292_vm2, %v628_v20, -inf }
 0x3a3   :  { %701 = vmax.xlane.f32.xlu1 %v700_v24  ;;  %v676_v25 = vpop.f32.mrb[20].mxu1 }
 0x3a4   :  { %v677_v26 = vadd.f32 %v676_v25, %v5574_v54  ;;  %v4666_v27 = vpop.f32.mrb[21].mxu1 }
 0x3a5   :  { %v679_v28 = vpop.f32.mrb[22].mxu1 }
 0x3a6   :  { %v4667_v29 = vpop.f32.mrb[23].mxu1  ;;  %v703_v30 = vsel %vm292_vm2, %v677_v26, -inf }
 0x3a7   :  { %704 = vmax.xlane.f32.xlu0 %v703_v30 }
 0x3b3   :  { %v684_v31 = vpop.xlane.xlu0 %683 }
 0x3b4   :  { %875 = vrot.lane.b32.xlu1 %v5489_v3, %s5311_s18  ;;  %v706_v32 = vsub.f32 %v334_v35, %v684_v31 }
 0x3b6   :  { %v714_v34 = vmul.f32 1.442695, %v706_v32 }
 0x3b8   :  { %923 = vrot.lane.b32.xlu1 %v5487_v2, %s5311_s18  ;;  %5145 = vpow2.f32 %v714_v34 }
 0x3bd   :  { %827 = vrot.lane.b32.xlu0 %v5483_v62, %s5311_s18 }
 0x3c2   :  { %v5598_v36 = vpop.eup %5145 }
 0x3c3   :  { %v730_v37 = vsel %vm292_vm2, %v5598_v36, 0.0 }
 0x3dc   :  { %731 = vadd.xlane.f32.xlu1 %v730_v37 }
 0x41c   :  { %v687_v39 = vpop.xlane.xlu1 %686 }
 0x41d   :  { %v707_v40 = vsub.f32 %v383_v42, %v687_v39 }
 0x41f   :  { %v716_v41 = vmul.f32 1.442695, %v707_v40 }
 0x420   :  { %v690_v3 = vpop.xlane.xlu0 %689 }
 0x421   :  { %5147 = vpow2.f32 %v716_v41  ;;  %v708_v43 = vsub.f32 %v432_v46, %v690_v3 }
 0x423   :  { %v718_v2 = vmul.f32 1.442695, %v708_v43 }
 0x424   :  { %v693_v44 = vpop.xlane.xlu0 %692 }
 0x425   :  { %5149 = vpow2.f32 %v718_v2  ;;  %v709_v62 = vsub.f32 %v481_v55, %v693_v44 }
 0x427   :  { %v720_v45 = vmul.f32 1.442695, %v709_v62 }
 0x428   :  { %v696_v55 = vpop.xlane.xlu1 %695 }
 0x429   :  { %5151 = vpow2.f32 %v720_v45  ;;  %v710_v56 = vsub.f32 %v5579_v61, %v696_v55 }
 0x42b   :  { %v5602_v35 = vpop.eup %5147  ;;  %v722_v59 = vmul.f32 1.442695, %v710_v56 }
 0x42c   :  { %v733_v16 = vsel %vm292_vm2, %v5602_v35, 0.0  ;;  %v699_v47 = vpop.xlane.xlu0 %698 }
 0x42d   :  { %734 = vadd.xlane.f32.xlu0 %v733_v16  ;;  %v711_v58 = vsub.f32 %v5584_v8, %v699_v47  ;;  %5153 = vpow2.f32 %v722_v59 }
 0x42f   :  { %v5606_v17 = vpop.eup %5149  ;;  %v724_v63 = vmul.f32 1.442695, %v711_v58 }
 0x430   :  { %v736_v42 = vsel %vm292_vm2, %v5606_v17, 0.0  ;;  %v702_v57 = vpop.xlane.xlu1 %701 }
 0x431   :  { %737 = vadd.xlane.f32.xlu1 %v736_v42  ;;  %v712_v60 = vsub.f32 %v628_v20, %v702_v57  ;;  %5155 = vpow2.f32 %v724_v63 }
 0x433   :  { %v5610_v46 = vpop.eup %5151  ;;  %v726_v0 = vmul.f32 1.442695, %v712_v60 }
 0x434   :  { %v705_v50 = vpop.xlane.xlu0 %704  ;;  %v739_v51 = vsel %vm292_vm2, %v5610_v46, 0.0  ;;  %v876_v19 = vpop.permute.xlu1 %875 }
 0x435   :  { %740 = vadd.xlane.f32.xlu0 %v739_v51  ;;  %v713_v4 = vsub.f32 %v677_v26, %v705_v50  ;;  %5157 = vpow2.f32 %v726_v0  ;;  %v881_v24 = vsel %vm783_vm3, %v876_v19, 0 }
 0x437   :  { %v728_v7 = vmul.f32 1.442695, %v713_v4 }
 0x438   :  { %v828_v52 = vpop.permute.xlu0 %827  ;;  %v924_v11 = vpop.permute.xlu1 %923 }
 0x439   :  { %v833_v53 = vsel %vm783_vm3, %v828_v52, 0  ;;  %5159 = vpow2.f32 %v728_v7  ;;  %v929_v32 = vsel %vm783_vm3, %v924_v11, 0 }
 0x43a   :  { %4675 = vmatpush3.bf16.msra.mxu1 %v833_v53 }
 0x43b   :  { %4686 = vmatprep.subr.bf16.mxu1 %v5304_v1 }
 0x442   :  { %1019 = vrot.lane.b32.xlu1 %v5495_v5, %s5311_s18  ;;  %v5622_v5 = vpop.eup %5153 }
 0x443   :  { %v742_v61 = vsel %vm292_vm2, %v5622_v5, 0.0 }
 0x44b   :  { %971 = vrot.lane.b32.xlu0 %v5497_v6, %s5311_s18  ;;  %v5624_v6 = vpop.eup %5155 }
 0x44c   :  { %v5628_v8 = vpop.eup %5157  ;;  %v745_v15 = vsel %vm292_vm2, %v5624_v6, 0.0 }
 0x44d   :  { %v748_v14 = vsel %vm292_vm2, %v5628_v8, 0.0  ;;  %v5634_v18 = vpop.eup %5159 }
 0x44e   :  { %v751_v20 = vsel %vm292_vm2, %v5634_v18, 0.0 }
 0x466   :  { %743 = vadd.xlane.f32.xlu1 %v742_v61 }
 0x469   :  { %v732_v12 = vpop.xlane.xlu1 %731 }
 0x46a   :  { %5161 = vrcp.f32 %v732_v12  ;;  %749 = vadd.xlane.f32.xlu1 %v748_v14  ;;  %746 = vadd.xlane.f32.xlu0 %v745_v15 }
 0x46e   :  { %752 = vadd.xlane.f32.xlu0 %v751_v20 }
 0x474   :  { %v5162_v21 = vpop.eup %5161 }
 0x475   :  { %v762_v22 = vmul.f32 %v5162_v21, %v5598_v36 }
 0x477   :  { %v770_v23 = vpack.c.bf16 %v762_v22, %v762_v22  ;;  %v5103_v22 = vld [vmem:[%s6460_s8] sm:$0xff]  }
 0x479   :  { %4671 = vmatmul.mubr.msk.bf16.vlgmr.msra.gmra.mrb[16].mxu0 %vm292_vm2, %v770_v23 }
 0x47a   :  { %4681 = vmatpush3.bf16.msra.mxu0 %v881_v24  ;;  %4682 = vmatprep.mubr.msk.bf16.mxu0 %vm5305_vm0, %v5304_v1 }
 0x47b   :  { %1115 = vrot.lane.b32.xlu1 %v5505_v10, %s5311_s18  ;;  %4692 = vmatprep.subr.bf16.mxu0 %v5304_v1 }
 0x484   :  { %1067 = vrot.lane.b32.xlu0 %v5503_v9, %s5311_s18 }
 0x4ba   :  { %v735_v25 = vpop.xlane.xlu0 %734 }
 0x4bb   :  { %5163 = vrcp.f32 %v735_v25 }
 0x4be   :  { %v738_v26 = vpop.xlane.xlu1 %737 }
 0x4bf   :  { %5165 = vrcp.f32 %v738_v26  ;;  %v5104_v26 = vld [vmem:[%s6460_s8 + $0x8] sm:$0xff]  }
 0x4c2   :  { %v741_v27 = vpop.xlane.xlu0 %740  ;;  %v1020_v40 = vpop.permute.xlu1 %1019 }
 0x4c3   :  { %5167 = vrcp.f32 %v741_v27  ;;  %v1025_v3 = vsel %vm783_vm3, %v1020_v40, 0 }
 0x4c5   :  { %v5164_v28 = vpop.eup %5163 }
 0x4c6   :  { %v763_v29 = vmul.f32 %v5164_v28, %v5602_v35  ;;  %v972_v34 = vpop.permute.xlu0 %971 }
 0x4c7   :  { %v977_v37 = vsel %vm783_vm3, %v972_v34, 0 }
 0x4c8   :  { %v771_v30 = vpack.c.bf16 %v763_v29, %v763_v29 }
 0x4c9   :  { %v5166_v31 = vpop.eup %5165 }
 0x4ca   :  { %4677 = vmatmul.mubr.msk.bf16.vlgmr.msra.gmra.mrb[24].mxu1 %vm292_vm2, %v771_v30  ;;  %v764_v10 = vmul.f32 %v5166_v31, %v5606_v17 }
 0x4cb   :  { %4687 = vmatpush3.bf16.msra.mxu1 %v929_v32  ;;  %4688 = vmatprep.mubr.msk.bf16.mxu1 %vm5305_vm0, %v5304_v1 }
 0x4cc   :  { %v772_v9 = vpack.c.bf16 %v764_v10, %v764_v10  ;;  %4698 = vmatprep.subr.bf16.mxu1 %v5304_v1 }
 0x4cd   :  { %v5168_v36 = vpop.eup %5167 }
 0x4ce   :  { %4683 = vmatmul.mubr.msk.bf16.vlgmr.msra.gmra.mrb[20].mxu0 %vm292_vm2, %v772_v9  ;;  %v765_v39 = vmul.f32 %v5168_v36, %v5610_v46 }
 0x4cf   :  { %4693 = vmatpush3.bf16.msra.mxu0 %v977_v37  ;;  %4694 = vmatprep.mubr.msk.bf16.mxu0 %vm5305_vm0, %v5304_v1 }
 0x4d0   :  { %v773_v41 = vpack.c.bf16 %v765_v39, %v765_v39  ;;  %4704 = vmatprep.subr.bf16.mxu0 %v5304_v1 }
 0x4d2   :  { %4689 = vmatmul.mubr.msk.bf16.vlgmr.msra.gmra.mrb[28].mxu1 %vm292_vm2, %v773_v41 }
 0x4d3   :  { %4699 = vmatpush3.bf16.msra.mxu1 %v1025_v3  ;;  %4700 = vmatprep.mubr.msk.bf16.mxu1 %vm5305_vm0, %v5304_v1 }
 0x4d4   :  { %4710 = vmatprep.subr.bf16.mxu1 %v5304_v1 }
 0x4f3   :  { %v744_v43 = vpop.xlane.xlu1 %743 }
 0x4f4   :  { %5169 = vrcp.f32 %v744_v43 }
 0x4f7   :  { %v750_v2 = vpop.xlane.xlu1 %749  ;;  %v747_v44 = vpop.xlane.xlu0 %746 }
 0x4f8   :  { %5171 = vrcp.f32 %v750_v2 }
 0x4f9   :  { %5173 = vrcp.f32 %v747_v44 }
 0x4fb   :  { %v753_v62 = vpop.xlane.xlu0 %752  ;;  %v1116_v51 = vpop.permute.xlu1 %1115 }
 0x4fc   :  { %5175 = vrcp.f32 %v753_v62  ;;  %v1121_v56 = vsel %vm783_vm3, %v1116_v51, 0 }
 0x4fe   :  { %v5170_v45 = vpop.eup %5169 }
 0x4ff   :  { %v766_v35 = vmul.f32 %v5170_v45, %v5622_v5  ;;  %v1068_v16 = vpop.permute.xlu0 %1067 }
 0x500   :  { %v1073_v46 = vsel %vm783_vm3, %v1068_v16, 0 }
 0x501   :  { %v774_v17 = vpack.c.bf16 %v766_v35, %v766_v35 }
 0x502   :  { %v5172_v47 = vpop.eup %5171 }
 0x503   :  { %v5174_v42 = vpop.eup %5173  ;;  %4695 = vmatmul.mubr.msk.bf16.vlgmr.msra.gmra.mrb[24].mxu0 %vm292_vm2, %v774_v17  ;;  %v768_v52 = vmul.f32 %v5172_v47, %v5628_v8 }
 0x504   :  { %4705 = vmatpush3.bf16.msra.mxu0 %v1073_v46  ;;  %v767_v50 = vmul.f32 %v5174_v42, %v5624_v6  ;;  %4706 = vmatprep.mubr.msk.bf16.mxu0 %vm5305_vm0, %v5304_v1 }
 0x505   :  { %4716 = vmatprep.subr.bf16.mxu0 %v5304_v1  ;;  %v776_v57 = vpack.c.bf16 %v768_v52, %v768_v52 }
 0x506   :  { %v775_v53 = vpack.c.bf16 %v767_v50, %v767_v50  ;;  %v5176_v55 = vpop.eup %5175 }
 0x507   :  { %v769_v58 = vmul.f32 %v5176_v55, %v5634_v18 }
 0x508   :  { %4701 = vmatmul.mubr.msk.bf16.vlgmr.msra.gmra.mrb[32].mxu1 %vm292_vm2, %v775_v53 }
 0x509   :  { %4711 = vmatpush3.bf16.msra.mxu1 %v1121_v56  ;;  %4712 = vmatprep.mubr.msk.bf16.mxu1 %vm5305_vm0, %v5304_v1  ;;  %v777_v59 = vpack.c.bf16 %v769_v58, %v769_v58  ;;  %v5709_v56 = vld [vmem:[%s6464_s12] sm:$0x3f] }
 0x50a   :  { %4724 = vmatprep.subr.bf16.mxu1 %v5304_v1 }
 0x50b   :  { %4707 = vmatmul.mubr.msk.bf16.vlgmr.msra.gmra.mrb[28].mxu0 %vm292_vm2, %v776_v57  ;;  %v1203_v57 = vrot.slane %v5709_v56, %v5457_v38 }
 0x50c   :  { %4720 = vmatprep.mubr.msk.bf16.mxu0 %vm5305_vm0, %v5304_v1  ;;  %4717 = vmatpush3.bf16.msra.mxu0 %v5103_v22  ;;  %v5106_v22 = vld [vmem:[%s6461_s9 + $0x8] sm:$0xff]  }
 0x50d   :  { %4718 = vmatprep.subr.bf16.mxu0 %v5304_v1 }
 0x510   :  { %4713 = vmatmul.mubr.msk.bf16.vlgmr.msra.gmra.mrb[36].mxu1 %vm292_vm2, %v777_v59  ;;  %4719 = vmatpush3.bf16.msra.mxu0 %v5104_v26  ;;  %v5110_v26 = vld [vmem:[%s6463_s11 + $0x18] sm:$0xff]  }
 0x511   :  { %4728 = vmatprep.mubr.msk.bf16.mxu1 %vm5305_vm0, %v5304_v1  ;;  %4732 = vmatprep.subr.bf16.mxu0 %v5304_v1 }
 0x54c   :  { %v821_v60 = vpop.f32.mrb[16].mxu0 }
 0x54d   :  { %v4672_v63 = vpop.f32.mrb[17].mxu0 }
 0x54e   :  { %v824_v0 = vpop.f32.mrb[18].mxu0 }
 0x54f   :  { %v4673_v4 = vpop.f32.mrb[19].mxu0 }
 0x59d   :  { %v869_v7 = vpop.f32.mrb[24].mxu1 }
 0x59e   :  { %v4678_v19 = vpop.f32.mrb[25].mxu1 }
 0x59f   :  { %v872_v5 = vpop.f32.mrb[26].mxu1 }
 0x5a0   :  { %v4679_v6 = vpop.f32.mrb[27].mxu1 }
 0x5a1   :  { %v917_v11 = vpop.f32.mrb[20].mxu0 }
 0x5a2   :  { %v4684_v61 = vpop.f32.mrb[21].mxu0 }
 0x5a3   :  { %v920_v8 = vpop.f32.mrb[22].mxu0 }
 0x5a4   :  { %v4685_v12 = vpop.f32.mrb[23].mxu0 }
 0x5a5   :  { %v965_v14 = vpop.f32.mrb[28].mxu1 }
 0x5a6   :  { %v4690_v15 = vpop.f32.mrb[29].mxu1 }
 0x5a7   :  { %v968_v18 = vpop.f32.mrb[30].mxu1 }
 0x5a8   :  { %v4691_v20 = vpop.f32.mrb[31].mxu1 }
 0x5d6   :  { %v1013_v21 = vpop.f32.mrb[24].mxu0 }
 0x5d7   :  { %v4696_v23 = vpop.f32.mrb[25].mxu0 }
 0x5d8   :  { %v1016_v24 = vpop.f32.mrb[26].mxu0  ;;  %v5107_v23 = vld [vmem:[%s6463_s11] sm:$0xff]  }
 0x5d9   :  { %v4697_v25 = vpop.f32.mrb[27].mxu0  ;;  %v5108_v24 = vld [vmem:[%s6463_s11 + $0x8] sm:$0xff]  }
 0x5da   :  { %v5109_v25 = vld [vmem:[%s6463_s11 + $0x10] sm:$0xff]  }
 0x5db   :  { %v1061_v27 = vpop.f32.mrb[32].mxu1 }
 0x5dc   :  { %v5054_v28 = vpack.i.bf16 %v1061_v27, %v869_v7  ;;  %v4702_v29 = vpop.f32.mrb[33].mxu1  ;;  %v5111_v27 = vld [vmem:[%s6463_s11 + $0x20] sm:$0xff]  }
 0x5dd   :  { %v1064_v30 = vpop.f32.mrb[34].mxu1 }
 0x5de   :  { %5055 = vrot.lane.b32.xlu0 %v5054_v28, %s5312_s22  ;;  %v4703_v31 = vpop.f32.mrb[35].mxu1  ;;  %v1109_v32 = vpop.f32.mrb[28].mxu0  ;;  %v5112_v28 = vld [vmem:[%s6463_s11 + $0x28] sm:$0xff]  }
 0x5df   :  { %v5059_v10 = vpack.i.bf16 %v1109_v32, %v917_v11  ;;  %v4708_v34 = vpop.f32.mrb[29].mxu0 }
 0x5e0   :  { %v1112_v9 = vpop.f32.mrb[30].mxu0 }
 0x5e1   :  { %5060 = vrot.lane.b32.xlu1 %v5059_v10, %s5313_s23  ;;  %v4709_v36 = vpop.f32.mrb[31].mxu0  ;;  %v5752_v9 = vsub.s32 2, %v5433_v13 }
 0x5e3   :  { %v1157_v37 = vpop.f32.mrb[36].mxu1  ;;  %v1292_v36 = vrot.slane %v5709_v56, %v5752_v9 }
 0x5e4   :  { %v5064_v39 = vpack.i.bf16 %v1157_v37, %v965_v14  ;;  %v4714_v40 = vpop.f32.mrb[37].mxu1  ;;  %v5757_v37 = vsub.s32 3, %v5433_v13 }
 0x5e5   :  { %v1160_v41 = vpop.f32.mrb[38].mxu1 }
 0x5e6   :  { %5065 = vrot.lane.b32.xlu0 %v5064_v39, %s5314_s24  ;;  %v4715_v3 = vpop.f32.mrb[39].mxu1 }
 0x650   :  { %v5056_v43 = vpop.permute.xlu0 %5055 }
 0x651   :  { %v5058_v44 = vunpack.i.h.bf16 %v5056_v43  ;;  %v5057_v62 = vunpack.i.l.bf16 %v5056_v43 }
 0x653   :  { %v5061_v2 = vpop.permute.xlu1 %5060  ;;  %v1188_v17 = vsel %vm292_vm2, %v1013_v21, %v5058_v44  ;;  %v1187_v47 = vsel %vm292_vm2, %v821_v60, %v5057_v62 }
 0x654   :  { %v5063_v45 = vunpack.i.h.bf16 %v5061_v2  ;;  %v5062_v35 = vunpack.i.l.bf16 %v5061_v2  ;;  %v1298_v2 = vrot.slane %v5709_v56, %v5757_v37 }
 0x656   :  { %v1190_v50 = vsel %vm1189_vm4, %v1187_v47, %v5062_v35  ;;  %v1191_v51 = vsel %vm1189_vm4, %v1188_v17, %v5063_v45  ;;  %v5114_v17 = vld [vmem:[%s6463_s11 + $0x38] sm:$0xff]   ;;  %v4300_v47 = vld [vmem:[%s6462_s10] ss:$0 sm:$0xff] }
 0x658   :  { %v5066_v16 = vpop.permute.xlu0 %5065 }
 0x659   :  { %v5068_v42 = vunpack.i.h.bf16 %v5066_v16  ;;  %v5067_v46 = vunpack.i.l.bf16 %v5066_v16  ;;  %v5113_v16 = vld [vmem:[%s6463_s11 + $0x30] sm:$0xff]  }
 0x65b   :  { %v1194_v52 = vsel %vm1192_vm5, %v1191_v51, %v5068_v42  ;;  %v1193_v53 = vsel %vm1192_vm5, %v1190_v50, %v5067_v46 }
 0x65c   :  { %v1195_v55 = vpack.c.bf16 %v1194_v52, %v1193_v53 }
 0x65e   :  { %4721 = vmatmul.mubr.msk.bf16.vlgmr.msra.gmra.mrb[32].mxu0 %vm111_vm1, %v1195_v55 }
 0x65f   :  { %4748 = vmatprep.mubr.msk.bf16.mxu0 %vm5305_vm0, %v5304_v1  ;;  %4733 = vmatpush3.bf16.msra.mxu0 %v5107_v23 }
 0x660   :  { %4734 = vmatprep.subr.bf16.mxu0 %v5304_v1 }
 0x663   :  { %4735 = vmatpush3.bf16.msra.mxu0 %v5108_v24  ;;  %v5115_v24 = vld [vmem:[%s6458_s6 + $0x10] sm:$0xff]  }
 0x664   :  { %4736 = vmatprep.subr.bf16.mxu0 %v5304_v1 }
 0x667   :  { %4737 = vmatpush3.bf16.msra.mxu0 %v5109_v25  ;;  %v5116_v25 = vld [vmem:[%s6458_s6 + $0x18] sm:$0xff]  }
 0x668   :  { %4738 = vmatprep.subr.bf16.mxu0 %v5304_v1 }
 0x66b   :  { %4739 = vmatpush3.bf16.msra.mxu0 %v5110_v26 }
 0x66c   :  { %4740 = vmatprep.subr.bf16.mxu0 %v5304_v1 }
 0x66f   :  { %4741 = vmatpush3.bf16.msra.mxu0 %v5111_v27 }
 0x670   :  { %4742 = vmatprep.subr.bf16.mxu0 %v5304_v1 }
 0x673   :  { %4743 = vmatpush3.bf16.msra.mxu0 %v5112_v28 }
 0x674   :  { %4744 = vmatprep.subr.bf16.mxu0 %v5304_v1 }
 0x677   :  { %4745 = vmatpush3.bf16.msra.mxu0 %v5113_v16 }
 0x678   :  { %4746 = vmatprep.subr.bf16.mxu0 %v5304_v1 }
 0x67b   :  { %4747 = vmatpush3.bf16.msra.mxu0 %v5114_v17 }
 0x67c   :  { %4778 = vmatprep.subr.bf16.mxu0 %v5304_v1 }
 0x731   :  { %v1253_v58 = vpop.f32.mrb[32].mxu0 }
 0x732   :  { %v1254_v59 = vadd.f32 %v1253_v58, %v1203_v57  ;;  %v4722_v60 = vpop.f32.mrb[33].mxu0 }
 0x733   :  { %v1256_v63 = vpop.f32.mrb[34].mxu0 }
 0x734   :  { %v1257_v0 = vadd.f32 %v1256_v63, %v1203_v57  ;;  %v4723_v4 = vpop.f32.mrb[35].mxu0  ;;  %v1260_v7 = vadd.f32 %v1254_v59, %v5464_v48  ;;  %v5778_v59 = vsub.s32 1, %v5433_v13 }
 0x736   :  { %v1262_v19 = vsel %vm111_vm1, %v1260_v7, 0.0  ;;  %v1261_v5 = vadd.f32 %v1257_v0, %v5466_v49  ;;  %v5105_v49 = vld [vmem:[%s6461_s9] sm:$0xff]   ;;  %v1391_v60 = vrot.slane %v5709_v56, %v5778_v59 }
 0x737   :  { %1263 = vadd.xlane.f32.xlu1 %v1262_v19  ;;  %4725 = vmatpush3.bf16.msra.mxu1 %v5105_v49 }
 0x738   :  { %v1265_v6 = vsel %vm111_vm1, %v1261_v5, 0.0  ;;  %4726 = vmatprep.subr.bf16.mxu1 %v5304_v1 }
 0x739   :  { %1266 = vadd.xlane.f32.xlu0 %v1265_v6 }
 0x73b   :  { %4727 = vmatpush3.bf16.msra.mxu1 %v5106_v22 }
 0x73c   :  { %4752 = vmatprep.subr.bf16.mxu1 %v5304_v1 }
 0x7c4   :  { %v1264_v11 = vpop.xlane.xlu1 %1263 }
 0x7c5   :  { %v1269_v61 = vmul.f32 0.03125, %v1264_v11 }
 0x7c6   :  { %v1267_v8 = vpop.xlane.xlu0 %1266 }
 0x7c7   :  { %v1271_v12 = vsub.f32 %v1260_v7, %v1269_v61  ;;  %v1270_v14 = vmul.f32 0.03125, %v1267_v8 }
 0x7c9   :  { %v1272_v15 = vsub.f32 %v1261_v5, %v1270_v14  ;;  %v1273_v18 = vmul.f32 %v1271_v12, %v1271_v12 }
 0x7cb   :  { %v1275_v20 = vsel %vm111_vm1, %v1273_v18, 0.0  ;;  %v1274_v21 = vmul.f32 %v1272_v15, %v1272_v15 }
 0x7cc   :  { %1276 = vadd.xlane.f32.xlu0 %v1275_v20 }
 0x7cd   :  { %v1278_v48 = vsel %vm111_vm1, %v1274_v21, 0.0 }
 0x7ce   :  { %1279 = vadd.xlane.f32.xlu1 %v1278_v48 }
 0x859   :  { %v1277_v29 = vpop.xlane.xlu0 %1276 }
 0x85a   :  { %v1281_v30 = vmul.f32 0.03125, %v1277_v29 }
 0x85b   :  { %v1280_v31 = vpop.xlane.xlu1 %1279 }
 0x85c   :  { %v1283_v32 = vadd.f32 1e-05, %v1281_v30  ;;  %v1282_v10 = vmul.f32 0.03125, %v1280_v31 }
 0x85e   :  { %5177 = vrsqrt.f32 %v1283_v32  ;;  %v1284_v34 = vadd.f32 1e-05, %v1282_v10  ;;  %v5795_v32 = vsub.s32 4, %v5433_v13 }
 0x860   :  { %5179 = vrsqrt.f32 %v1284_v34  ;;  %v1512_v10 = vrot.slane %v5709_v56, %v5795_v32  ;;  %v5800_v34 = vsub.s32 5, %v5433_v13  ;;  %v4318_v13 = vld [vmem:[%s6459_s7 + $0x1] ss:$0 sm:$0xff] }
 0x868   :  { %v5178_v39 = vpop.eup %5177 }
 0x869   :  { %v1287_v40 = vmul.f32 %v5178_v39, %v1271_v12 }
 0x86a   :  { %v5180_v41 = vpop.eup %5179 }
 0x86b   :  { %v1293_v3 = vmul.f32 %v1292_v36, %v1287_v40  ;;  %v1288_v43 = vmul.f32 %v5180_v41, %v1272_v15 }
 0x86d   :  { %v1294_v44 = vmul.f32 %v1292_v36, %v1288_v43  ;;  %v1299_v62 = vadd.f32 %v1298_v2, %v1293_v3  ;;  %v1518_v43 = vrot.slane %v5709_v56, %v5800_v34 }
 0x86f   :  { %v1300_v45 = vadd.f32 %v1298_v2, %v1294_v44 }
 0x871   :  { %v1301_v35 = vpack.c.bf16 %v1300_v45, %v1299_v62 }
 0x873   :  { %4729 = vmatmul.mubr.msk.bf16.vlgmr.msra.gmra.mrb[40].mxu1 %vm111_vm1, %v1301_v35 }
 0x874   :  { %4756 = vmatprep.mubr.msk.bf16.mxu1 %vm5305_vm0, %v5304_v1  ;;  %4753 = vmatpush3.bf16.msra.mxu1 %v5115_v24 }
 0x875   :  { %4754 = vmatprep.subr.bf16.mxu1 %v5304_v1 }
 0x878   :  { %4755 = vmatpush3.bf16.msra.mxu1 %v5116_v25 }
 0x879   :  { %4760 = vmatprep.subr.bf16.mxu1 %v5304_v1 }
 0x946   :  { %v1362_v42 = vpop.f32.mrb[40].mxu1 }
 0x947   :  { %v1363_v46 = vadd.f32 %v4300_v47, %v1362_v42  ;;  %v4730_v50 = vpop.f32.mrb[41].mxu1 }
 0x948   :  { %v1365_v51 = vpop.f32.mrb[42].mxu1 }
 0x949   :  { %v1366_v52 = vadd.f32 %v4300_v47, %v1365_v51  ;;  %v4731_v53 = vpop.f32.mrb[43].mxu1  ;;  %v1369_v55 = vmax.f32 %v1363_v46, 0.0 }
 0x94b   :  { %v1370_v57 = vmax.f32 %v1366_v52, 0.0 }
 0x94d   :  { %v1371_v58 = vpack.c.bf16 %v1370_v57, %v1369_v55 }
 0x94f   :  { %4749 = vmatmul.mubr.bf16.vlgmr.msra.gmra.mrb[36].mxu0 %v1371_v58 }
 0x950   :  { %4780 = vmatprep.mubr.msk.bf16.mxu0 %vm5305_vm0, %v5304_v1 }
 0xa22   :  { %v1474_v63 = vpop.f32.mrb[36].mxu0 }
 0xa23   :  { %v1475_v0 = vadd.f32 %v1474_v63, %v1391_v60  ;;  %v4750_v4 = vpop.f32.mrb[37].mxu0 }
 0xa24   :  { %v1477_v7 = vpop.f32.mrb[38].mxu0 }
 0xa25   :  { %v1478_v19 = vadd.f32 %v1477_v7, %v1391_v60  ;;  %v4751_v5 = vpop.f32.mrb[39].mxu0  ;;  %v1481_v6 = vadd.f32 %v1475_v0, %v1299_v62 }
 0xa27   :  { %v1483_v11 = vsel %vm111_vm1, %v1481_v6, 0.0  ;;  %v1482_v61 = vadd.f32 %v1478_v19, %v1300_v45 }
 0xa28   :  { %1484 = vadd.xlane.f32.xlu0 %v1483_v11 }
 0xa29   :  { %v1486_v8 = vsel %vm111_vm1, %v1482_v61, 0.0 }
 0xa2a   :  { %1487 = vadd.xlane.f32.xlu1 %v1486_v8 }
 0xab5   :  { %v1485_v12 = vpop.xlane.xlu0 %1484 }
 0xab6   :  { %v1489_v14 = vmul.f32 0.03125, %v1485_v12 }
 0xab7   :  { %v1488_v15 = vpop.xlane.xlu1 %1487 }
 0xab8   :  { %v1491_v18 = vsub.f32 %v1481_v6, %v1489_v14  ;;  %v1490_v20 = vmul.f32 0.03125, %v1488_v15 }
 0xaba   :  { %v1492_v21 = vsub.f32 %v1482_v61, %v1490_v20  ;;  %v1493_v48 = vmul.f32 %v1491_v18, %v1491_v18 }
 0xabc   :  { %v1495_v49 = vsel %vm111_vm1, %v1493_v48, 0.0  ;;  %v1494_v22 = vmul.f32 %v1492_v21, %v1492_v21 }
 0xabd   :  { %1496 = vadd.xlane.f32.xlu0 %v1495_v49 }
 0xabe   :  { %v1498_v23 = vsel %vm111_vm1, %v1494_v22, 0.0 }
 0xabf   :  { %1499 = vadd.xlane.f32.xlu1 %v1498_v23 }
 0xb4a   :  { %v1497_v26 = vpop.xlane.xlu0 %1496 }
 0xb4b   :  { %v1501_v27 = vmul.f32 0.03125, %v1497_v26 }
 0xb4c   :  { %v1500_v28 = vpop.xlane.xlu1 %1499 }
 0xb4d   :  { %v1503_v29 = vadd.f32 1e-05, %v1501_v27  ;;  %v1502_v30 = vmul.f32 0.03125, %v1500_v28 }
 0xb4f   :  { %5181 = vrsqrt.f32 %v1503_v29  ;;  %v1504_v31 = vadd.f32 1e-05, %v1502_v30 }
 0xb51   :  { %5183 = vrsqrt.f32 %v1504_v31 }
 0xb59   :  { %v5182_v36 = vpop.eup %5181 }
 0xb5a   :  { %v1507_v39 = vmul.f32 %v5182_v36, %v1491_v18 }
 0xb5b   :  { %v5184_v40 = vpop.eup %5183 }
 0xb5c   :  { %v1513_v41 = vmul.f32 %v1512_v10, %v1507_v39  ;;  %v1508_v3 = vmul.f32 %v5184_v40, %v1492_v21 }
 0xb5e   :  { %v1514_v2 = vmul.f32 %v1512_v10, %v1508_v3  ;;  %v5804_v44 = vadd.f32 %v1518_v43, %v1513_v41 }
 0xb60   :  { %v5806_v62 = vadd.f32 %v1518_v43, %v1514_v2 }
 0xb62   :  { %v1523_v45 = vpack.c.bf16 %v5806_v62, %v5804_v44 }
 0xb64   :  { %4757 = vmatmul.mubr.msk.bf16.vlgmr.msra.gmra.mrb[44].mxu1 %vm111_vm1, %v1523_v45 }
 0xb65   :  { %4762 = vmatprep.mubr.msk.bf16.mxu1 %vm5305_vm0, %v5304_v1 }
 0xc37   :  { %v1586_v35 = vpop.f32.mrb[44].mxu1 }
 0xc38   :  { %v1587_v16 = vadd.f32 %v4318_v13, %v1586_v35  ;;  %v4758_v56 = vpop.f32.mrb[45].mxu1 }
 0xc39   :  { %v1589_v17 = vpop.f32.mrb[46].mxu1 }
 0xc3a   :  { %1601 = vrot.lane.b32.xlu1 %v1587_v16, %s5309_s16  ;;  %1595 = vrot.lane.b32.xlu0 %v1587_v16, %s5308_s1  ;;  %v4759_v47 = vpop.f32.mrb[47].mxu1  ;;  %v1590_v42 = vadd.f32 %v4318_v13, %v1589_v17  ;;  %v5822_v46 = vpack.c.bf16 %v1587_v16, %v1587_v16 }
 0xc3c   :  { %v5836_v60 = vpack.c.bf16 %v1590_v42, %v1590_v42 }
 0xc3e   :  { %1607 = vrot.lane.b32.xlu1 %v1587_v16, %s5307_s30  ;;  %1597 = vrot.lane.b32.xlu0 %v1590_v42, %s5308_s1 }
 0xc42   :  { %1603 = vrot.lane.b32.xlu1 %v1590_v42, %s5309_s16  ;;  %1609 = vrot.lane.b32.xlu0 %v1590_v42, %s5307_s30 }
 0xc46   :  { %1622 = vrot.lane.b32.xlu1 %v5822_v46, %s5310_s17 }
 0xcac   :  { %v1602_v50 = vpop.permute.xlu1 %1601  ;;  %v1596_v51 = vpop.permute.xlu0 %1595 }
 0xcad   :  { %v5826_v52 = vpack.c.bf16 %v1602_v50, %v1602_v50  ;;  %v5828_v53 = vpack.c.bf16 %v1596_v51, %v1596_v51 }
 0xcaf   :  { %1720 = vrot.lane.b32.xlu1 %v5826_v52, %s5310_s17  ;;  %1671 = vrot.lane.b32.xlu0 %v5828_v53, %s5310_s17 }
 0xcb0   :  { %v1608_v55 = vpop.permute.xlu1 %1607  ;;  %v1598_v57 = vpop.permute.xlu0 %1597 }
 0xcb1   :  { %v5834_v58 = vpack.c.bf16 %v1608_v55, %v1608_v55  ;;  %v5842_v0 = vpack.c.bf16 %v1598_v57, %v1598_v57 }
 0xcb3   :  { %1769 = vrot.lane.b32.xlu0 %v5834_v58, %s5310_s17  ;;  %1818 = vrot.lane.b32.xlu1 %v5836_v60, %s5310_s17 }
 0xcb4   :  { %v1604_v63 = vpop.permute.xlu1 %1603  ;;  %v1610_v7 = vpop.permute.xlu0 %1609 }
 0xcb5   :  { %v5844_v4 = vpack.c.bf16 %v1604_v63, %v1604_v63  ;;  %v5850_v5 = vpack.c.bf16 %v1610_v7, %v1610_v7 }
 0xcb7   :  { %1867 = vrot.lane.b32.xlu0 %v5842_v0, %s5310_s17  ;;  %1916 = vrot.lane.b32.xlu1 %v5844_v4, %s5310_s17 }
 0xcb8   :  { %v1623_v19 = vpop.permute.xlu1 %1622 }
 0xcb9   :  { %v1628_v6 = vsel %vm292_vm2, %v1623_v19, 0 }
 0xcba   :  { %4761 = vmatpush3.bf16.xpose.msra.mxu1 %v1628_v6 }
 0xcbb   :  { %1965 = vrot.lane.b32.xlu0 %v5850_v5, %s5310_s17  ;;  %4766 = vmatprep.subr.bf16.mxu1 %v5304_v1 }
 0xcc1   :  { %4763 = vmatmul.mubr.msk.bf16.vlgmr.msra.gmra.mrb[48].mxu1 %vm292_vm2, %v5822_v46 }
 0xcc2   :  { %4768 = vmatprep.mubr.msk.bf16.mxu1 %vm5305_vm0, %v5304_v1 }
 0xd21   :  { %v1672_v11 = vpop.permute.xlu0 %1671  ;;  %v1721_v14 = vpop.permute.xlu1 %1720 }
 0xd22   :  { %v1677_v61 = vsel %vm292_vm2, %v1672_v11, 0  ;;  %v1726_v15 = vsel %vm292_vm2, %v1721_v14, 0 }
 0xd23   :  { %4767 = vmatpush3.bf16.xpose.msra.mxu1 %v1677_v61 }
 0xd24   :  { %4772 = vmatprep.subr.bf16.mxu1 %v5304_v1 }
 0xd25   :  { %v1770_v8 = vpop.permute.xlu0 %1769  ;;  %v1819_v21 = vpop.permute.xlu1 %1818 }
 0xd26   :  { %v1775_v12 = vsel %vm292_vm2, %v1770_v8, 0  ;;  %v1824_v48 = vsel %vm292_vm2, %v1819_v21, 0 }
 0xd27   :  { %4779 = vmatpush3.bf16.xpose.msra.mxu0 %v1775_v12 }
 0xd28   :  { %4790 = vmatprep.subr.bf16.mxu0 %v5304_v1 }
 0xd29   :  { %v1868_v18 = vpop.permute.xlu0 %1867  ;;  %v1917_v23 = vpop.permute.xlu1 %1916 }
 0xd2a   :  { %4769 = vmatmul.mubr.msk.bf16.vlgmr.msra.gmra.mrb[52].mxu1 %vm292_vm2, %v5828_v53  ;;  %v1873_v20 = vsel %vm292_vm2, %v1868_v18, 0  ;;  %v1922_v24 = vsel %vm292_vm2, %v1917_v23, 0 }
 0xd2b   :  { %4773 = vmatpush3.bf16.xpose.msra.mxu1 %v1726_v15  ;;  %4774 = vmatprep.mubr.msk.bf16.mxu1 %vm5305_vm0, %v5304_v1 }
 0xd2c   :  { %4784 = vmatprep.subr.bf16.mxu1 %v5304_v1 }
 0xd2d   :  { %v1966_v49 = vpop.permute.xlu0 %1965 }
 0xd2e   :  { %4781 = vmatmul.mubr.msk.bf16.vlgmr.msra.gmra.mrb[40].mxu0 %vm292_vm2, %v5834_v58  ;;  %v1971_v22 = vsel %vm292_vm2, %v1966_v49, 0 }
 0xd2f   :  { %4791 = vmatpush3.bf16.xpose.msra.mxu0 %v1873_v20  ;;  %4792 = vmatprep.mubr.msk.bf16.mxu0 %vm5305_vm0, %v5304_v1 }
 0xd30   :  { %4802 = vmatprep.subr.bf16.mxu0 %v5304_v1 }
 0xd32   :  { %4775 = vmatmul.mubr.msk.bf16.vlgmr.msra.gmra.mrb[56].mxu1 %vm292_vm2, %v5826_v52 }
 0xd33   :  { %4785 = vmatpush3.bf16.xpose.msra.mxu1 %v1824_v48  ;;  %4786 = vmatprep.mubr.msk.bf16.mxu1 %vm5305_vm0, %v5304_v1 }
 0xd34   :  { %4796 = vmatprep.subr.bf16.mxu1 %v5304_v1 }
 0xd36   :  { %4793 = vmatmul.mubr.msk.bf16.vlgmr.msra.gmra.mrb[44].mxu0 %vm292_vm2, %v5842_v0 }
 0xd37   :  { %4803 = vmatpush3.bf16.xpose.msra.mxu0 %v1971_v22  ;;  %4804 = vmatprep.mubr.msk.bf16.mxu0 %vm5305_vm0, %v5304_v1 }
 0xd38   :  { %4814 = vmatprep.subr.bf16.mxu0 %v5304_v1 }
 0xd3a   :  { %4787 = vmatmul.mubr.msk.bf16.vlgmr.msra.gmra.mrb[60].mxu1 %vm292_vm2, %v5836_v60 }
 0xd3b   :  { %4797 = vmatpush3.bf16.xpose.msra.mxu1 %v1922_v24  ;;  %4798 = vmatprep.mubr.msk.bf16.mxu1 %vm5305_vm0, %v5304_v1 }
 0xd3c   :  { %4808 = vmatprep.subr.bf16.mxu1 %v5304_v1 }
 0xd3e   :  { %4805 = vmatmul.mubr.msk.bf16.vlgmr.msra.gmra.mrb[48].mxu0 %vm292_vm2, %v5850_v5 }
 0xd3f   :  { %4816 = vmatprep.mubr.msk.bf16.mxu0 %vm5305_vm0, %v5304_v1 }
 0xd42   :  { %4799 = vmatmul.mubr.msk.bf16.vlgmr.msra.gmra.mrb[64].mxu1 %vm292_vm2, %v5844_v4 }
 0xd43   :  { %4810 = vmatprep.mubr.msk.bf16.mxu1 %vm5305_vm0, %v5304_v1 }
 0xd94   :  { %v1664_v25 = vpop.f32.mrb[48].mxu1 }
 0xd95   :  { %v1665_v26 = vadd.f32 %v1664_v25, %v5564_v33  ;;  %v4764_v27 = vpop.f32.mrb[49].mxu1 }
 0xd96   :  { %v1667_v28 = vpop.f32.mrb[50].mxu1 }
 0xd97   :  { %v4765_v29 = vpop.f32.mrb[51].mxu1  ;;  %v2013_v30 = vsel %vm292_vm2, %v1665_v26, -inf }
 0xd98   :  { %2014 = vmax.xlane.f32.xlu1 %v2013_v30 }
 0xdfd   :  { %v1713_v31 = vpop.f32.mrb[52].mxu1 }
 0xdfe   :  { %v1714_v10 = vadd.f32 %v1713_v31, %v5564_v33  ;;  %v4770_v36 = vpop.f32.mrb[53].mxu1 }
 0xdff   :  { %v1716_v39 = vpop.f32.mrb[54].mxu1 }
 0xe00   :  { %v4771_v40 = vpop.f32.mrb[55].mxu1  ;;  %v2016_v41 = vsel %vm292_vm2, %v1714_v10, -inf }
 0xe01   :  { %v1811_v3 = vpop.f32.mrb[40].mxu0  ;;  %2017 = vmax.xlane.f32.xlu0 %v2016_v41 }
 0xe02   :  { %v1812_v43 = vadd.f32 %v1811_v3, %v5564_v33  ;;  %v4782_v2 = vpop.f32.mrb[41].mxu0 }
 0xe03   :  { %v1814_v45 = vpop.f32.mrb[42].mxu0 }
 0xe04   :  { %v4783_v13 = vpop.f32.mrb[43].mxu0  ;;  %v2022_v35 = vsel %vm292_vm2, %v1812_v43, -inf }
 0xe05   :  { %2023 = vmax.xlane.f32.xlu1 %v2022_v35  ;;  %v1762_v16 = vpop.f32.mrb[56].mxu1 }
 0xe06   :  { %v1763_v56 = vadd.f32 %v1762_v16, %v5564_v33  ;;  %v4776_v17 = vpop.f32.mrb[57].mxu1 }
 0xe07   :  { %v1765_v47 = vpop.f32.mrb[58].mxu1 }
 0xe08   :  { %v4777_v42 = vpop.f32.mrb[59].mxu1  ;;  %v2019_v50 = vsel %vm292_vm2, %v1763_v56, -inf }
 0xe09   :  { %v1909_v51 = vpop.f32.mrb[44].mxu0  ;;  %2020 = vmax.xlane.f32.xlu0 %v2019_v50 }
 0xe0a   :  { %v1910_v55 = vadd.f32 %v1909_v51, %v5574_v54  ;;  %v4794_v57 = vpop.f32.mrb[45].mxu0 }
 0xe0b   :  { %v1912_v63 = vpop.f32.mrb[46].mxu0 }
 0xe0c   :  { %v4795_v7 = vpop.f32.mrb[47].mxu0  ;;  %v2028_v19 = vsel %vm292_vm2, %v1910_v55, -inf }
 0xe0d   :  { %2029 = vmax.xlane.f32.xlu1 %v2028_v19  ;;  %v1860_v6 = vpop.f32.mrb[60].mxu1 }
 0xe0e   :  { %v5913_v11 = vadd.f32 %v1860_v6, %v5574_v54  ;;  %v4788_v61 = vpop.f32.mrb[61].mxu1 }
 0xe0f   :  { %v1863_v8 = vpop.f32.mrb[62].mxu1 }
 0xe10   :  { %v4789_v12 = vpop.f32.mrb[63].mxu1  ;;  %v2025_v14 = vsel %vm292_vm2, %v5913_v11, -inf }
 0xe11   :  { %v2007_v15 = vpop.f32.mrb[48].mxu0  ;;  %2026 = vmax.xlane.f32.xlu0 %v2025_v14 }
 0xe12   :  { %v2008_v18 = vadd.f32 %v2007_v15, %v5574_v54  ;;  %v4806_v20 = vpop.f32.mrb[49].mxu0 }
 0xe13   :  { %v2010_v21 = vpop.f32.mrb[50].mxu0 }
 0xe14   :  { %v4807_v48 = vpop.f32.mrb[51].mxu0  ;;  %v2034_v49 = vsel %vm292_vm2, %v2008_v18, -inf }
 0xe15   :  { %2035 = vmax.xlane.f32.xlu1 %v2034_v49  ;;  %v1958_v22 = vpop.f32.mrb[64].mxu1 }
 0xe16   :  { %v4800_v23 = vpop.f32.mrb[65].mxu1  ;;  %v1959_v27 = vadd.f32 %v1958_v22, %v5574_v54 }
 0xe17   :  { %v1961_v24 = vpop.f32.mrb[66].mxu1 }
 0xe18   :  { %v4801_v25 = vpop.f32.mrb[67].mxu1  ;;  %v2031_v28 = vsel %vm292_vm2, %v1959_v27, -inf }
 0xe25   :  { %v2015_v29 = vpop.xlane.xlu1 %2014 }
 0xe26   :  { %2157 = vrot.lane.b32.xlu1 %v5828_v53, %s5311_s18  ;;  %v2037_v30 = vsub.f32 %v1665_v26, %v2015_v29 }
 0xe27   :  { %2109 = vrot.lane.b32.xlu0 %v5822_v46, %s5311_s18 }
 0xe28   :  { %v2045_v53 = vmul.f32 1.442695, %v2037_v30 }
 0xe2a   :  { %2205 = vrot.lane.b32.xlu1 %v5826_v52, %s5311_s18  ;;  %5185 = vpow2.f32 %v2045_v53 }
 0xe2e   :  { %2301 = vrot.lane.b32.xlu1 %v5836_v60, %s5311_s18 }
 0xe34   :  { %v5931_v31 = vpop.eup %5185 }
 0xe35   :  { %v2061_v46 = vsel %vm292_vm2, %v5931_v31, 0.0 }
 0xe46   :  { %2032 = vmax.xlane.f32.xlu0 %v2031_v28 }
 0xe5c   :  { %2253 = vrot.lane.b32.xlu0 %v5834_v58, %s5311_s18 }
 0xe7b   :  { %2062 = vadd.xlane.f32.xlu0 %v2061_v46 }
 0xe8e   :  { %v2018_v52 = vpop.xlane.xlu0 %2017 }
 0xe8f   :  { %v2038_v60 = vsub.f32 %v1714_v10, %v2018_v52 }
 0xe91   :  { %v2047_v36 = vmul.f32 1.442695, %v2038_v60 }
 0xe92   :  { %v2024_v39 = vpop.xlane.xlu1 %2023 }
 0xe93   :  { %5187 = vpow2.f32 %v2047_v36  ;;  %v2040_v40 = vsub.f32 %v1812_v43, %v2024_v39 }
 0xe95   :  { %v2051_v41 = vmul.f32 1.442695, %v2040_v40 }
 0xe96   :  { %v2021_v3 = vpop.xlane.xlu0 %2020 }
 0xe97   :  { %5189 = vpow2.f32 %v2051_v41  ;;  %v2039_v58 = vsub.f32 %v1763_v56, %v2021_v3 }
 0xe99   :  { %v2049_v2 = vmul.f32 1.442695, %v2039_v58 }
 0xe9a   :  { %v2030_v26 = vpop.xlane.xlu1 %2029 }
 0xe9b   :  { %5191 = vpow2.f32 %v2049_v2  ;;  %v2042_v45 = vsub.f32 %v1910_v55, %v2030_v26 }
 0xe9d   :  { %v5935_v13 = vpop.eup %5187  ;;  %v2055_v35 = vmul.f32 1.442695, %v2042_v45 }
 0xe9e   :  { %v2027_v16 = vpop.xlane.xlu0 %2026  ;;  %v2064_v17 = vsel %vm292_vm2, %v5935_v13, 0.0 }
 0xe9f   :  { %5193 = vpow2.f32 %v2055_v35  ;;  %2065 = vadd.xlane.f32.xlu1 %v2064_v17  ;;  %v2041_v12 = vsub.f32 %v5913_v11, %v2027_v16 }
 0xea1   :  { %v5939_v10 = vpop.eup %5189  ;;  %v2053_v14 = vmul.f32 1.442695, %v2041_v12 }
 0xea2   :  { %v2036_v43 = vpop.xlane.xlu1 %2035  ;;  %v2110_v47 = vpop.permute.xlu0 %2109  ;;  %v2070_v56 = vsel %vm292_vm2, %v5939_v10, 0.0 }
 0xea3   :  { %v2044_v42 = vsub.f32 %v2008_v18, %v2036_v43  ;;  %v2115_v50 = vsel %vm783_vm3, %v2110_v47, 0  ;;  %2071 = vadd.xlane.f32.xlu1 %v2070_v56 }
 0xea4   :  { %4809 = vmatpush3.bf16.msra.mxu1 %v2115_v50 }
 0xea5   :  { %v5944_v51 = vpop.eup %5191  ;;  %v2059_v55 = vmul.f32 1.442695, %v2044_v42  ;;  %4820 = vmatprep.subr.bf16.mxu1 %v5304_v1 }
 0xea6   :  { %v2158_v57 = vpop.permute.xlu1 %2157  ;;  %v2067_v63 = vsel %vm292_vm2, %v5944_v51, 0.0 }
 0xea7   :  { %5195 = vpow2.f32 %v2059_v55  ;;  %v2163_v7 = vsel %vm783_vm3, %v2158_v57, 0  ;;  %2068 = vadd.xlane.f32.xlu0 %v2067_v63 }
 0xea8   :  { %4815 = vmatpush3.bf16.msra.mxu0 %v2163_v7  ;;  %5197 = vpow2.f32 %v2053_v14 }
 0xea9   :  { %v5950_v19 = vpop.eup %5193  ;;  %4826 = vmatprep.subr.bf16.mxu0 %v5304_v1 }
 0xeaa   :  { %v2076_v6 = vsel %vm292_vm2, %v5950_v19, 0.0  ;;  %v2206_v24 = vpop.permute.xlu1 %2205 }
 0xeab   :  { %2077 = vadd.xlane.f32.xlu1 %v2076_v6 }
 0xeae   :  { %v2302_v28 = vpop.permute.xlu1 %2301 }
 0xeaf   :  { %v2307_v45 = vsel %vm783_vm3, %v2302_v28, 0 }
 0xeb1   :  { %v5955_v61 = vpop.eup %5195 }
 0xeb2   :  { %v2082_v8 = vsel %vm292_vm2, %v5955_v61, 0.0  ;;  %v5964_v21 = vpop.eup %5197 }
 0xeb3   :  { %2083 = vadd.xlane.f32.xlu1 %v2082_v8  ;;  %v2073_v48 = vsel %vm292_vm2, %v5964_v21, 0.0 }
 0xebd   :  { %2349 = vrot.lane.b32.xlu0 %v5842_v0, %s5311_s18 }
 0xec4   :  { %2397 = vrot.lane.b32.xlu1 %v5844_v4, %s5311_s18 }
 0xed3   :  { %v2033_v15 = vpop.xlane.xlu0 %2032 }
 0xed4   :  { %v2043_v18 = vsub.f32 %v1959_v27, %v2033_v15  ;;  %v2211_v27 = vsel %vm783_vm3, %v2206_v24, 0 }
 0xed6   :  { %v2057_v20 = vmul.f32 1.442695, %v2043_v18 }
 0xed7   :  { %v2254_v4 = vpop.permute.xlu0 %2253 }
 0xed8   :  { %5199 = vpow2.f32 %v2057_v20  ;;  %v2259_v36 = vsel %vm783_vm3, %v2254_v4, 0 }
 0xedc   :  { %2074 = vadd.xlane.f32.xlu0 %v2073_v48 }
 0xee2   :  { %v5968_v49 = vpop.eup %5199 }
 0xee3   :  { %v2079_v0 = vsel %vm292_vm2, %v5968_v49, 0.0 }
 0xee4   :  { %2080 = vadd.xlane.f32.xlu0 %v2079_v0 }
 0xefa   :  { %2445 = vrot.lane.b32.xlu0 %v5850_v5, %s5311_s18 }
 0xf08   :  { %v2063_v11 = vpop.xlane.xlu0 %2062 }
 0xf09   :  { %5201 = vrcp.f32 %v2063_v11 }
 0xf13   :  { %v5202_v22 = vpop.eup %5201 }
 0xf14   :  { %v2093_v23 = vmul.f32 %v5202_v22, %v5931_v31 }
 0xf16   :  { %v2101_v25 = vpack.c.bf16 %v2093_v23, %v2093_v23 }
 0xf18   :  { %4811 = vmatmul.mubr.msk.bf16.vlgmr.msra.gmra.mrb[68].mxu1 %vm292_vm2, %v2101_v25 }
 0xf19   :  { %4821 = vmatpush3.bf16.msra.mxu1 %v2211_v27  ;;  %4822 = vmatprep.mubr.msk.bf16.mxu1 %vm5305_vm0, %v5304_v1 }
 0xf1a   :  { %4832 = vmatprep.subr.bf16.mxu1 %v5304_v1 }
 0xf2c   :  { %v2066_v5 = vpop.xlane.xlu1 %2065 }
 0xf2d   :  { %5203 = vrcp.f32 %v2066_v5 }
 0xf30   :  { %v2072_v29 = vpop.xlane.xlu1 %2071 }
 0xf31   :  { %5205 = vrcp.f32 %v2072_v29 }
 0xf34   :  { %v2069_v30 = vpop.xlane.xlu0 %2068 }
 0xf35   :  { %5207 = vrcp.f32 %v2069_v30 }
 0xf37   :  { %v5204_v53 = vpop.eup %5203 }
 0xf38   :  { %v2094_v31 = vmul.f32 %v5204_v53, %v5935_v13  ;;  %v2078_v46 = vpop.xlane.xlu1 %2077  ;;  %v2350_v3 = vpop.permute.xlu0 %2349 }
 0xf39   :  { %5209 = vrcp.f32 %v2078_v46  ;;  %v2355_v13 = vsel %vm783_vm3, %v2350_v3, 0 }
 0xf3a   :  { %v2102_v52 = vpack.c.bf16 %v2094_v31, %v2094_v31  ;;  %v5117_v31 = vld [vmem:[%s6460_s8 + $0x10] sm:$0xff]  }
 0xf3b   :  { %v5206_v60 = vpop.eup %5205 }
 0xf3c   :  { %4817 = vmatmul.mubr.msk.bf16.vlgmr.msra.gmra.mrb[52].mxu0 %vm292_vm2, %v2102_v52  ;;  %v2096_v39 = vmul.f32 %v5206_v60, %v5939_v10  ;;  %v5118_v52 = vld [vmem:[%s6460_s8 + $0x18] sm:$0xff]  }
 0xf3d   :  { %4827 = vmatpush3.bf16.msra.mxu0 %v2259_v36  ;;  %4828 = vmatprep.mubr.msk.bf16.mxu0 %vm5305_vm0, %v5304_v1 }
 0xf3e   :  { %4838 = vmatprep.subr.bf16.mxu0 %v5304_v1  ;;  %v2104_v2 = vpack.c.bf16 %v2096_v39, %v2096_v39 }
 0xf3f   :  { %v5208_v40 = vpop.eup %5207 }
 0xf40   :  { %v2095_v41 = vmul.f32 %v5208_v40, %v5944_v51  ;;  %v2084_v17 = vpop.xlane.xlu1 %2083 }
 0xf41   :  { %5211 = vrcp.f32 %v2084_v17 }
 0xf42   :  { %v2103_v58 = vpack.c.bf16 %v2095_v41, %v2095_v41 }
 0xf43   :  { %v5210_v26 = vpop.eup %5209 }
 0xf44   :  { %4823 = vmatmul.mubr.msk.bf16.vlgmr.msra.gmra.mrb[72].mxu1 %vm292_vm2, %v2103_v58  ;;  %4829 = vmatmul.mubr.msk.bf16.vlgmr.msra.gmra.mrb[56].mxu0 %vm292_vm2, %v2104_v2  ;;  %v2098_v35 = vmul.f32 %v5210_v26, %v5950_v19  ;;  %v2398_v55 = vpop.permute.xlu1 %2397 }
 0xf45   :  { %4833 = vmatpush3.bf16.msra.mxu1 %v2307_v45  ;;  %4839 = vmatpush3.bf16.msra.mxu0 %v2355_v13  ;;  %v2403_v19 = vsel %vm783_vm3, %v2398_v55, 0 }
 0xf46   :  { %4840 = vmatprep.mubr.msk.bf16.mxu0 %vm5305_vm0, %v5304_v1  ;;  %4850 = vmatprep.subr.bf16.mxu0 %v5304_v1  ;;  %v2106_v16 = vpack.c.bf16 %v2098_v35, %v2098_v35 }
 0xf47   :  { %4834 = vmatprep.mubr.msk.bf16.mxu1 %vm5305_vm0, %v5304_v1  ;;  %4844 = vmatprep.subr.bf16.mxu1 %v5304_v1 }
 0xf4b   :  { %v5212_v43 = vpop.eup %5211 }
 0xf4c   :  { %4841 = vmatmul.mubr.msk.bf16.vlgmr.msra.gmra.mrb[60].mxu0 %vm292_vm2, %v2106_v16  ;;  %v2100_v42 = vmul.f32 %v5212_v43, %v5955_v61 }
 0xf4d   :  { %4852 = vmatprep.mubr.msk.bf16.mxu0 %vm5305_vm0, %v5304_v1 }
 0xf4e   :  { %v2108_v7 = vpack.c.bf16 %v2100_v42, %v2100_v42 }
 0xf69   :  { %v2075_v10 = vpop.xlane.xlu0 %2074 }
 0xf6a   :  { %5213 = vrcp.f32 %v2075_v10 }
 0xf71   :  { %v2081_v47 = vpop.xlane.xlu0 %2080 }
 0xf72   :  { %5215 = vrcp.f32 %v2081_v47 }
 0xf74   :  { %v5214_v56 = vpop.eup %5213 }
 0xf75   :  { %v2097_v50 = vmul.f32 %v5214_v56, %v5964_v21  ;;  %v2446_v51 = vpop.permute.xlu0 %2445 }
 0xf76   :  { %v2451_v57 = vsel %vm783_vm3, %v2446_v51, 0 }
 0xf77   :  { %4851 = vmatpush3.bf16.msra.mxu0 %v2451_v57  ;;  %v2105_v63 = vpack.c.bf16 %v2097_v50, %v2097_v50 }
 0xf78   :  { %4864 = vmatprep.subr.bf16.mxu0 %v5304_v1 }
 0xf79   :  { %4835 = vmatmul.mubr.msk.bf16.vlgmr.msra.gmra.mrb[76].mxu1 %vm292_vm2, %v2105_v63 }
 0xf7a   :  { %4845 = vmatpush3.bf16.msra.mxu1 %v2403_v19  ;;  %4853 = vmatmul.mubr.msk.bf16.vlgmr.msra.gmra.mrb[64].mxu0 %vm292_vm2, %v2108_v7 }
 0xf7b   :  { %4846 = vmatprep.mubr.msk.bf16.mxu1 %vm5305_vm0, %v5304_v1  ;;  %4856 = vmatprep.subr.bf16.mxu1 %v5304_v1 }
 0xf7c   :  { %v5216_v6 = vpop.eup %5215  ;;  %4868 = vmatprep.mubr.msk.bf16.mxu0 %vm5305_vm0, %v5304_v1 }
 0xf7d   :  { %v2099_v61 = vmul.f32 %v5216_v6, %v5968_v49 }
 0xf7f   :  { %v2107_v8 = vpack.c.bf16 %v2099_v61, %v2099_v61 }
 0xf81   :  { %4847 = vmatmul.mubr.msk.bf16.vlgmr.msra.gmra.mrb[80].mxu1 %vm292_vm2, %v2107_v8 }
 0xf82   :  { %4860 = vmatprep.mubr.msk.bf16.mxu1 %vm5305_vm0, %v5304_v1  ;;  %4857 = vmatpush3.bf16.msra.mxu1 %v5117_v31  ;;  %v5120_v31 = vld [vmem:[%s6461_s9 + $0x18] sm:$0xff]  }
 0xf83   :  { %4858 = vmatprep.subr.bf16.mxu1 %v5304_v1 }
 0xf86   :  { %4859 = vmatpush3.bf16.msra.mxu1 %v5118_v52  ;;  %v5122_v52 = vld [vmem:[%s6463_s11 + $0x48] sm:$0xff]  }
 0xf87   :  { %4872 = vmatprep.subr.bf16.mxu1 %v5304_v1 }
 0xfeb   :  { %v2151_v12 = vpop.f32.mrb[68].mxu1 }
 0xfec   :  { %v4812_v14 = vpop.f32.mrb[69].mxu1 }
 0xfed   :  { %v2154_v15 = vpop.f32.mrb[70].mxu1 }
 0xfee   :  { %v4813_v18 = vpop.f32.mrb[71].mxu1 }
0x100f   :  { %v2199_v20 = vpop.f32.mrb[52].mxu0 }
0x1010   :  { %v4818_v21 = vpop.f32.mrb[53].mxu0 }
0x1011   :  { %v2202_v48 = vpop.f32.mrb[54].mxu0 }
0x1012   :  { %v4819_v0 = vpop.f32.mrb[55].mxu0 }
0x1017   :  { %v2247_v4 = vpop.f32.mrb[72].mxu1  ;;  %v2295_v11 = vpop.f32.mrb[56].mxu0 }
0x1018   :  { %v4824_v22 = vpop.f32.mrb[73].mxu1  ;;  %v4830_v23 = vpop.f32.mrb[57].mxu0 }
0x1019   :  { %v2250_v24 = vpop.f32.mrb[74].mxu1  ;;  %v2298_v49 = vpop.f32.mrb[58].mxu0 }
0x101a   :  { %v4825_v25 = vpop.f32.mrb[75].mxu1  ;;  %v4831_v27 = vpop.f32.mrb[59].mxu0 }
0x101f   :  { %v2391_v28 = vpop.f32.mrb[60].mxu0 }
0x1020   :  { %v5069_v5 = vpack.i.bf16 %v2391_v28, %v2199_v20  ;;  %v4842_v29 = vpop.f32.mrb[61].mxu0 }
0x1021   :  { %v2394_v30 = vpop.f32.mrb[62].mxu0 }
0x1022   :  { %5070 = vrot.lane.b32.xlu1 %v5069_v5, %s5312_s22  ;;  %v4843_v53 = vpop.f32.mrb[63].mxu0 }
0x104c   :  { %v2343_v46 = vpop.f32.mrb[76].mxu1 }
0x104d   :  { %v4836_v60 = vpop.f32.mrb[77].mxu1  ;;  %v2487_v36 = vpop.f32.mrb[64].mxu0 }
0x104e   :  { %v5079_v39 = vpack.i.bf16 %v2487_v36, %v2295_v11  ;;  %v2346_v40 = vpop.f32.mrb[78].mxu1  ;;  %v4854_v41 = vpop.f32.mrb[65].mxu0  ;;  %v5123_v60 = vld [vmem:[%s6463_s11 + $0x50] sm:$0xff]   ;;  %v5124_v36 = vld [vmem:[%s6463_s11 + $0x58] sm:$0xff]  }
0x104f   :  { %v4837_v3 = vpop.f32.mrb[79].mxu1  ;;  %v2490_v58 = vpop.f32.mrb[66].mxu0  ;;  %v5126_v40 = vld [vmem:[%s6463_s11 + $0x68] sm:$0xff]  }
0x1050   :  { %5080 = vrot.lane.b32.xlu1 %v5079_v39, %s5314_s24  ;;  %v4855_v2 = vpop.f32.mrb[67].mxu0  ;;  %v5125_v39 = vld [vmem:[%s6463_s11 + $0x60] sm:$0xff]  }
0x1054   :  { %v2439_v26 = vpop.f32.mrb[80].mxu1 }
0x1055   :  { %v5074_v45 = vpack.i.bf16 %v2439_v26, %v2247_v4  ;;  %v4848_v13 = vpop.f32.mrb[81].mxu1 }
0x1056   :  { %v2442_v35 = vpop.f32.mrb[82].mxu1 }
0x1057   :  { %5075 = vrot.lane.b32.xlu0 %v5074_v45, %s5313_s23  ;;  %v4849_v16 = vpop.f32.mrb[83].mxu1 }
0x1094   :  { %v5071_v17 = vpop.permute.xlu1 %5070 }
0x1095   :  { %v5073_v10 = vunpack.i.h.bf16 %v5071_v17  ;;  %v5072_v43 = vunpack.i.l.bf16 %v5071_v17 }
0x1097   :  { %v2517_v51 = vsel %vm292_vm2, %v2151_v12, %v5072_v43  ;;  %v2518_v55 = vsel %vm292_vm2, %v2343_v46, %v5073_v10  ;;  %v6041_v12 = vld [vmem:[%s6464_s12 + $0x8] sm:$0x3f]  ;;  %v5121_v46 = vld [vmem:[%s6463_s11 + $0x40] sm:$0xff]  }
0x1098   :  { %v2532_v14 = vrot.slane %v6041_v12, %v5457_v38  ;;  %v2620_v35 = vrot.slane %v6041_v12, %v5752_v9 }
0x10c2   :  { %v5081_v47 = vpop.permute.xlu1 %5080 }
0x10c3   :  { %v5083_v57 = vunpack.i.h.bf16 %v5081_v47  ;;  %v5082_v63 = vunpack.i.l.bf16 %v5081_v47  ;;  %v2626_v47 = vrot.slane %v6041_v12, %v5757_v37 }
0x10c9   :  { %v5076_v56 = vpop.permute.xlu0 %5075 }
0x10ca   :  { %v5078_v42 = vunpack.i.h.bf16 %v5076_v56  ;;  %v5077_v50 = vunpack.i.l.bf16 %v5076_v56 }
0x10cc   :  { %v2520_v7 = vsel %vm1189_vm4, %v2518_v55, %v5078_v42  ;;  %v2519_v19 = vsel %vm1189_vm4, %v2517_v51, %v5077_v50  ;;  %v5127_v55 = vld [vmem:[%s6463_s11 + $0x70] sm:$0xff]  }
0x10cd   :  { %v2522_v6 = vsel %vm1192_vm5, %v2520_v7, %v5083_v57  ;;  %v2521_v61 = vsel %vm1192_vm5, %v2519_v19, %v5082_v63  ;;  %v5128_v57 = vld [vmem:[%s6463_s11 + $0x78] sm:$0xff]   ;;  %v4350_v63 = vld [vmem:[%s6462_s10 + $0x1] ss:$0 sm:$0xff] }
0x10ce   :  { %v2523_v8 = vpack.c.bf16 %v2522_v6, %v2521_v61 }
0x10d0   :  { %4861 = vmatmul.mubr.msk.bf16.vlgmr.msra.gmra.mrb[84].mxu1 %vm111_vm1, %v2523_v8 }
0x10d1   :  { %4888 = vmatprep.mubr.msk.bf16.mxu1 %vm5305_vm0, %v5304_v1  ;;  %4873 = vmatpush3.bf16.msra.mxu1 %v5121_v46 }
0x10d2   :  { %4874 = vmatprep.subr.bf16.mxu1 %v5304_v1 }
0x10d5   :  { %4875 = vmatpush3.bf16.msra.mxu1 %v5122_v52 }
0x10d6   :  { %4876 = vmatprep.subr.bf16.mxu1 %v5304_v1 }
0x10d9   :  { %4877 = vmatpush3.bf16.msra.mxu1 %v5123_v60  ;;  %v5129_v60 = vld [vmem:[%s6458_s6 + $0x20] sm:$0xff]  }
0x10da   :  { %4878 = vmatprep.subr.bf16.mxu1 %v5304_v1 }
0x10dd   :  { %4879 = vmatpush3.bf16.msra.mxu1 %v5124_v36  ;;  %v5130_v36 = vld [vmem:[%s6458_s6 + $0x28] sm:$0xff]  }
0x10de   :  { %4880 = vmatprep.subr.bf16.mxu1 %v5304_v1 }
0x10e1   :  { %4881 = vmatpush3.bf16.msra.mxu1 %v5125_v39 }
0x10e2   :  { %4882 = vmatprep.subr.bf16.mxu1 %v5304_v1 }
0x10e5   :  { %4883 = vmatpush3.bf16.msra.mxu1 %v5126_v40 }
0x10e6   :  { %4884 = vmatprep.subr.bf16.mxu1 %v5304_v1 }
0x10e9   :  { %4885 = vmatpush3.bf16.msra.mxu1 %v5127_v55 }
0x10ea   :  { %4886 = vmatprep.subr.bf16.mxu1 %v5304_v1 }
0x10ed   :  { %4887 = vmatpush3.bf16.msra.mxu1 %v5128_v57 }
0x10ee   :  { %4918 = vmatprep.subr.bf16.mxu1 %v5304_v1 }
0x11a3   :  { %v2582_v15 = vpop.f32.mrb[84].mxu1 }
0x11a4   :  { %v2583_v18 = vadd.f32 %v2582_v15, %v2532_v14  ;;  %v4862_v20 = vpop.f32.mrb[85].mxu1 }
0x11a5   :  { %v2585_v21 = vpop.f32.mrb[86].mxu1 }
0x11a6   :  { %v2586_v48 = vadd.f32 %v2585_v21, %v2532_v14  ;;  %v4863_v0 = vpop.f32.mrb[87].mxu1  ;;  %v2589_v4 = vadd.f32 %v2583_v18, %v5804_v44  ;;  %v2722_v21 = vrot.slane %v6041_v12, %v5778_v59 }
0x11a8   :  { %v2591_v11 = vsel %vm111_vm1, %v2589_v4, 0.0  ;;  %v2590_v22 = vadd.f32 %v2586_v48, %v5806_v62  ;;  %v5119_v62 = vld [vmem:[%s6461_s9 + $0x10] sm:$0xff]  }
0x11a9   :  { %2592 = vadd.xlane.f32.xlu0 %v2591_v11  ;;  %4865 = vmatpush3.bf16.msra.mxu0 %v5119_v62 }
0x11aa   :  { %v2594_v23 = vsel %vm111_vm1, %v2590_v22, 0.0  ;;  %4866 = vmatprep.subr.bf16.mxu0 %v5304_v1 }
0x11ab   :  { %2595 = vadd.xlane.f32.xlu1 %v2594_v23 }
0x11ad   :  { %4867 = vmatpush3.bf16.msra.mxu0 %v5120_v31 }
0x11ae   :  { %4892 = vmatprep.subr.bf16.mxu0 %v5304_v1 }
0x1236   :  { %v2593_v24 = vpop.xlane.xlu0 %2592 }
0x1237   :  { %v2597_v49 = vmul.f32 0.03125, %v2593_v24 }
0x1238   :  { %v2596_v25 = vpop.xlane.xlu1 %2595 }
0x1239   :  { %v2599_v27 = vsub.f32 %v2589_v4, %v2597_v49  ;;  %v2598_v28 = vmul.f32 0.03125, %v2596_v25 }
0x123b   :  { %v2600_v5 = vsub.f32 %v2590_v22, %v2598_v28  ;;  %v2601_v29 = vmul.f32 %v2599_v27, %v2599_v27 }
0x123d   :  { %v2603_v30 = vsel %vm111_vm1, %v2601_v29, 0.0  ;;  %v2602_v53 = vmul.f32 %v2600_v5, %v2600_v5 }
0x123e   :  { %2604 = vadd.xlane.f32.xlu0 %v2603_v30 }
0x123f   :  { %v2606_v44 = vsel %vm111_vm1, %v2602_v53, 0.0 }
0x1242   :  { %2607 = vadd.xlane.f32.xlu0 %v2606_v44 }
0x12cb   :  { %v2605_v41 = vpop.xlane.xlu0 %2604 }
0x12cc   :  { %v2609_v3 = vmul.f32 0.03125, %v2605_v41 }
0x12ce   :  { %v2611_v58 = vadd.f32 1e-05, %v2609_v3 }
0x12cf   :  { %v2608_v2 = vpop.xlane.xlu0 %2607 }
0x12d0   :  { %5217 = vrsqrt.f32 %v2611_v58  ;;  %v2610_v26 = vmul.f32 0.03125, %v2608_v2 }
0x12d2   :  { %v2612_v45 = vadd.f32 1e-05, %v2610_v26  ;;  %v2843_v26 = vrot.slane %v6041_v12, %v5795_v32 }
0x12d4   :  { %5219 = vrsqrt.f32 %v2612_v45 }
0x12da   :  { %v5218_v13 = vpop.eup %5217 }
0x12db   :  { %v2615_v16 = vmul.f32 %v5218_v13, %v2599_v27 }
0x12dd   :  { %v2621_v10 = vmul.f32 %v2620_v35, %v2615_v16 }
0x12de   :  { %v5220_v17 = vpop.eup %5219 }
0x12df   :  { %v2616_v43 = vmul.f32 %v5220_v17, %v2600_v5  ;;  %v2627_v42 = vadd.f32 %v2626_v47, %v2621_v10  ;;  %v2849_v10 = vrot.slane %v6041_v12, %v5800_v34 }
0x12e1   :  { %v2622_v56 = vmul.f32 %v2620_v35, %v2616_v43 }
0x12e3   :  { %v2628_v50 = vadd.f32 %v2626_v47, %v2622_v56 }
0x12e5   :  { %v2629_v51 = vpack.c.bf16 %v2628_v50, %v2627_v42 }
0x12e7   :  { %4869 = vmatmul.mubr.msk.bf16.vlgmr.msra.gmra.mrb[68].mxu0 %vm111_vm1, %v2629_v51 }
0x12e8   :  { %4896 = vmatprep.mubr.msk.bf16.mxu0 %vm5305_vm0, %v5304_v1  ;;  %4893 = vmatpush3.bf16.msra.mxu0 %v5129_v60 }
0x12e9   :  { %4894 = vmatprep.subr.bf16.mxu0 %v5304_v1 }
0x12ec   :  { %4895 = vmatpush3.bf16.msra.mxu0 %v5130_v36 }
0x12ed   :  { %4900 = vmatprep.subr.bf16.mxu0 %v5304_v1 }
0x13ba   :  { %v2692_v7 = vpop.f32.mrb[68].mxu0 }
0x13bb   :  { %v2693_v19 = vadd.f32 %v4350_v63, %v2692_v7  ;;  %v4870_v6 = vpop.f32.mrb[69].mxu0 }
0x13bc   :  { %v2695_v61 = vpop.f32.mrb[70].mxu0 }
0x13bd   :  { %v2696_v8 = vadd.f32 %v4350_v63, %v2695_v61  ;;  %v4871_v14 = vpop.f32.mrb[71].mxu0  ;;  %v2699_v15 = vmax.f32 %v2693_v19, 0.0 }
0x13bf   :  { %v2700_v18 = vmax.f32 %v2696_v8, 0.0 }
0x13c1   :  { %v2701_v20 = vpack.c.bf16 %v2700_v18, %v2699_v15 }
0x13c3   :  { %4889 = vmatmul.mubr.bf16.vlgmr.msra.gmra.mrb[88].mxu1 %v2701_v20 }
0x13c4   :  { %4920 = vmatprep.mubr.msk.bf16.mxu1 %vm5305_vm0, %v5304_v1 }
0x1496   :  { %v2805_v48 = vpop.f32.mrb[88].mxu1 }
0x1497   :  { %v2806_v0 = vadd.f32 %v2805_v48, %v2722_v21  ;;  %v4890_v4 = vpop.f32.mrb[89].mxu1 }
0x1498   :  { %v2808_v11 = vpop.f32.mrb[90].mxu1 }
0x1499   :  { %v2809_v22 = vadd.f32 %v2808_v11, %v2722_v21  ;;  %v4891_v23 = vpop.f32.mrb[91].mxu1  ;;  %v2812_v24 = vadd.f32 %v2806_v0, %v2627_v42 }
0x149b   :  { %v2814_v49 = vsel %vm111_vm1, %v2812_v24, 0.0  ;;  %v2813_v25 = vadd.f32 %v2809_v22, %v2628_v50  ;;  %v4384_v50 = vld [vmem:[%s6459_s7 + $0x2] ss:$0 sm:$0xff] }
0x149c   :  { %2815 = vadd.xlane.f32.xlu1 %v2814_v49 }
0x149d   :  { %v2817_v27 = vsel %vm111_vm1, %v2813_v25, 0.0 }
0x149e   :  { %2818 = vadd.xlane.f32.xlu0 %v2817_v27 }
0x1529   :  { %v2816_v28 = vpop.xlane.xlu1 %2815 }
0x152a   :  { %v2820_v5 = vmul.f32 0.03125, %v2816_v28 }
0x152b   :  { %v2819_v29 = vpop.xlane.xlu0 %2818 }
0x152c   :  { %v2822_v30 = vsub.f32 %v2812_v24, %v2820_v5  ;;  %v2821_v53 = vmul.f32 0.03125, %v2819_v29 }
0x152e   :  { %v2823_v44 = vsub.f32 %v2813_v25, %v2821_v53  ;;  %v2824_v62 = vmul.f32 %v2822_v30, %v2822_v30 }
0x1530   :  { %v2826_v31 = vsel %vm111_vm1, %v2824_v62, 0.0  ;;  %v2825_v46 = vmul.f32 %v2823_v44, %v2823_v44 }
0x1531   :  { %2827 = vadd.xlane.f32.xlu1 %v2826_v31 }
0x1532   :  { %v2829_v52 = vsel %vm111_vm1, %v2825_v46, 0.0 }
0x1533   :  { %2830 = vadd.xlane.f32.xlu0 %v2829_v52 }
0x15be   :  { %v2828_v39 = vpop.xlane.xlu1 %2827 }
0x15bf   :  { %v2832_v40 = vmul.f32 0.03125, %v2828_v39 }
0x15c0   :  { %v2831_v41 = vpop.xlane.xlu0 %2830 }
0x15c1   :  { %v2834_v3 = vadd.f32 1e-05, %v2832_v40  ;;  %v2833_v58 = vmul.f32 0.03125, %v2831_v41 }
0x15c3   :  { %5221 = vrsqrt.f32 %v2834_v3  ;;  %v2835_v2 = vadd.f32 1e-05, %v2833_v58 }
0x15c5   :  { %5223 = vrsqrt.f32 %v2835_v2 }
0x15cd   :  { %v5222_v45 = vpop.eup %5221 }
0x15ce   :  { %v2838_v13 = vmul.f32 %v5222_v45, %v2822_v30 }
0x15cf   :  { %v5224_v35 = vpop.eup %5223 }
0x15d0   :  { %v2844_v16 = vmul.f32 %v2843_v26, %v2838_v13  ;;  %v2839_v17 = vmul.f32 %v5224_v35, %v2823_v44 }
0x15d2   :  { %v2845_v43 = vmul.f32 %v2843_v26, %v2839_v17  ;;  %v6121_v47 = vadd.f32 %v2849_v10, %v2844_v16 }
0x15d4   :  { %v6123_v56 = vadd.f32 %v2849_v10, %v2845_v43 }
0x15d6   :  { %v2854_v42 = vpack.c.bf16 %v6123_v56, %v6121_v47 }
0x15d8   :  { %4897 = vmatmul.mubr.msk.bf16.vlgmr.msra.gmra.mrb[72].mxu0 %vm111_vm1, %v2854_v42 }
0x15d9   :  { %4902 = vmatprep.mubr.msk.bf16.mxu0 %vm5305_vm0, %v5304_v1 }
0x16ab   :  { %v2917_v51 = vpop.f32.mrb[72].mxu0 }
0x16ac   :  { %v2918_v55 = vadd.f32 %v4384_v50, %v2917_v51  ;;  %v4898_v12 = vpop.f32.mrb[73].mxu0 }
0x16ad   :  { %v2920_v57 = vpop.f32.mrb[74].mxu0 }
0x16ae   :  { %2932 = vrot.lane.b32.xlu0 %v2918_v55, %s5309_s16  ;;  %2926 = vrot.lane.b32.xlu1 %v2918_v55, %s5308_s1  ;;  %v4899_v63 = vpop.f32.mrb[75].mxu0  ;;  %v2921_v7 = vadd.f32 %v4384_v50, %v2920_v57  ;;  %v2944_v19 = vpack.c.bf16 %v2918_v55, %v2918_v55 }
0x16b0   :  { %v6150_v21 = vpack.c.bf16 %v2921_v7, %v2921_v7 }
0x16b2   :  { %2938 = vrot.lane.b32.xlu1 %v2918_v55, %s5307_s30  ;;  %2934 = vrot.lane.b32.xlu0 %v2921_v7, %s5309_s16 }
0x16b6   :  { %2953 = vrot.lane.b32.xlu0 %v2944_v19, %s5310_s17  ;;  %2928 = vrot.lane.b32.xlu1 %v2921_v7, %s5308_s1 }
0x16ba   :  { %2940 = vrot.lane.b32.xlu1 %v2921_v7, %s5307_s30 }
0x1720   :  { %v2933_v6 = vpop.permute.xlu0 %2932  ;;  %v2927_v61 = vpop.permute.xlu1 %2926 }
0x1721   :  { %v6140_v8 = vpack.c.bf16 %v2933_v6, %v2933_v6  ;;  %v6142_v14 = vpack.c.bf16 %v2927_v61, %v2927_v61 }
0x1723   :  { %3051 = vrot.lane.b32.xlu0 %v6140_v8, %s5310_s17  ;;  %3002 = vrot.lane.b32.xlu1 %v6142_v14, %s5310_s17 }
0x1724   :  { %v2939_v15 = vpop.permute.xlu1 %2938  ;;  %v2935_v18 = vpop.permute.xlu0 %2934 }
0x1725   :  { %v6148_v20 = vpack.c.bf16 %v2939_v15, %v2939_v15  ;;  %v6156_v4 = vpack.c.bf16 %v2935_v18, %v2935_v18 }
0x1727   :  { %3100 = vrot.lane.b32.xlu1 %v6148_v20, %s5310_s17  ;;  %3149 = vrot.lane.b32.xlu0 %v6150_v21, %s5310_s17 }
0x1728   :  { %v2954_v48 = vpop.permute.xlu0 %2953  ;;  %v2929_v0 = vpop.permute.xlu1 %2928 }
0x1729   :  { %v2959_v11 = vsel %vm292_vm2, %v2954_v48, 0  ;;  %v6159_v22 = vpack.c.bf16 %v2929_v0, %v2929_v0 }
0x172a   :  { %4901 = vmatpush3.bf16.xpose.msra.mxu0 %v2959_v11 }
0x172b   :  { %3198 = vrot.lane.b32.xlu1 %v6159_v22, %s5310_s17  ;;  %3247 = vrot.lane.b32.xlu0 %v6156_v4, %s5310_s17 }
0x172c   :  { %v2941_v23 = vpop.permute.xlu1 %2940  ;;  %4906 = vmatprep.subr.bf16.mxu0 %v5304_v1 }
0x172d   :  { %v6166_v24 = vpack.c.bf16 %v2941_v23, %v2941_v23 }
0x172f   :  { %3296 = vrot.lane.b32.xlu1 %v6166_v24, %s5310_s17 }
0x1731   :  { %4903 = vmatmul.mubr.msk.bf16.vlgmr.msra.gmra.mrb[76].mxu0 %vm292_vm2, %v2944_v19 }
0x1732   :  { %4908 = vmatprep.mubr.msk.bf16.mxu0 %vm5305_vm0, %v5304_v1 }
0x1733   :  { %3440 = vrot.lane.b32.xlu1 %v2944_v19, %s5311_s18 }
0x1795   :  { %v3003_v49 = vpop.permute.xlu1 %3002  ;;  %v3052_v5 = vpop.permute.xlu0 %3051 }
0x1796   :  { %v3008_v25 = vsel %vm292_vm2, %v3003_v49, 0  ;;  %v3057_v29 = vsel %vm292_vm2, %v3052_v5, 0 }
0x1797   :  { %4907 = vmatpush3.bf16.xpose.msra.mxu0 %v3008_v25 }
0x1798   :  { %4912 = vmatprep.subr.bf16.mxu0 %v5304_v1 }
0x1799   :  { %v3101_v27 = vpop.permute.xlu1 %3100  ;;  %v3150_v44 = vpop.permute.xlu0 %3149 }
0x179a   :  { %v3106_v28 = vsel %vm292_vm2, %v3101_v27, 0  ;;  %v3155_v62 = vsel %vm292_vm2, %v3150_v44, 0 }
0x179b   :  { %4919 = vmatpush3.bf16.xpose.msra.mxu1 %v3106_v28 }
0x179c   :  { %4930 = vmatprep.subr.bf16.mxu1 %v5304_v1 }
0x179d   :  { %v3199_v30 = vpop.permute.xlu1 %3198  ;;  %v3248_v52 = vpop.permute.xlu0 %3247 }
0x179e   :  { %4909 = vmatmul.mubr.msk.bf16.vlgmr.msra.gmra.mrb[80].mxu0 %vm292_vm2, %v6142_v14  ;;  %v3204_v53 = vsel %vm292_vm2, %v3199_v30, 0  ;;  %v3253_v60 = vsel %vm292_vm2, %v3248_v52, 0 }
0x179f   :  { %4913 = vmatpush3.bf16.xpose.msra.mxu0 %v3057_v29  ;;  %4914 = vmatprep.mubr.msk.bf16.mxu0 %vm5305_vm0, %v5304_v1 }
0x17a0   :  { %4924 = vmatprep.subr.bf16.mxu0 %v5304_v1 }
0x17a1   :  { %v3297_v31 = vpop.permute.xlu1 %3296 }
0x17a2   :  { %4921 = vmatmul.mubr.msk.bf16.vlgmr.msra.gmra.mrb[92].mxu1 %vm292_vm2, %v6148_v20  ;;  %v3302_v46 = vsel %vm292_vm2, %v3297_v31, 0 }
0x17a3   :  { %4931 = vmatpush3.bf16.xpose.msra.mxu1 %v3204_v53  ;;  %4932 = vmatprep.mubr.msk.bf16.mxu1 %vm5305_vm0, %v5304_v1 }
0x17a4   :  { %4942 = vmatprep.subr.bf16.mxu1 %v5304_v1 }
0x17a5   :  { %v3441_v36 = vpop.permute.xlu1 %3440 }
0x17a6   :  { %4915 = vmatmul.mubr.msk.bf16.vlgmr.msra.gmra.mrb[84].mxu0 %vm292_vm2, %v6140_v8  ;;  %v3446_v39 = vsel %vm783_vm3, %v3441_v36, 0 }
0x17a7   :  { %4925 = vmatpush3.bf16.xpose.msra.mxu0 %v3155_v62  ;;  %4926 = vmatprep.mubr.msk.bf16.mxu0 %vm5305_vm0, %v5304_v1 }
0x17a8   :  { %4936 = vmatprep.subr.bf16.mxu0 %v5304_v1 }
0x17aa   :  { %4933 = vmatmul.mubr.msk.bf16.vlgmr.msra.gmra.mrb[96].mxu1 %vm292_vm2, %v6159_v22 }
0x17ab   :  { %4943 = vmatpush3.bf16.xpose.msra.mxu1 %v3302_v46  ;;  %4944 = vmatprep.mubr.msk.bf16.mxu1 %vm5305_vm0, %v5304_v1 }
0x17ac   :  { %4954 = vmatprep.subr.bf16.mxu1 %v5304_v1 }
0x17ae   :  { %4927 = vmatmul.mubr.msk.bf16.vlgmr.msra.gmra.mrb[88].mxu0 %vm292_vm2, %v6150_v21 }
0x17af   :  { %4937 = vmatpush3.bf16.xpose.msra.mxu0 %v3253_v60  ;;  %4938 = vmatprep.mubr.msk.bf16.mxu0 %vm5305_vm0, %v5304_v1 }
0x17b0   :  { %4948 = vmatprep.subr.bf16.mxu0 %v5304_v1 }
0x17b2   :  { %4945 = vmatmul.mubr.msk.bf16.vlgmr.msra.gmra.mrb[100].mxu1 %vm292_vm2, %v6166_v24 }
0x17b3   :  { %4956 = vmatprep.mubr.msk.bf16.mxu1 %vm5305_vm0, %v5304_v1 }
0x17b6   :  { %4939 = vmatmul.mubr.msk.bf16.vlgmr.msra.gmra.mrb[92].mxu0 %vm292_vm2, %v6156_v4 }
0x17b7   :  { %4949 = vmatpush3.bf16.msra.mxu0 %v3446_v39  ;;  %4950 = vmatprep.mubr.msk.bf16.mxu0 %vm5305_vm0, %v5304_v1 }
0x17b8   :  { %4960 = vmatprep.subr.bf16.mxu0 %v5304_v1 }
0x1804   :  { %v2995_v40 = vpop.f32.mrb[76].mxu0 }
0x1805   :  { %v2996_v41 = vadd.f32 %v2995_v40, %v5564_v33  ;;  %v4904_v3 = vpop.f32.mrb[77].mxu0 }
0x1806   :  { %v2998_v58 = vpop.f32.mrb[78].mxu0 }
0x1807   :  { %v4905_v2 = vpop.f32.mrb[79].mxu0  ;;  %v3344_v26 = vsel %vm292_vm2, %v2996_v41, -inf }
0x1808   :  { %3345 = vmax.xlane.f32.xlu0 %v3344_v26 }
0x1871   :  { %v3044_v45 = vpop.f32.mrb[80].mxu0 }
0x1872   :  { %v3045_v13 = vadd.f32 %v3044_v45, %v5564_v33  ;;  %v4910_v35 = vpop.f32.mrb[81].mxu0 }
0x1873   :  { %v3047_v16 = vpop.f32.mrb[82].mxu0 }
0x1874   :  { %v4911_v17 = vpop.f32.mrb[83].mxu0  ;;  %v3347_v10 = vsel %vm292_vm2, %v3045_v13, -inf }
0x1875   :  { %3348 = vmax.xlane.f32.xlu1 %v3347_v10  ;;  %v3142_v43 = vpop.f32.mrb[92].mxu1 }
0x1876   :  { %v3143_v42 = vadd.f32 %v3142_v43, %v5564_v33  ;;  %v4922_v50 = vpop.f32.mrb[93].mxu1 }
0x1877   :  { %v3145_v51 = vpop.f32.mrb[94].mxu1 }
0x1878   :  { %v4923_v55 = vpop.f32.mrb[95].mxu1  ;;  %v3353_v12 = vsel %vm292_vm2, %v3143_v42, -inf }
0x1879   :  { %v3093_v57 = vpop.f32.mrb[84].mxu0  ;;  %3354 = vmax.xlane.f32.xlu0 %v3353_v12 }
0x187a   :  { %v3094_v63 = vadd.f32 %v3093_v57, %v5564_v33  ;;  %v4916_v7 = vpop.f32.mrb[85].mxu0 }
0x187b   :  { %v3096_v19 = vpop.f32.mrb[86].mxu0 }
0x187c   :  { %v4917_v6 = vpop.f32.mrb[87].mxu0  ;;  %v3350_v61 = vsel %vm292_vm2, %v3094_v63, -inf }
0x187d   :  { %3351 = vmax.xlane.f32.xlu0 %v3350_v61  ;;  %v3240_v15 = vpop.f32.mrb[96].mxu1 }
0x187e   :  { %v6227_v18 = vadd.f32 %v3240_v15, %v5574_v54  ;;  %v4934_v48 = vpop.f32.mrb[97].mxu1 }
0x187f   :  { %v3243_v0 = vpop.f32.mrb[98].mxu1 }
0x1880   :  { %v4935_v11 = vpop.f32.mrb[99].mxu1  ;;  %v3359_v23 = vsel %vm292_vm2, %v6227_v18, -inf }
0x1881   :  { %v3191_v49 = vpop.f32.mrb[88].mxu0  ;;  %3360 = vmax.xlane.f32.xlu0 %v3359_v23 }
0x1882   :  { %v3192_v33 = vadd.f32 %v3191_v49, %v5574_v54  ;;  %v4928_v25 = vpop.f32.mrb[89].mxu0 }
0x1883   :  { %v3194_v27 = vpop.f32.mrb[90].mxu0 }
0x1884   :  { %v4929_v28 = vpop.f32.mrb[91].mxu0  ;;  %v3356_v5 = vsel %vm292_vm2, %v3192_v33, -inf }
0x1885   :  { %3357 = vmax.xlane.f32.xlu1 %v3356_v5  ;;  %v3338_v29 = vpop.f32.mrb[100].mxu1 }
0x1886   :  { %v6234_v30 = vadd.f32 %v3338_v29, %v5574_v54  ;;  %v4946_v53 = vpop.f32.mrb[101].mxu1 }
0x1887   :  { %v3341_v44 = vpop.f32.mrb[102].mxu1 }
0x1888   :  { %v4947_v62 = vpop.f32.mrb[103].mxu1  ;;  %v3365_v31 = vsel %vm292_vm2, %v6234_v30, -inf }
0x1889   :  { %v3289_v46 = vpop.f32.mrb[92].mxu0  ;;  %3366 = vmax.xlane.f32.xlu0 %v3365_v31 }
0x188a   :  { %v4940_v52 = vpop.f32.mrb[93].mxu0  ;;  %v3290_v39 = vadd.f32 %v3289_v46, %v5574_v54 }
0x188b   :  { %v3292_v60 = vpop.f32.mrb[94].mxu0 }
0x188c   :  { %v4941_v36 = vpop.f32.mrb[95].mxu0  ;;  %v3362_v40 = vsel %vm292_vm2, %v3290_v39, -inf }
0x1895   :  { %v3346_v3 = vpop.xlane.xlu0 %3345 }
0x1896   :  { %3536 = vrot.lane.b32.xlu1 %v6140_v8, %s5311_s18  ;;  %v3368_v58 = vsub.f32 %v2996_v41, %v3346_v3 }
0x1898   :  { %v3376_v2 = vmul.f32 1.442695, %v3368_v58 }
0x189a   :  { %5225 = vpow2.f32 %v3376_v2 }
0x189f   :  { %3488 = vrot.lane.b32.xlu0 %v6142_v14, %s5311_s18 }
0x18a4   :  { %v6246_v26 = vpop.eup %5225 }
0x18a5   :  { %v3392_v8 = vsel %vm292_vm2, %v6246_v26, 0.0 }
0x18ba   :  { %3363 = vmax.xlane.f32.xlu1 %v3362_v40 }
0x18cb   :  { %3584 = vrot.lane.b32.xlu1 %v6148_v20, %s5311_s18 }
0x18ef   :  { %3393 = vadd.xlane.f32.xlu1 %v3392_v8 }
0x1900   :  { %3680 = vrot.lane.b32.xlu1 %v6159_v22, %s5311_s18 }
0x1902   :  { %v3349_v54 = vpop.xlane.xlu1 %3348 }
0x1903   :  { %v3369_v14 = vsub.f32 %v3045_v13, %v3349_v54 }
0x1905   :  { %v3378_v45 = vmul.f32 1.442695, %v3369_v14 }
0x1906   :  { %v3355_v35 = vpop.xlane.xlu0 %3354 }
0x1907   :  { %5227 = vpow2.f32 %v3378_v45  ;;  %v3371_v16 = vsub.f32 %v3143_v42, %v3355_v35 }
0x1909   :  { %v3382_v20 = vmul.f32 1.442695, %v3371_v16 }
0x190a   :  { %v3352_v41 = vpop.xlane.xlu0 %3351 }
0x190b   :  { %5229 = vpow2.f32 %v3382_v20  ;;  %v3370_v17 = vsub.f32 %v3094_v63, %v3352_v41 }
0x190d   :  { %v3380_v43 = vmul.f32 1.442695, %v3370_v17 }
0x190e   :  { %v3361_v50 = vpop.xlane.xlu0 %3360 }
0x190f   :  { %5231 = vpow2.f32 %v3380_v43  ;;  %v3373_v48 = vsub.f32 %v6227_v18, %v3361_v50 }
0x1911   :  { %v6252_v10 = vpop.eup %5227  ;;  %v3386_v0 = vmul.f32 1.442695, %v3373_v48 }
0x1912   :  { %v3358_v51 = vpop.xlane.xlu1 %3357  ;;  %v3395_v55 = vsel %vm292_vm2, %v6252_v10, 0.0 }
0x1913   :  { %v3372_v12 = vsub.f32 %v3192_v33, %v3358_v51  ;;  %3396 = vadd.xlane.f32.xlu0 %v3395_v55 }
0x1915   :  { %v6256_v22 = vpop.eup %5229  ;;  %v3384_v13 = vmul.f32 1.442695, %v3372_v12 }
0x1916   :  { %v3367_v57 = vpop.xlane.xlu0 %3366  ;;  %v3401_v42 = vsel %vm292_vm2, %v6256_v22, 0.0  ;;  %v3537_v49 = vpop.permute.xlu1 %3536 }
0x1917   :  { %3402 = vadd.xlane.f32.xlu0 %v3401_v42  ;;  %5233 = vpow2.f32 %v3384_v13  ;;  %v3375_v11 = vsub.f32 %v6234_v30, %v3367_v57  ;;  %v3542_v52 = vsel %vm783_vm3, %v3537_v49, 0 }
0x1918   :  { %5235 = vpow2.f32 %v3386_v0 }
0x1919   :  { %v6262_v19 = vpop.eup %5231  ;;  %v3390_v23 = vmul.f32 1.442695, %v3375_v11 }
0x191a   :  { %v3489_v63 = vpop.permute.xlu0 %3488  ;;  %v3398_v6 = vsel %vm292_vm2, %v6262_v19, 0.0 }
0x191b   :  { %v3494_v7 = vsel %vm783_vm3, %v3489_v63, 0  ;;  %5237 = vpow2.f32 %v3390_v23 }
0x191c   :  { %4955 = vmatpush3.bf16.msra.mxu1 %v3494_v7 }
0x191d   :  { %4966 = vmatprep.subr.bf16.mxu1 %v5304_v1 }
0x1921   :  { %v6266_v61 = vpop.eup %5233 }
0x1922   :  { %v3404_v15 = vsel %vm292_vm2, %v6266_v61, 0.0  ;;  %v6274_v25 = vpop.eup %5235 }
0x1923   :  { %v3407_v5 = vsel %vm292_vm2, %v6274_v25, 0.0 }
0x1924   :  { %3399 = vadd.xlane.f32.xlu1 %v3398_v6 }
0x1925   :  { %v6278_v29 = vpop.eup %5237 }
0x1928   :  { %3405 = vadd.xlane.f32.xlu1 %v3404_v15 }
0x192d   :  { %3632 = vrot.lane.b32.xlu0 %v6150_v21, %s5311_s18  ;;  %v3413_v21 = vsel %vm292_vm2, %v6278_v29, 0.0 }
0x1947   :  { %v3364_v33 = vpop.xlane.xlu1 %3363 }
0x1948   :  { %v3374_v27 = vsub.f32 %v3290_v39, %v3364_v33 }
0x194a   :  { %v3388_v28 = vmul.f32 1.442695, %v3374_v27 }
0x194b   :  { %v3585_v53 = vpop.permute.xlu1 %3584 }
0x194c   :  { %5239 = vpow2.f32 %v3388_v28  ;;  %3408 = vadd.xlane.f32.xlu0 %v3407_v5  ;;  %v3590_v58 = vsel %vm783_vm3, %v3585_v53, 0 }
0x1950   :  { %3414 = vadd.xlane.f32.xlu0 %v3413_v21 }
0x1956   :  { %v6282_v18 = vpop.eup %5239 }
0x1957   :  { %v3410_v30 = vsel %vm292_vm2, %v6282_v18, 0.0 }
0x1958   :  { %3411 = vadd.xlane.f32.xlu1 %v3410_v30 }
0x1966   :  { %3728 = vrot.lane.b32.xlu0 %v6156_v4, %s5311_s18 }
0x1969   :  { %3776 = vrot.lane.b32.xlu1 %v6166_v24, %s5311_s18 }
0x197c   :  { %v3394_v44 = vpop.xlane.xlu1 %3393 }
0x197d   :  { %5241 = vrcp.f32 %v3394_v44 }
0x1980   :  { %v3681_v39 = vpop.permute.xlu1 %3680 }
0x1981   :  { %v3686_v14 = vsel %vm783_vm3, %v3681_v39, 0 }
0x1987   :  { %v5242_v62 = vpop.eup %5241 }
0x1988   :  { %v3424_v31 = vmul.f32 %v5242_v62, %v6246_v26 }
0x198a   :  { %v3432_v46 = vpack.c.bf16 %v3424_v31, %v3424_v31 }
0x198c   :  { %4951 = vmatmul.mubr.msk.bf16.vlgmr.msra.gmra.mrb[96].mxu0 %vm292_vm2, %v3432_v46 }
0x198d   :  { %4961 = vmatpush3.bf16.msra.mxu0 %v3542_v52  ;;  %4962 = vmatprep.mubr.msk.bf16.mxu0 %vm5305_vm0, %v5304_v1 }
0x198e   :  { %4972 = vmatprep.subr.bf16.mxu0 %v5304_v1 }
0x19a0   :  { %v3397_v4 = vpop.xlane.xlu0 %3396 }
0x19a1   :  { %5243 = vrcp.f32 %v3397_v4 }
0x19a4   :  { %v3403_v24 = vpop.xlane.xlu0 %3402 }
0x19a5   :  { %5245 = vrcp.f32 %v3403_v24 }
0x19a8   :  { %v3633_v16 = vpop.permute.xlu0 %3632 }
0x19a9   :  { %v3638_v17 = vsel %vm783_vm3, %v3633_v16, 0 }
0x19ab   :  { %v5244_v60 = vpop.eup %5243 }
0x19ac   :  { %v3425_v36 = vmul.f32 %v5244_v60, %v6252_v10  ;;  %v5131_v60 = vld [vmem:[%s6460_s8 + $0x20] sm:$0xff]  }
0x19ae   :  { %v3433_v40 = vpack.c.bf16 %v3425_v36, %v3425_v36 }
0x19af   :  { %v5246_v3 = vpop.eup %5245 }
0x19b0   :  { %4957 = vmatmul.mubr.msk.bf16.vlgmr.msra.gmra.mrb[104].mxu1 %vm292_vm2, %v3433_v40  ;;  %v3427_v26 = vmul.f32 %v5246_v3, %v6256_v22 }
0x19b1   :  { %4967 = vmatpush3.bf16.msra.mxu1 %v3590_v58  ;;  %v3400_v2 = vpop.xlane.xlu1 %3399  ;;  %4968 = vmatprep.mubr.msk.bf16.mxu1 %vm5305_vm0, %v5304_v1 }
0x19b2   :  { %5247 = vrcp.f32 %v3400_v2  ;;  %4978 = vmatprep.subr.bf16.mxu1 %v5304_v1  ;;  %v3435_v54 = vpack.c.bf16 %v3427_v26, %v3427_v26  ;;  %v5132_v2 = vld [vmem:[%s6460_s8 + $0x28] sm:$0xff]  }
0x19b5   :  { %v3406_v8 = vpop.xlane.xlu1 %3405 }
0x19b6   :  { %5249 = vrcp.f32 %v3406_v8 }
0x19b8   :  { %4969 = vmatmul.mubr.msk.bf16.vlgmr.msra.gmra.mrb[108].mxu1 %vm292_vm2, %v3435_v54 }
0x19b9   :  { %4979 = vmatpush3.bf16.msra.mxu1 %v3686_v14  ;;  %4980 = vmatprep.mubr.msk.bf16.mxu1 %vm5305_vm0, %v5304_v1 }
0x19ba   :  { %4990 = vmatprep.subr.bf16.mxu1 %v5304_v1 }
0x19bc   :  { %v5248_v45 = vpop.eup %5247 }
0x19bd   :  { %v3426_v35 = vmul.f32 %v5248_v45, %v6262_v19 }
0x19bf   :  { %v3434_v20 = vpack.c.bf16 %v3426_v35, %v3426_v35 }
0x19c0   :  { %v5250_v41 = vpop.eup %5249 }
0x19c1   :  { %4963 = vmatmul.mubr.msk.bf16.vlgmr.msra.gmra.mrb[100].mxu0 %vm292_vm2, %v3434_v20  ;;  %v3428_v10 = vmul.f32 %v5250_v41, %v6266_v61 }
0x19c2   :  { %4973 = vmatpush3.bf16.msra.mxu0 %v3638_v17  ;;  %4974 = vmatprep.mubr.msk.bf16.mxu0 %vm5305_vm0, %v5304_v1 }
0x19c3   :  { %4984 = vmatprep.subr.bf16.mxu0 %v5304_v1  ;;  %v3436_v43 = vpack.c.bf16 %v3428_v10, %v3428_v10 }
0x19c9   :  { %4975 = vmatmul.mubr.msk.bf16.vlgmr.msra.gmra.mrb[104].mxu0 %vm292_vm2, %v3436_v43 }
0x19ca   :  { %4986 = vmatprep.mubr.msk.bf16.mxu0 %vm5305_vm0, %v5304_v1 }
0x19d9   :  { %v3409_v50 = vpop.xlane.xlu0 %3408 }
0x19da   :  { %5251 = vrcp.f32 %v3409_v50 }
0x19dd   :  { %v3415_v51 = vpop.xlane.xlu0 %3414 }
0x19de   :  { %5253 = vrcp.f32 %v3415_v51 }
0x19e1   :  { %v3729_v55 = vpop.permute.xlu0 %3728 }
0x19e2   :  { %v3734_v12 = vsel %vm783_vm3, %v3729_v55, 0 }
0x19e3   :  { %4985 = vmatpush3.bf16.msra.mxu0 %v3734_v12 }
0x19e4   :  { %v5252_v22 = vpop.eup %5251  ;;  %4996 = vmatprep.subr.bf16.mxu0 %v5304_v1 }
0x19e5   :  { %v3429_v13 = vmul.f32 %v5252_v22, %v6274_v25  ;;  %v3412_v57 = vpop.xlane.xlu1 %3411 }
0x19e6   :  { %5255 = vrcp.f32 %v3412_v57 }
0x19e7   :  { %v3437_v42 = vpack.c.bf16 %v3429_v13, %v3429_v13 }
0x19e8   :  { %v5254_v63 = vpop.eup %5253 }
0x19e9   :  { %v3777_v7 = vpop.permute.xlu1 %3776  ;;  %4981 = vmatmul.mubr.msk.bf16.vlgmr.msra.gmra.mrb[112].mxu1 %vm292_vm2, %v3437_v42  ;;  %v3431_v6 = vmul.f32 %v5254_v63, %v6278_v29 }
0x19ea   :  { %v3782_v19 = vsel %vm783_vm3, %v3777_v7, 0  ;;  %4992 = vmatprep.mubr.msk.bf16.mxu1 %vm5305_vm0, %v5304_v1 }
0x19eb   :  { %4991 = vmatpush3.bf16.msra.mxu1 %v3782_v19  ;;  %v3439_v61 = vpack.c.bf16 %v3431_v6, %v3431_v6 }
0x19ec   :  { %5004 = vmatprep.subr.bf16.mxu1 %v5304_v1 }
0x19f0   :  { %v5256_v15 = vpop.eup %5255 }
0x19f1   :  { %v3430_v48 = vmul.f32 %v5256_v15, %v6282_v18  ;;  %4993 = vmatmul.mubr.msk.bf16.vlgmr.msra.gmra.mrb[116].mxu1 %vm292_vm2, %v3439_v61 }
0x19f2   :  { %5008 = vmatprep.mubr.msk.bf16.mxu1 %vm5305_vm0, %v5304_v1 }
0x19f3   :  { %v3438_v0 = vpack.c.bf16 %v3430_v48, %v3430_v48  ;;  %v6357_v48 = vld [vmem:[%s6464_s12 + $0x10] sm:$0x3f]  ;;  %s5315_s12 = smov [#allocation4]  }
0x19f4   :  { %s4258_s18 = sshll.u32 %s5315_s12, 4  ;;  %s4259_s18 = int_to_ptr.vmem [resolvable:$true] %s4258_s18 }
0x19f5   :  { %4987 = vmatmul.mubr.msk.bf16.vlgmr.msra.gmra.mrb[108].mxu0 %vm292_vm2, %v3438_v0  ;;  %v3863_v0 = vrot.slane %v6357_v48, %v5457_v38  ;;  %p5282_p6 = scmp.lt.s32.totalorder %s4259_s18, %s4259_s18 }
0x19f6   :  { %5000 = vmatprep.mubr.msk.bf16.mxu0 %vm5305_vm0, %v5304_v1  ;;  %4997 = vmatpush3.bf16.msra.mxu0 %v5131_v60  ;;  %v5136_v60 = vld [vmem:[%s6463_s11 + $0x88] sm:$0xff]  }
0x19f7   :  { %4998 = vmatprep.subr.bf16.mxu0 %v5304_v1 }
0x19fa   :  { %4999 = vmatpush3.bf16.msra.mxu0 %v5132_v2 }
0x19fb   :  { %5012 = vmatprep.subr.bf16.mxu0 %v5304_v1 }
0x1a5f   :  { %v3482_v11 = vpop.f32.mrb[96].mxu0 }
0x1a60   :  { %v4952_v23 = vpop.f32.mrb[97].mxu0 }
0x1a61   :  { %v3485_v49 = vpop.f32.mrb[98].mxu0 }
0x1a62   :  { %v4953_v33 = vpop.f32.mrb[99].mxu0 }
0x1a83   :  { %v3530_v25 = vpop.f32.mrb[104].mxu1 }
0x1a84   :  { %v4958_v27 = vpop.f32.mrb[105].mxu1 }
0x1a85   :  { %v3533_v28 = vpop.f32.mrb[106].mxu1 }
0x1a86   :  { %v4959_v5 = vpop.f32.mrb[107].mxu1 }
0x1a8b   :  { %v3626_v29 = vpop.f32.mrb[108].mxu1 }
0x1a8c   :  { %v4970_v21 = vpop.f32.mrb[109].mxu1 }
0x1a8d   :  { %v3629_v18 = vpop.f32.mrb[110].mxu1 }
0x1a8e   :  { %v4971_v30 = vpop.f32.mrb[111].mxu1 }
0x1a94   :  { %v3578_v53 = vpop.f32.mrb[100].mxu0 }
0x1a95   :  { %v4964_v44 = vpop.f32.mrb[101].mxu0 }
0x1a96   :  { %v3581_v62 = vpop.f32.mrb[102].mxu0 }
0x1a97   :  { %v4965_v31 = vpop.f32.mrb[103].mxu0 }
0x1a9c   :  { %v3674_v46 = vpop.f32.mrb[104].mxu0 }
0x1a9d   :  { %v4976_v52 = vpop.f32.mrb[105].mxu0 }
0x1a9e   :  { %v3677_v4 = vpop.f32.mrb[106].mxu0 }
0x1a9f   :  { %v4977_v24 = vpop.f32.mrb[107].mxu0  ;;  %v5134_v4 = vld [vmem:[%s6461_s9 + $0x28] sm:$0xff]  }
0x1aa0   :  { %v5135_v24 = vld [vmem:[%s6463_s11 + $0x80] sm:$0xff]  }
0x1abc   :  { %v3722_v36 = vpop.f32.mrb[112].mxu1 }
0x1abd   :  { %v5084_v39 = vpack.i.bf16 %v3722_v36, %v3530_v25  ;;  %v4982_v40 = vpop.f32.mrb[113].mxu1  ;;  %v5137_v36 = vld [vmem:[%s6463_s11 + $0x90] sm:$0xff]  }
0x1abe   :  { %v3725_v3 = vpop.f32.mrb[114].mxu1  ;;  %v5139_v40 = vld [vmem:[%s6463_s11 + $0xa0] sm:$0xff]  }
0x1abf   :  { %5085 = vrot.lane.b32.xlu0 %v5084_v39, %s5312_s22  ;;  %v4983_v58 = vpop.f32.mrb[115].mxu1  ;;  %v5138_v39 = vld [vmem:[%s6463_s11 + $0x98] sm:$0xff]   ;;  %v5140_v3 = vld [vmem:[%s6463_s11 + $0xa8] sm:$0xff]  }
0x1ac4   :  { %v3818_v26 = vpop.f32.mrb[116].mxu1 }
0x1ac5   :  { %v5094_v8 = vpack.i.bf16 %v3818_v26, %v3626_v29  ;;  %v4994_v54 = vpop.f32.mrb[117].mxu1 }
0x1ac6   :  { %v3821_v14 = vpop.f32.mrb[118].mxu1 }
0x1ac7   :  { %5095 = vrot.lane.b32.xlu0 %v5094_v8, %s5314_s24  ;;  %v4995_v45 = vpop.f32.mrb[119].mxu1 }
0x1ac8   :  { %v3770_v35 = vpop.f32.mrb[108].mxu0  ;;  %v3951_v45 = vrot.slane %v6357_v48, %v5752_v9  ;;  %v5141_v9 = vld [vmem:[%s6463_s11 + $0xb0] sm:$0xff]  }
0x1ac9   :  { %v5089_v16 = vpack.i.bf16 %v3770_v35, %v3578_v53  ;;  %v4988_v20 = vpop.f32.mrb[109].mxu0 }
0x1aca   :  { %v3773_v41 = vpop.f32.mrb[110].mxu0 }
0x1acb   :  { %5090 = vrot.lane.b32.xlu1 %v5089_v16, %s5313_s23  ;;  %v4989_v17 = vpop.f32.mrb[111].mxu0  ;;  %s5277_s23 = scalar_lea.vmem %s4259_s18, 256 }
0x1acc   :  { %p5278_p5 = scmp.ne.s32.totalorder %s4259_s18, %s5277_s23  ;;  %p5283_p7 = scmp.lt.s32.totalorder %s5277_s23, %s5277_s23 }
0x1ace   :  { %p5284_p8 = por %p5283_p7, %p5282_p6 }
0x1ad0   :  { %p5285_p9 = pnand %p5284_p8, %p5278_p5 }
0x1b31   :  { %v5086_v10 = vpop.permute.xlu0 %5085 }
0x1b32   :  { %v5088_v43 = vunpack.i.h.bf16 %v5086_v10  ;;  %v5087_v50 = vunpack.i.l.bf16 %v5086_v10  ;;  %v3957_v10 = vrot.slane %v6357_v48, %v5757_v37  ;;  %v5142_v37 = vld [vmem:[%s6463_s11 + $0xb8] sm:$0xff]  }
0x1b34   :  { %v3849_v13 = vsel %vm292_vm2, %v3674_v46, %v5088_v43  ;;  %v3848_v57 = vsel %vm292_vm2, %v3482_v11, %v5087_v50 }
0x1b39   :  { %v5096_v51 = vpop.permute.xlu0 %5095 }
0x1b3a   :  { %v5098_v42 = vunpack.i.h.bf16 %v5096_v51  ;;  %v5097_v63 = vunpack.i.l.bf16 %v5096_v51 }
0x1b3d   :  { %v5091_v55 = vpop.permute.xlu1 %5090 }
0x1b3e   :  { %v5093_v12 = vunpack.i.h.bf16 %v5091_v55  ;;  %v5092_v22 = vunpack.i.l.bf16 %v5091_v55 }
0x1b40   :  { %v3850_v7 = vsel %vm1189_vm4, %v3848_v57, %v5092_v22  ;;  %v3851_v19 = vsel %vm1189_vm4, %v3849_v13, %v5093_v12  ;;  %v4416_v12 = vld [vmem:[%s6462_s10 + $0x2] ss:$0 sm:$0xff] }
0x1b41   :  { %v3852_v6 = vsel %vm1192_vm5, %v3850_v7, %v5097_v63  ;;  %v3853_v61 = vsel %vm1192_vm5, %v3851_v19, %v5098_v42 }
0x1b42   :  { %v3854_v15 = vpack.c.bf16 %v3853_v61, %v3852_v6 }
0x1b44   :  { %5001 = vmatmul.mubr.msk.bf16.vlgmr.msra.gmra.mrb[112].mxu0 %vm111_vm1, %v3854_v15  ;;  %v4053_v15 = vrot.slane %v6357_v48, %v5778_v59 }
0x1b45   :  { %5028 = vmatprep.mubr.msk.bf16.mxu0 %vm5305_vm0, %v5304_v1  ;;  %5013 = vmatpush3.bf16.msra.mxu0 %v5135_v24 }
0x1b46   :  { %5014 = vmatprep.subr.bf16.mxu0 %v5304_v1 }
0x1b49   :  { %5015 = vmatpush3.bf16.msra.mxu0 %v5136_v60 }
0x1b4a   :  { %5016 = vmatprep.subr.bf16.mxu0 %v5304_v1 }
0x1b4d   :  { %5017 = vmatpush3.bf16.msra.mxu0 %v5137_v36 }
0x1b4e   :  { %5018 = vmatprep.subr.bf16.mxu0 %v5304_v1 }
0x1b51   :  { %5019 = vmatpush3.bf16.msra.mxu0 %v5138_v39 }
0x1b52   :  { %5020 = vmatprep.subr.bf16.mxu0 %v5304_v1 }
0x1b55   :  { %5021 = vmatpush3.bf16.msra.mxu0 %v5139_v40  ;;  %v4174_v40 = vrot.slane %v6357_v48, %v5795_v32 }
0x1b56   :  { %5022 = vmatprep.subr.bf16.mxu0 %v5304_v1 }
0x1b59   :  { %5023 = vmatpush3.bf16.msra.mxu0 %v5140_v3 }
0x1b5a   :  { %5024 = vmatprep.subr.bf16.mxu0 %v5304_v1 }
0x1b5d   :  { %5025 = vmatpush3.bf16.msra.mxu0 %v5141_v9 }
0x1b5e   :  { %5026 = vmatprep.subr.bf16.mxu0 %v5304_v1 }
0x1b61   :  { %5027 = vmatpush3.bf16.msra.mxu0 %v5142_v37 }
0x1c17   :  { %v3913_v11 = vpop.f32.mrb[112].mxu0 }
0x1c18   :  { %v3914_v23 = vadd.f32 %v3913_v11, %v3863_v0  ;;  %v5002_v49 = vpop.f32.mrb[113].mxu0 }
0x1c19   :  { %v3916_v33 = vpop.f32.mrb[114].mxu0 }
0x1c1a   :  { %v3920_v25 = vadd.f32 %v3914_v23, %v6121_v47  ;;  %v3917_v27 = vadd.f32 %v3916_v33, %v3863_v0  ;;  %v5003_v28 = vpop.f32.mrb[115].mxu0 }
0x1c1c   :  { %v3921_v5 = vadd.f32 %v3917_v27, %v6123_v56  ;;  %v3922_v29 = vsel %vm111_vm1, %v3920_v25, 0.0  ;;  %v5133_v56 = vld [vmem:[%s6461_s9 + $0x20] sm:$0xff]  }
0x1c1d   :  { %3923 = vadd.xlane.f32.xlu1 %v3922_v29  ;;  %5005 = vmatpush3.bf16.msra.mxu1 %v5133_v56 }
0x1c1e   :  { %v3925_v21 = vsel %vm111_vm1, %v3921_v5, 0.0  ;;  %5006 = vmatprep.subr.bf16.mxu1 %v5304_v1 }
0x1c1f   :  { %3926 = vadd.xlane.f32.xlu0 %v3925_v21 }
0x1c21   :  { %5007 = vmatpush3.bf16.msra.mxu1 %v5134_v4 }
0x1c22   :  { %5032 = vmatprep.subr.bf16.mxu1 %v5304_v1 }
0x1caa   :  { %v3924_v18 = vpop.xlane.xlu1 %3923 }
0x1cab   :  { %v3928_v30 = vmul.f32 0.03125, %v3924_v18 }
0x1cac   :  { %v3927_v53 = vpop.xlane.xlu0 %3926 }
0x1cad   :  { %v3930_v38 = vsub.f32 %v3920_v25, %v3928_v30  ;;  %v3929_v44 = vmul.f32 0.03125, %v3927_v53 }
0x1caf   :  { %v3931_v62 = vsub.f32 %v3921_v5, %v3929_v44  ;;  %v3932_v31 = vmul.f32 %v3930_v38, %v3930_v38 }
0x1cb1   :  { %v3934_v46 = vsel %vm111_vm1, %v3932_v31, 0.0  ;;  %v3933_v47 = vmul.f32 %v3931_v62, %v3931_v62 }
0x1cb2   :  { %3935 = vadd.xlane.f32.xlu0 %v3934_v46 }
0x1cb3   :  { %v3937_v52 = vsel %vm111_vm1, %v3933_v47, 0.0  ;;  %v5143_v47 = vld [vmem:[%s6465_s13] sm:$0xff]  }
0x1cb4   :  { %3938 = vadd.xlane.f32.xlu1 %v3937_v52  ;;  %v5144_v52 = vld [vmem:[%s6465_s13 + $0x8] sm:$0xff]  }
0x1d3f   :  { %v3936_v58 = vpop.xlane.xlu0 %3935 }
0x1d40   :  { %v3940_v2 = vmul.f32 0.03125, %v3936_v58 }
0x1d41   :  { %v3939_v26 = vpop.xlane.xlu1 %3938 }
0x1d42   :  { %v3942_v8 = vadd.f32 1e-05, %v3940_v2  ;;  %v3941_v54 = vmul.f32 0.03125, %v3939_v26 }
0x1d44   :  { %5257 = vrsqrt.f32 %v3942_v8  ;;  %v3943_v14 = vadd.f32 1e-05, %v3941_v54 }
0x1d46   :  { %5259 = vrsqrt.f32 %v3943_v14 }
0x1d4e   :  { %v5258_v35 = vpop.eup %5257 }
0x1d4f   :  { %v3946_v16 = vmul.f32 %v5258_v35, %v3930_v38 }
0x1d50   :  { %v5260_v20 = vpop.eup %5259 }
0x1d51   :  { %v3952_v41 = vmul.f32 %v3951_v45, %v3946_v16  ;;  %v3947_v17 = vmul.f32 %v5260_v20, %v3931_v62  ;;  %v4444_v16 = vld [vmem:[%s6466_s14] ss:$0 sm:$0xff] }
0x1d53   :  { %v3953_v43 = vmul.f32 %v3951_v45, %v3947_v17  ;;  %v3958_v50 = vadd.f32 %v3957_v10, %v3952_v41 }
0x1d55   :  { %v3959_v51 = vadd.f32 %v3957_v10, %v3953_v43 }
0x1d57   :  { %v3960_v55 = vpack.c.bf16 %v3959_v51, %v3958_v50 }
0x1d59   :  { %5009 = vmatmul.mubr.msk.bf16.vlgmr.msra.gmra.mrb[120].mxu1 %vm111_vm1, %v3960_v55 }
0x1d5a   :  { %5036 = vmatprep.mubr.msk.bf16.mxu1 %vm5305_vm0, %v5304_v1  ;;  %5033 = vmatpush3.bf16.msra.mxu1 %v5143_v47 }
0x1d5b   :  { %5034 = vmatprep.subr.bf16.mxu1 %v5304_v1  ;;  %v4180_v1 = vrot.slane %v6357_v48, %v5800_v34 }
0x1d5e   :  { %5035 = vmatpush3.bf16.msra.mxu1 %v5144_v52 }
0x1e2c   :  { %v4023_v22 = vpop.f32.mrb[120].mxu1 }
0x1e2d   :  { %v4024_v13 = vadd.f32 %v4416_v12, %v4023_v22  ;;  %v5010_v57 = vpop.f32.mrb[121].mxu1 }
0x1e2e   :  { %v4026_v42 = vpop.f32.mrb[122].mxu1 }
0x1e2f   :  { %v4027_v63 = vadd.f32 %v4416_v12, %v4026_v42  ;;  %v5011_v7 = vpop.f32.mrb[123].mxu1  ;;  %v4030_v19 = vmax.f32 %v4024_v13, 0.0 }
0x1e31   :  { %v4031_v6 = vmax.f32 %v4027_v63, 0.0 }
0x1e33   :  { %v4032_v61 = vpack.c.bf16 %v4031_v6, %v4030_v19 }
0x1e35   :  { %5029 = vmatmul.mubr.bf16.vlgmr.msra.gmra.mrb[116].mxu0 %v4032_v61 }
0x1f08   :  { %v4136_v0 = vpop.f32.mrb[116].mxu0 }
0x1f09   :  { %v4137_v11 = vadd.f32 %v4136_v0, %v4053_v15  ;;  %v5030_v23 = vpop.f32.mrb[117].mxu0 }
0x1f0a   :  { %v4139_v49 = vpop.f32.mrb[118].mxu0 }
0x1f0b   :  { %v4143_v33 = vadd.f32 %v4137_v11, %v3958_v50  ;;  %v4140_v25 = vadd.f32 %v4139_v49, %v4053_v15  ;;  %v5031_v27 = vpop.f32.mrb[119].mxu0 }
0x1f0d   :  { %v4144_v28 = vadd.f32 %v4140_v25, %v3959_v51  ;;  %v4145_v5 = vsel %vm111_vm1, %v4143_v33, 0.0 }
0x1f0e   :  { %4146 = vadd.xlane.f32.xlu0 %v4145_v5 }
0x1f0f   :  { %v4148_v29 = vsel %vm111_vm1, %v4144_v28, 0.0 }
0x1f10   :  { %4149 = vadd.xlane.f32.xlu1 %v4148_v29 }
0x1f9b   :  { %v4147_v21 = vpop.xlane.xlu0 %4146 }
0x1f9c   :  { %v4151_v18 = vmul.f32 0.03125, %v4147_v21 }
0x1f9d   :  { %v4150_v30 = vpop.xlane.xlu1 %4149 }
0x1f9e   :  { %v4153_v53 = vsub.f32 %v4143_v33, %v4151_v18  ;;  %v4152_v38 = vmul.f32 0.03125, %v4150_v30 }
0x1fa0   :  { %v4154_v59 = vsub.f32 %v4144_v28, %v4152_v38  ;;  %v4155_v44 = vmul.f32 %v4153_v53, %v4153_v53 }
0x1fa2   :  { %v4157_v62 = vsel %vm111_vm1, %v4155_v44, 0.0  ;;  %v4156_v31 = vmul.f32 %v4154_v59, %v4154_v59 }
0x1fa3   :  { %4158 = vadd.xlane.f32.xlu0 %v4157_v62 }
0x1fa4   :  { %v4160_v46 = vsel %vm111_vm1, %v4156_v31, 0.0 }
0x1fa5   :  { %4161 = vadd.xlane.f32.xlu1 %v4160_v46 }
0x2030   :  { %v4159_v56 = vpop.xlane.xlu0 %4158 }
0x2031   :  { %v4163_v4 = vmul.f32 0.03125, %v4159_v56 }
0x2032   :  { %v4162_v24 = vpop.xlane.xlu1 %4161 }
0x2033   :  { %v4165_v60 = vadd.f32 1e-05, %v4163_v4  ;;  %v4164_v36 = vmul.f32 0.03125, %v4162_v24 }
0x2035   :  { %5261 = vrsqrt.f32 %v4165_v60  ;;  %v4166_v39 = vadd.f32 1e-05, %v4164_v36 }
0x2037   :  { %5263 = vrsqrt.f32 %v4166_v39 }
0x203f   :  { %v5262_v3 = vpop.eup %5261 }
0x2040   :  { %v4169_v58 = vmul.f32 %v5262_v3, %v4153_v53 }
0x2041   :  { %v5264_v2 = vpop.eup %5263 }
0x2042   :  { %v4175_v26 = vmul.f32 %v4174_v40, %v4169_v58  ;;  %v4170_v8 = vmul.f32 %v5264_v2, %v4154_v59 }
0x2044   :  { %v4176_v54 = vmul.f32 %v4174_v40, %v4170_v8  ;;  %v4181_v14 = vadd.f32 %v4180_v1, %v4175_v26 }
0x2046   :  { %v4182_v45 = vadd.f32 %v4180_v1, %v4176_v54 }
0x2048   :  { %v4183_v35 = vpack.c.bf16 %v4182_v45, %v4181_v14 }
0x204a   :  { %5037 = vmatmul.mubr.msk.bf16.vlgmr.msra.gmra.mrb[124].mxu1 %vm111_vm1, %v4183_v35 }
0x211d   :  { %v4244_v20 = vpop.f32.mrb[124].mxu1 }
0x211e   :  { %v4245_v32 = vadd.f32 %v4444_v16, %v4244_v20  ;;  %v5038_v41 = vpop.f32.mrb[125].mxu1 }
0x211f   :  { %v4247_v17 = vpop.f32.mrb[126].mxu1 }
0x2120   :  { %4251 = vst.msk [vmem:[#allocation4] sm:$0xff] %vm111_vm1, %v4245_v32  ;;  %v4248_v10 = vadd.f32 %v4444_v16, %v4247_v17  ;;  %v5039_v34 = vpop.f32.mrb[127].mxu1 }
0x2122   :  { %4252 = vst.msk [vmem:[#allocation4 + $0x8] sm:$0xff] %vm111_vm1, %v4248_v10 }
0x2123   :  { %5288 = shalt.err (!%p5285_p9)
}
0x2124   :  { %s5289_s20 = scalar_lea.hbm %s6467_s15, 256 }
0x2125   :  { %p5290_p10 = scmp.ne.s32.totalorder %s6467_s15, %s5289_s20  ;;  %p5293_p11 = scmp.lt.u32.totalorder %s5289_s20, %s6467_s15 }
0x2127   :  { %p5295_p12 = pnand %p5293_p11, %p5290_p10 }
0x2129   :  { %5298 = shalt.err (!%p5295_p12)
}
0x212a   :  { %s5316_s27 = smov 128  }
0x212b   :  { %4264 = dma.vmem_to_hbm [thread:$0]  %s4259_s18, 256, %s6467_s15, [#allocation5], %s5316_s27, %s5316_s27, %s5312_s22  }
0x212c   :  { %5301 = dma.done.wait [#allocation5], 256  }
0x212d   :  { %5302 = vsyncadd [#allocation5], 4294967040 }
0x212e   :  { %4268 = vsyncpa [#allocation5], 1 }

</bundles_post_ra>
